<compile_context>
chip_gen: v6e
topology: v6e:2x2x1
jax: 0.10.0
libtpu: 0.0.40
codegen_flags: <defaults>
</compile_context>

<pallas_src>
import jax
import jax.numpy as jnp
from jax.experimental import pallas as pl
from jax.experimental.pallas import tpu as pltpu

IN_DIM = 784          # model feature dim (matches nn.Linear(784, 256))
HID_DIM = 256         # hidden dim
IN_PAD = 896          # 784 padded up to 7*128 for lane-dense tiles
TB = 256              # batch tile (rows per grid step)


def _autoencoder_kernel(x_ref, w1_ref, b1_ref, w2_ref, b2_ref, o_ref):
    # Encoder: h1 = sigmoid(x @ W1 + b1)   (bf16 MXU matmul, f32 accumulate)
    h1 = jnp.dot(x_ref[...], w1_ref[...], preferred_element_type=jnp.float32)
    h1 = jax.nn.sigmoid(h1 + b1_ref[...])
    # Decoder: h2 = sigmoid(h1 @ W2 + b2)
    h2 = jnp.dot(h1.astype(jnp.bfloat16), w2_ref[...],
                 preferred_element_type=jnp.float32)
    h2 = jax.nn.sigmoid(h2 + b2_ref[...])
    o_ref[...] = h2.astype(o_ref.dtype)


def autoencoder_forward(x, w1, b1, w2, b2, *, tb=TB):
    """x: [B, 784] f32.  w1: [784, 256], b1: [256] or [1,256],
    w2: [256, 784], b2: [784] or [1,784].  Returns [B, 784] f32."""
    B, in_dim = x.shape
    assert in_dim == IN_DIM

    # Pad batch up to a multiple of the batch tile (zeros; sliced off below).
    n_tiles = pl.cdiv(B, tb)
    Bp = n_tiles * tb

    # bf16 matmul operands, lane-dense 896-wide layout (zero padding is exact).
    x_p = jnp.pad(x.astype(jnp.bfloat16), ((0, Bp - B), (0, IN_PAD - IN_DIM)))
    w1_p = jnp.pad(w1.astype(jnp.bfloat16), ((0, IN_PAD - IN_DIM), (0, 0)))
    w2_p = jnp.pad(w2.astype(jnp.bfloat16), ((0, 0), (0, IN_PAD - IN_DIM)))
    b1_p = b1.reshape(1, HID_DIM).astype(jnp.float32)
    b2_p = jnp.pad(b2.reshape(1, IN_DIM).astype(jnp.float32),
                   ((0, 0), (0, IN_PAD - IN_DIM)))

    cost = pl.CostEstimate(
        flops=2 * Bp * IN_PAD * HID_DIM * 2,
        transcendentals=Bp * (HID_DIM + IN_PAD),
        bytes_accessed=(x_p.size * 2 + w1_p.size * 2 + w2_p.size * 2
                        + b1_p.size * 4 + b2_p.size * 4 + Bp * IN_PAD * 4),
    )

    out = pl.pallas_call(
        _autoencoder_kernel,
        out_shape=jax.ShapeDtypeStruct((Bp, IN_PAD), jnp.float32),
        grid_spec=pltpu.PrefetchScalarGridSpec(
            num_scalar_prefetch=0,
            grid=(n_tiles,),
            in_specs=[
                pl.BlockSpec((tb, IN_PAD), lambda i: (i, 0)),       # x tile
                pl.BlockSpec((IN_PAD, HID_DIM), lambda i: (0, 0)),  # W1 (resident)
                pl.BlockSpec((1, HID_DIM), lambda i: (0, 0)),       # b1
                pl.BlockSpec((HID_DIM, IN_PAD), lambda i: (0, 0)),  # W2 (resident)
                pl.BlockSpec((1, IN_PAD), lambda i: (0, 0)),        # b2
            ],
            out_specs=pl.BlockSpec((tb, IN_PAD), lambda i: (i, 0)),
        ),
        compiler_params=pltpu.CompilerParams(
            dimension_semantics=("parallel",),
        ),
        cost_estimate=cost,
    )(x_p, w1_p, b1_p, w2_p, b2_p)

    # Drop batch + feature padding.
    return out[:B, :IN_DIM]


def _init_params(key):
    # Deterministic init mimicking torch.nn.Linear's U(-1/sqrt(fan_in), ...).
    k1, k2, k3, k4 = jax.random.split(key, 4)
    bound1 = 1.0 / jnp.sqrt(IN_DIM)
    bound2 = 1.0 / jnp.sqrt(HID_DIM)
    # stored as [in, out] (transposed relative to torch's [out, in])
    w1 = jax.random.uniform(k1, (IN_DIM, HID_DIM), jnp.float32, -bound1, bound1)
    b1 = jax.random.uniform(k2, (1, HID_DIM), jnp.float32, -bound1, bound1)
    w2 = jax.random.uniform(k3, (HID_DIM, IN_DIM), jnp.float32, -bound2, bound2)
    b2 = jax.random.uniform(k4, (1, IN_DIM), jnp.float32, -bound2, bound2)
    return w1, b1, w2, b2


if __name__ == "__main__":
    key = jax.random.PRNGKey(0)
    kx, kp = jax.random.split(key)

    B = 64  # small example batch; kernel pads internally to the batch tile
    x = jax.random.uniform(kx, (B, IN_DIM), jnp.float32)
    w1, b1, w2, b2 = _init_params(kp)

    out = autoencoder_forward(x, w1, b1, w2, b2)
    out = jax.block_until_ready(out)

    # Reference with the same bf16 operand rounding (f32 accumulation).
    def _bf(a):
        return a.astype(jnp.bfloat16).astype(jnp.float32)

    h1_ref = jax.nn.sigmoid(_bf(x) @ _bf(w1) + b1)
    ref = jax.nn.sigmoid(_bf(h1_ref) @ _bf(w2) + b2)

    assert out.shape == (B, IN_DIM)
    assert jnp.allclose(out, ref, atol=1e-3, rtol=1e-3), float(
        jnp.max(jnp.abs(out - ref)))

    print("KERNEL_OK")
</pallas_src>

<mosaic_0001>
module attributes {stable_mosaic.version = 11 : i64} {
  func.func @_autoencoder_kernel(%arg0: i32, %arg1: memref<256x896xbf16, #tpu.memory_space<vmem>>, %arg2: memref<896x256xbf16, #tpu.memory_space<vmem>>, %arg3: memref<1x256xf32, #tpu.memory_space<vmem>>, %arg4: memref<256x896xbf16, #tpu.memory_space<vmem>>, %arg5: memref<1x896xf32, #tpu.memory_space<vmem>>, %arg6: memref<256x896xf32, #tpu.memory_space<vmem>>) attributes {dimension_semantics = [#tpu.dimension_semantics<parallel>], iteration_bounds = array<i64: 1>, scalar_prefetch = 0 : i64, scratch_operands = 0 : i64, tpu.core_type = #tpu.core_type<tc>, window_params = [{transform_indices = @transform_0, window_bounds = array<i64: 256, 896>}, {pipeline_mode = #tpu.pipeline_mode<synchronous>, transform_indices = @transform_1, window_bounds = array<i64: 896, 256>}, {pipeline_mode = #tpu.pipeline_mode<synchronous>, transform_indices = @transform_2, window_bounds = array<i64: 1, 256>}, {pipeline_mode = #tpu.pipeline_mode<synchronous>, transform_indices = @transform_3, window_bounds = array<i64: 256, 896>}, {pipeline_mode = #tpu.pipeline_mode<synchronous>, transform_indices = @transform_4, window_bounds = array<i64: 1, 896>}, {transform_indices = @transform_5, window_bounds = array<i64: 256, 896>}]} {
    %c0 = arith.constant 0 : index
    %c0_0 = arith.constant 0 : index
    %0 = vector.load %arg1[%c0, %c0_0] : memref<256x896xbf16, #tpu.memory_space<vmem>>, vector<256x896xbf16>
    %c0_1 = arith.constant 0 : index
    %c0_2 = arith.constant 0 : index
    %1 = vector.load %arg2[%c0_1, %c0_2] : memref<896x256xbf16, #tpu.memory_space<vmem>>, vector<896x256xbf16>
    %cst = arith.constant dense<0.000000e+00> : vector<256x256xf32>
    %2 = tpu.matmul %0, %1, %cst {dimension_numbers = #tpu.dot_dimension_numbers<[1], [0], [0], [1], [0, 0, 1, 1], [], []>} : vector<256x896xbf16>, vector<896x256xbf16>, vector<256x256xf32> -> vector<256x256xf32>
    %c0_3 = arith.constant 0 : index
    %c0_4 = arith.constant 0 : index
    %3 = vector.load %arg3[%c0_3, %c0_4] : memref<1x256xf32, #tpu.memory_space<vmem>>, vector<1x256xf32>
    %4 = vector.broadcast %3 : vector<1x256xf32> to vector<256x256xf32>
    %5 = arith.addf %2, %4 : vector<256x256xf32>
    %6 = arith.negf %5 : vector<256x256xf32>
    %7 = math.exp %6 : vector<256x256xf32>
    %cst_5 = arith.constant 1.000000e+00 : f32
    %8 = vector.broadcast %cst_5 : f32 to vector<256x256xf32>
    %9 = arith.addf %8, %7 : vector<256x256xf32>
    %10 = arith.divf %8, %9 : vector<256x256xf32>
    %11 = arith.truncf %10 : vector<256x256xf32> to vector<256x256xbf16>
    %c0_6 = arith.constant 0 : index
    %c0_7 = arith.constant 0 : index
    %12 = vector.load %arg4[%c0_6, %c0_7] : memref<256x896xbf16, #tpu.memory_space<vmem>>, vector<256x896xbf16>
    %cst_8 = arith.constant dense<0.000000e+00> : vector<256x896xf32>
    %13 = tpu.matmul %11, %12, %cst_8 {dimension_numbers = #tpu.dot_dimension_numbers<[1], [0], [0], [1], [0, 0, 1, 1], [], []>} : vector<256x256xbf16>, vector<256x896xbf16>, vector<256x896xf32> -> vector<256x896xf32>
    %c0_9 = arith.constant 0 : index
    %c0_10 = arith.constant 0 : index
    %14 = vector.load %arg5[%c0_9, %c0_10] : memref<1x896xf32, #tpu.memory_space<vmem>>, vector<1x896xf32>
    %15 = vector.broadcast %14 : vector<1x896xf32> to vector<256x896xf32>
    %16 = arith.addf %13, %15 : vector<256x896xf32>
    %17 = arith.negf %16 : vector<256x896xf32>
    %18 = math.exp %17 : vector<256x896xf32>
    %cst_11 = arith.constant 1.000000e+00 : f32
    %19 = vector.broadcast %cst_11 : f32 to vector<256x896xf32>
    %20 = arith.addf %19, %18 : vector<256x896xf32>
    %21 = arith.divf %19, %20 : vector<256x896xf32>
    %c0_12 = arith.constant 0 : index
    %c0_13 = arith.constant 0 : index
    %22 = vector.load %arg6[%c0_12, %c0_13] : memref<256x896xf32, #tpu.memory_space<vmem>>, vector<256x896xf32>
    tpu.vector_store %arg6[%c0_12, %c0_13], %21 {strides = array<i32>} : memref<256x896xf32, #tpu.memory_space<vmem>>, vector<256x896xf32>,
    return
  }
  func.func @transform_0(%arg0: i32) -> (i32, i32) {
    %c0_i32 = arith.constant 0 : i32
    %c0_i32_0 = arith.constant 0 : i32
    return %arg0, %c0_i32 : i32, i32
  }
  func.func @transform_1(%arg0: i32) -> (i32, i32) {
    %c0_i32 = arith.constant 0 : i32
    %c0_i32_0 = arith.constant 0 : i32
    %c0_i32_1 = arith.constant 0 : i32
    return %c0_i32, %c0_i32_0 : i32, i32
  }
  func.func @transform_2(%arg0: i32) -> (i32, i32) {
    %c0_i32 = arith.constant 0 : i32
    %c0_i32_0 = arith.constant 0 : i32
    %c0_i32_1 = arith.constant 0 : i32
    return %c0_i32, %c0_i32_0 : i32, i32
  }
  func.func @transform_3(%arg0: i32) -> (i32, i32) {
    %c0_i32 = arith.constant 0 : i32
    %c0_i32_0 = arith.constant 0 : i32
    %c0_i32_1 = arith.constant 0 : i32
    return %c0_i32, %c0_i32_0 : i32, i32
  }
  func.func @transform_4(%arg0: i32) -> (i32, i32) {
    %c0_i32 = arith.constant 0 : i32
    %c0_i32_0 = arith.constant 0 : i32
    %c0_i32_1 = arith.constant 0 : i32
    return %c0_i32, %c0_i32_0 : i32, i32
  }
  func.func @transform_5(%arg0: i32) -> (i32, i32) {
    %c0_i32 = arith.constant 0 : i32
    %c0_i32_0 = arith.constant 0 : i32
    return %arg0, %c0_i32 : i32, i32
  }
}

</mosaic_0001>

<bundles_post_ra>
// kernel: tpu_custom_call.1
= control target key start
LH: loop header
LB: loop body
LE: loop exit
PB: predicated region body
PF: predicated region fallthrough
CT: control target
= control target key end

     0   :  { %10 = vsyncpa [#allocation3], 0  ;;  %s9719_s0 = inlined_call_operand.hbm [shape: bf16[256,896], index: 0, kind: input, shape index: {}]   ;;  %s9720_s1 = inlined_call_operand.hbm [shape: bf16[896,256], index: 1, kind: input, shape index: {}]   ;;  %s9721_s2 = inlined_call_operand.hbm [shape: f32[1,256], index: 2, kind: input, shape index: {}]   ;;  %s9722_s3 = inlined_call_operand.hbm [shape: bf16[256,896], index: 3, kind: input, shape index: {}]   ;;  %s9723_s4 = inlined_call_operand.vmem [shape: f32[1,896], index: 4, kind: input, shape index: {}]   ;;  %s9724_s5 = inlined_call_operand.hbm [shape: f32[256,896], index: 5, kind: output, shape index: {}]  }
   0x1   :  { %11 = vsyncpa [#allocation6], 0 }
   0x2   :  { %12 = vsyncpa [#allocation9], 0 }
   0x3   :  { %13 = vsyncpa [#allocation4], 0  ;;  %s8216_s18 = smov [#allocation5]  }
   0x4   :  { %s31_s19 = sshll.u32 %s8216_s18, 4  ;;  %s32_s19 = int_to_ptr.vmem [resolvable:$true] %s31_s19 }
   0x5   :  { %s8116_s20 = scalar_lea.vmem %s32_s19, 14336  ;;  %p8121_p1 = scmp.lt.s32.totalorder %s32_s19, %s32_s19 }
   0x6   :  { %p8117_p0 = scmp.ne.s32.totalorder %s32_s19, %s8116_s20  ;;  %p8122_p2 = scmp.lt.s32.totalorder %s8116_s20, %s8116_s20 }
   0x8   :  { %p8123_p3 = por %p8122_p2, %p8121_p1 }
   0xa   :  { %p8124_p4 = pnand %p8123_p3, %p8117_p0 }
   0xc   :  { %8127 = shalt.err (!%p8124_p4)
}
   0xd   :  { %s8217_s21 = smov 128   ;;  %s8218_s22 = smov 8  }
   0xe   :  { %37 = dma.hbm_to_vmem [thread:$0]  %s9720_s1, 14336, %s32_s19, [#allocation6], %s8217_s21, %s8217_s21, %s8218_s22  }
   0xf   :  { %s8219_s25 = smov [#allocation2]  }
  0x10   :  { %s19_s26 = sshll.u32 %s8219_s25, 4  ;;  %s20_s26 = int_to_ptr.vmem [resolvable:$true] %s19_s26 }
  0x11   :  { %s8136_s27 = scalar_lea.vmem %s20_s26, 14336  ;;  %p8141_p6 = scmp.lt.s32.totalorder %s20_s26, %s20_s26 }
  0x12   :  { %p8137_p5 = scmp.ne.s32.totalorder %s20_s26, %s8136_s27  ;;  %p8142_p7 = scmp.lt.s32.totalorder %s8136_s27, %s8136_s27 }
  0x14   :  { %p8143_p8 = por %p8142_p7, %p8141_p6 }
  0x16   :  { %p8144_p9 = pnand %p8143_p8, %p8137_p5 }
  0x18   :  { %8147 = shalt.err (!%p8144_p9)
}
  0x19   :  { %s8220_s28 = smov 448   ;;  %s8221_s29 = smov 28  }
  0x1a   :  { %25 = dma.hbm_to_vmem [thread:$0]  %s9719_s0, 14336, %s20_s26, [#allocation3], %s8220_s28, %s8220_s28, %s8221_s29  }
  0x1b   :  { %s8222_s7 = smov [#allocation7]   ;;  %s8223_s9 = smov [#allocation8]  }
  0x1c   :  { %s44_s8 = sshll.u32 %s8222_s7, 4  ;;  %s53_s1 = sshll.u32 %s8223_s9, 4  ;;  %s45_s8 = int_to_ptr.vmem [resolvable:$true] %s44_s8  ;;  %s54_s1 = int_to_ptr.vmem [resolvable:$true] %s53_s1 }
  0x1d   :  { %s8156_s10 = scalar_lea.vmem %s45_s8, 32  ;;  %p8161_p11 = scmp.lt.s32.totalorder %s45_s8, %s45_s8 }
  0x1e   :  { %p8157_p10 = scmp.ne.s32.totalorder %s45_s8, %s8156_s10  ;;  %p8162_p12 = scmp.lt.s32.totalorder %s8156_s10, %s8156_s10 }
  0x20   :  { %p8163_p13 = por %p8162_p12, %p8161_p11 }
  0x22   :  { %p8164_p0 = pnand %p8163_p13, %p8157_p10 }
  0x24   :  { %8167 = shalt.err (!%p8164_p0)
}
  0x25   :  { %47 = dma.hbm_to_vmem [thread:$0]  %s9721_s2, 32, %s45_s8, [#allocation6]  }
  0x26   :  { %s8176_s13 = scalar_lea.vmem %s54_s1, 14336  ;;  %p8181_p2 = scmp.lt.s32.totalorder %s54_s1, %s54_s1 }
  0x27   :  { %p8177_p1 = scmp.ne.s32.totalorder %s54_s1, %s8176_s13  ;;  %p8182_p3 = scmp.lt.s32.totalorder %s8176_s13, %s8176_s13 }
  0x29   :  { %p8183_p4 = por %p8182_p3, %p8181_p2 }
  0x2b   :  { %p8184_p5 = pnand %p8183_p4, %p8177_p1 }
  0x2d   :  { %8187 = shalt.err (!%p8184_p5)
}
  0x2e   :  { %59 = dma.hbm_to_vmem [thread:$0]  %s9722_s3, 14336, %s54_s1, [#allocation9], %s8220_s28, %s8220_s28, %s8221_s29  }
  0x2f   :  { %8208 = dma.done.wait [#allocation3], 14336  }
  0x30   :  { %8209 = vsyncadd [#allocation3], 4294952960 }
  0x31   :  { %8210 = dma.done.wait [#allocation6], 14368  }
  0x32   :  { %8211 = vsyncadd [#allocation6], 4294952928 }
  0x33   :  { %8212 = dma.done.wait [#allocation9], 14336  }
  0x34   :  { %8213 = vsyncadd [#allocation9], 4294952960  ;;  %v6467_v0 = vld [vmem:[#allocation5 + $0x74] ss:$8 sps:$4 sm:$0xff]   ;;  %v6471_v2 = vld [vmem:[#allocation5 + $0x70] ss:$8 sps:$4 sm:$0xff]  }
  0x35   :  { %v6469_v1 = vld [vmem:[#allocation5 + $0x174] ss:$8 sps:$4 sm:$0xff]   ;;  %1463 = vmatprep.subr.bf16.mxu0 %v6467_v0  ;;  %v6472_v3 = vld [vmem:[#allocation5 + $0x170] ss:$8 sps:$4 sm:$0xff]   ;;  %v6473_v4 = vld [vmem:[#allocation5 + $0x64] ss:$8 sps:$4 sm:$0xff]  }
  0x36   :  { %1656 = vmatprep.subr.bf16.mxu1 %v6469_v1  ;;  %1464 = vmatpush1.bf16.msra.mxu0 %v6471_v2  ;;  %v6475_v5 = vld [vmem:[#allocation5 + $0x164] ss:$8 sps:$4 sm:$0xff]   ;;  %v6477_v6 = vld [vmem:[#allocation5 + $0x60] ss:$8 sps:$4 sm:$0xff]   ;;  %v6479_v8 = vld [vmem:[#allocation5 + $0x54] ss:$8 sps:$4 sm:$0xff]  }
  0x37   :  { %1657 = vmatpush1.bf16.msra.mxu1 %v6472_v3  ;;  %1465 = vmatprep.subr.bf16.mxu0 %v6473_v4  ;;  %v6478_v7 = vld [vmem:[#allocation5 + $0x160] ss:$8 sps:$4 sm:$0xff]   ;;  %v6481_v9 = vld [vmem:[#allocation5 + $0x154] ss:$8 sps:$4 sm:$0xff]   ;;  %v6483_v10 = vld [vmem:[#allocation5 + $0x50] ss:$8 sps:$4 sm:$0xff]  }
  0x38   :  { %1658 = vmatprep.subr.bf16.mxu1 %v6475_v5  ;;  %v6484_v11 = vld [vmem:[#allocation5 + $0x150] ss:$8 sps:$4 sm:$0xff]   ;;  %v6485_v12 = vld [vmem:[#allocation5 + $0x44] ss:$8 sps:$4 sm:$0xff]   ;;  %v6489_v14 = vld [vmem:[#allocation5 + $0x40] ss:$8 sps:$4 sm:$0xff]  }
  0x39   :  { %v6487_v13 = vld [vmem:[#allocation5 + $0x144] ss:$8 sps:$4 sm:$0xff]   ;;  %v6490_v15 = vld [vmem:[#allocation5 + $0x140] ss:$8 sps:$4 sm:$0xff]   ;;  %v6491_v16 = vld [vmem:[#allocation5 + $0x34] ss:$8 sps:$4 sm:$0xff]  }
  0x3a   :  { %1466 = vmatpush1.bf16.msra.mxu0 %v6477_v6  ;;  %v6493_v17 = vld [vmem:[#allocation5 + $0x134] ss:$8 sps:$4 sm:$0xff]   ;;  %v6495_v18 = vld [vmem:[#allocation5 + $0x30] ss:$8 sps:$4 sm:$0xff]   ;;  %v6497_v20 = vld [vmem:[#allocation5 + $0x24] ss:$8 sps:$4 sm:$0xff]  }
  0x3b   :  { %1659 = vmatpush1.bf16.msra.mxu1 %v6478_v7  ;;  %1467 = vmatprep.subr.bf16.mxu0 %v6479_v8  ;;  %v6496_v19 = vld [vmem:[#allocation5 + $0x130] ss:$8 sps:$4 sm:$0xff]   ;;  %v6499_v21 = vld [vmem:[#allocation5 + $0x124] ss:$8 sps:$4 sm:$0xff]   ;;  %v6501_v22 = vld [vmem:[#allocation5 + $0x20] ss:$8 sps:$4 sm:$0xff]  }
  0x3c   :  { %1660 = vmatprep.subr.bf16.mxu1 %v6481_v9  ;;  %v6502_v23 = vld [vmem:[#allocation5 + $0x120] ss:$8 sps:$4 sm:$0xff]   ;;  %v6503_v24 = vld [vmem:[#allocation5 + $0x14] ss:$8 sps:$4 sm:$0xff]   ;;  %v6507_v26 = vld [vmem:[#allocation5 + $0x10] ss:$8 sps:$4 sm:$0xff]  }
  0x3d   :  { %v6505_v25 = vld [vmem:[#allocation5 + $0x114] ss:$8 sps:$4 sm:$0xff]   ;;  %v6508_v27 = vld [vmem:[#allocation5 + $0x110] ss:$8 sps:$4 sm:$0xff]   ;;  %v6509_v28 = vld [vmem:[#allocation5 + $0x4] ss:$8 sps:$4 sm:$0xff]  }
  0x3e   :  { %1468 = vmatpush1.bf16.msra.mxu0 %v6483_v10  ;;  %v6511_v29 = vld [vmem:[#allocation5 + $0x104] ss:$8 sps:$4 sm:$0xff]   ;;  %v6513_v30 = vld [vmem:[#allocation5] ss:$8 sps:$4 sm:$0xff]   ;;  %v6515_v32 = vld [vmem:[#allocation5 + $0xf4] ss:$8 sps:$4 sm:$0xff]  }
  0x3f   :  { %1661 = vmatpush1.bf16.msra.mxu1 %v6484_v11  ;;  %1469 = vmatprep.subr.bf16.mxu0 %v6485_v12  ;;  %v6514_v31 = vld [vmem:[#allocation5 + $0x100] ss:$8 sps:$4 sm:$0xff]   ;;  %v6517_v33 = vld [vmem:[#allocation5 + $0x1f4] ss:$8 sps:$4 sm:$0xff]   ;;  %v6519_v34 = vld [vmem:[#allocation5 + $0xf0] ss:$8 sps:$4 sm:$0xff]  }
  0x40   :  { %1662 = vmatprep.subr.bf16.mxu1 %v6487_v13  ;;  %v6520_v35 = vld [vmem:[#allocation5 + $0x1f0] ss:$8 sps:$4 sm:$0xff]   ;;  %v6521_v36 = vld [vmem:[#allocation5 + $0xe4] ss:$8 sps:$4 sm:$0xff]   ;;  %v6525_v38 = vld [vmem:[#allocation5 + $0xe0] ss:$8 sps:$4 sm:$0xff]  }
  0x41   :  { %v6523_v37 = vld [vmem:[#allocation5 + $0x1e4] ss:$8 sps:$4 sm:$0xff]   ;;  %v6526_v39 = vld [vmem:[#allocation5 + $0x1e0] ss:$8 sps:$4 sm:$0xff]   ;;  %v6527_v40 = vld [vmem:[#allocation5 + $0xd4] ss:$8 sps:$4 sm:$0xff]  }
  0x42   :  { %1470 = vmatpush1.bf16.msra.mxu0 %v6489_v14  ;;  %v6529_v41 = vld [vmem:[#allocation5 + $0x1d4] ss:$8 sps:$4 sm:$0xff]   ;;  %v6531_v42 = vld [vmem:[#allocation5 + $0xd0] ss:$8 sps:$4 sm:$0xff]   ;;  %v6533_v44 = vld [vmem:[#allocation5 + $0xc4] ss:$8 sps:$4 sm:$0xff]  }
  0x43   :  { %1663 = vmatpush1.bf16.msra.mxu1 %v6490_v15  ;;  %1471 = vmatprep.subr.bf16.mxu0 %v6491_v16  ;;  %v6532_v43 = vld [vmem:[#allocation5 + $0x1d0] ss:$8 sps:$4 sm:$0xff]   ;;  %v6535_v45 = vld [vmem:[#allocation5 + $0x1c4] ss:$8 sps:$4 sm:$0xff]   ;;  %v6537_v46 = vld [vmem:[#allocation5 + $0xc0] ss:$8 sps:$4 sm:$0xff]  }
  0x44   :  { %1664 = vmatprep.subr.bf16.mxu1 %v6493_v17  ;;  %v6538_v47 = vld [vmem:[#allocation5 + $0x1c0] ss:$8 sps:$4 sm:$0xff]   ;;  %v6539_v48 = vld [vmem:[#allocation5 + $0xb4] ss:$8 sps:$4 sm:$0xff]   ;;  %v6543_v52 = vld [vmem:[#allocation5 + $0xb0] ss:$8 sps:$4 sm:$0xff]  }
  0x45   :  { %v6565_v49 = vld [vmem:[#allocation2 + $0x4] ss:$28 sps:$4 sm:$0xff]   ;;  %v6541_v50 = vld [vmem:[#allocation5 + $0x1b4] ss:$8 sps:$4 sm:$0xff]   ;;  %v6568_v51 = vld [vmem:[#allocation2 + $0xc] ss:$28 sps:$4 sm:$0xff]  }
  0x46   :  { %1472 = vmatpush1.bf16.msra.mxu0 %v6495_v18  ;;  %1495 = vmatprep.mubr.bf16.mxu0 %v6565_v49  ;;  %v6544_v53 = vld [vmem:[#allocation5 + $0x1b0] ss:$8 sps:$4 sm:$0xff]   ;;  %v6545_v54 = vld [vmem:[#allocation5 + $0xa4] ss:$8 sps:$4 sm:$0xff]   ;;  %v6549_v56 = vld [vmem:[#allocation5 + $0xa0] ss:$8 sps:$4 sm:$0xff]  }
  0x47   :  { %1665 = vmatpush1.bf16.msra.mxu1 %v6496_v19  ;;  %1473 = vmatprep.subr.bf16.mxu0 %v6497_v20  ;;  %v6547_v55 = vld [vmem:[#allocation5 + $0x1a4] ss:$8 sps:$4 sm:$0xff]   ;;  %v6550_v57 = vld [vmem:[#allocation5 + $0x1a0] ss:$8 sps:$4 sm:$0xff]   ;;  %v6551_v58 = vld [vmem:[#allocation5 + $0x94] ss:$8 sps:$4 sm:$0xff]  }
  0x48   :  { %1666 = vmatprep.subr.bf16.mxu1 %v6499_v21  ;;  %1688 = vmatprep.mubr.bf16.mxu1 %v6568_v51  ;;  %v6553_v59 = vld [vmem:[#allocation5 + $0x194] ss:$8 sps:$4 sm:$0xff]   ;;  %v6555_v60 = vld [vmem:[#allocation5 + $0x90] ss:$8 sps:$4 sm:$0xff]   ;;  %v6557_v62 = vld [vmem:[#allocation5 + $0x84] ss:$8 sps:$4 sm:$0xff]  }
  0x49   :  { %v6556_v61 = vld [vmem:[#allocation5 + $0x190] ss:$8 sps:$4 sm:$0xff]   ;;  %v6559_v63 = vld [vmem:[#allocation5 + $0x184] ss:$8 sps:$4 sm:$0xff]   ;;  %v6561_v0 = vld [vmem:[#allocation5 + $0x80] ss:$8 sps:$4 sm:$0xff]  }
  0x4a   :  { %1474 = vmatpush1.bf16.msra.mxu0 %v6501_v22  ;;  %v6562_v1 = vld [vmem:[#allocation5 + $0x180] ss:$8 sps:$4 sm:$0xff]   ;;  %v6571_v2 = vld [vmem:[#allocation5 + $0x274] ss:$8 sps:$4 sm:$0xff]   ;;  %v6569_v6 = vld [vmem:[#allocation5 + $0x270] ss:$8 sps:$4 sm:$0xff]  }
  0x4b   :  { %1667 = vmatpush1.bf16.msra.mxu1 %v6502_v23  ;;  %1475 = vmatprep.subr.bf16.mxu0 %v6503_v24  ;;  %v6574_v3 = vld [vmem:[#allocation5 + $0x374] ss:$8 sps:$4 sm:$0xff]   ;;  %v6566_v5 = vld [vmem:[#allocation2 + $0x8] ss:$28 sps:$4 sm:$0xff]   ;;  %v6572_v7 = vld [vmem:[#allocation5 + $0x370] ss:$8 sps:$4 sm:$0xff]  }
  0x4c   :  { %1668 = vmatprep.subr.bf16.mxu1 %v6505_v25  ;;  %v6563_v4 = vld [vmem:[#allocation2] ss:$28 sps:$4 sm:$0xff]   ;;  %v6583_v10 = vld [vmem:[#allocation5 + $0x264] ss:$8 sps:$4 sm:$0xff]   ;;  %v6579_v16 = vld [vmem:[#allocation2 + $0x38] ss:$28 sps:$4 sm:$0xff]  }
  0x4d   :  { %v6575_v8 = vld [vmem:[#allocation2 + $0x3c] ss:$28 sps:$4 sm:$0xff]   ;;  %v6577_v9 = vld [vmem:[#allocation2 + $0x44] ss:$28 sps:$4 sm:$0xff]   ;;  %v6584_v18 = vld [vmem:[#allocation2 + $0x74] ss:$28 sps:$4 sm:$0xff]  }
  0x4e   :  { %1476 = vmatpush1.bf16.msra.mxu0 %v6507_v26  ;;  %v6595_v11 = vld [vmem:[#allocation5 + $0x364] ss:$8 sps:$4 sm:$0xff]   ;;  %v6581_v12 = vld [vmem:[#allocation5 + $0x260] ss:$8 sps:$4 sm:$0xff]   ;;  %v6592_v13 = vld [vmem:[#allocation5 + $0x254] ss:$8 sps:$4 sm:$0xff]  }
  0x4f   :  { %1669 = vmatpush1.bf16.msra.mxu1 %v6508_v27  ;;  %1477 = vmatprep.subr.bf16.mxu0 %v6509_v28  ;;  %v6593_v14 = vld [vmem:[#allocation5 + $0x360] ss:$8 sps:$4 sm:$0xff]   ;;  %v6616_v15 = vld [vmem:[#allocation5 + $0x354] ss:$8 sps:$4 sm:$0xff]   ;;  %v6590_v20 = vld [vmem:[#allocation5 + $0x250] ss:$8 sps:$4 sm:$0xff]  }
  0x50   :  { %1670 = vmatprep.subr.bf16.mxu1 %v6511_v29  ;;  %v6580_v17 = vld [vmem:[#allocation2 + $0x40] ss:$28 sps:$4 sm:$0xff]   ;;  %v6614_v21 = vld [vmem:[#allocation5 + $0x350] ss:$8 sps:$4 sm:$0xff]   ;;  %v6604_v22 = vld [vmem:[#allocation5 + $0x244] ss:$8 sps:$4 sm:$0xff]  }
  0x51   :  { %v6586_v19 = vld [vmem:[#allocation2 + $0x7c] ss:$28 sps:$4 sm:$0xff]   ;;  %v6637_v23 = vld [vmem:[#allocation5 + $0x344] ss:$8 sps:$4 sm:$0xff]   ;;  %v6602_v24 = vld [vmem:[#allocation5 + $0x240] ss:$8 sps:$4 sm:$0xff]  }
  0x52   :  { %1478 = vmatpush1.bf16.msra.mxu0 %v6513_v30  ;;  %v6635_v25 = vld [vmem:[#allocation5 + $0x340] ss:$8 sps:$4 sm:$0xff]   ;;  %v6588_v26 = vld [vmem:[#allocation2 + $0x70] ss:$28 sps:$4 sm:$0xff]   ;;  %v6613_v27 = vld [vmem:[#allocation5 + $0x234] ss:$8 sps:$4 sm:$0xff]  }
  0x53   :  { %1671 = vmatpush1.bf16.msra.mxu1 %v6514_v31  ;;  %1479 = vmatprep.subr.bf16.mxu0 %v6515_v32  ;;  %v6589_v28 = vld [vmem:[#allocation2 + $0x78] ss:$28 sps:$4 sm:$0xff]   ;;  %v6596_v29 = vld [vmem:[#allocation2 + $0xac] ss:$28 sps:$4 sm:$0xff]  }
  0x54   :  { %1672 = vmatprep.subr.bf16.mxu1 %v6517_v33  ;;  %v6598_v30 = vld [vmem:[#allocation2 + $0xb4] ss:$28 sps:$4 sm:$0xff]   ;;  %v6625_v32 = vld [vmem:[#allocation5 + $0x224] ss:$8 sps:$4 sm:$0xff]   ;;  %v6623_v33 = vld [vmem:[#allocation5 + $0x220] ss:$8 sps:$4 sm:$0xff]  }
  0x55   :  { %v6611_v31 = vld [vmem:[#allocation5 + $0x230] ss:$8 sps:$4 sm:$0xff]  }
  0x56   :  { %1480 = vmatpush2.bf16.msra.mxu0 %v6519_v34  ;;  %v6656_v34 = vld [vmem:[#allocation5 + $0x330] ss:$8 sps:$4 sm:$0xff]  }
  0x57   :  { %1673 = vmatpush2.bf16.msra.mxu1 %v6520_v35  ;;  %1481 = vmatprep.subr.bf16.mxu0 %v6521_v36  ;;  %v6658_v35 = vld [vmem:[#allocation5 + $0x334] ss:$8 sps:$4 sm:$0xff]   ;;  %v6653_v51 = vld [vmem:[#allocation5 + $0x2f0] ss:$8 sps:$4 sm:$0xff]  }
  0x58   :  { %1674 = vmatprep.subr.bf16.mxu1 %v6523_v37  ;;  %v6634_v36 = vld [vmem:[#allocation5 + $0x214] ss:$8 sps:$4 sm:$0xff]   ;;  %v6600_v37 = vld [vmem:[#allocation2 + $0xa8] ss:$28 sps:$4 sm:$0xff]  }
  0x59   :  { %v6617_v49 = vld [vmem:[#allocation2 + $0x11c] ss:$28 sps:$4 sm:$0xff]  }
  0x5a   :  { %1482 = vmatpush2.bf16.msra.mxu0 %v6525_v38  ;;  %v6601_v38 = vld [vmem:[#allocation2 + $0xb0] ss:$28 sps:$4 sm:$0xff]  }
  0x5b   :  { %1675 = vmatpush2.bf16.msra.mxu1 %v6526_v39  ;;  %1483 = vmatprep.subr.bf16.mxu0 %v6527_v40  ;;  %v6605_v39 = vld [vmem:[#allocation2 + $0xe4] ss:$28 sps:$4 sm:$0xff]   ;;  %v6607_v40 = vld [vmem:[#allocation2 + $0xec] ss:$28 sps:$4 sm:$0xff]  }
  0x5c   :  { %1676 = vmatprep.subr.bf16.mxu1 %v6529_v41  ;;  %v6632_v41 = vld [vmem:[#allocation5 + $0x210] ss:$8 sps:$4 sm:$0xff]  }
  0x5e   :  { %1484 = vmatpush2.bf16.msra.mxu0 %v6531_v42  ;;  %v6646_v42 = vld [vmem:[#allocation5 + $0x204] ss:$8 sps:$4 sm:$0xff]  }
  0x5f   :  { %1677 = vmatpush2.bf16.msra.mxu1 %v6532_v43  ;;  %1485 = vmatprep.subr.bf16.mxu0 %v6533_v44  ;;  %v6644_v43 = vld [vmem:[#allocation5 + $0x200] ss:$8 sps:$4 sm:$0xff]  }
  0x60   :  { %1678 = vmatprep.subr.bf16.mxu1 %v6535_v45  ;;  %v6609_v44 = vld [vmem:[#allocation2 + $0xe0] ss:$28 sps:$4 sm:$0xff]  }
  0x61   :  { %v6655_v45 = vld [vmem:[#allocation5 + $0x2f4] ss:$8 sps:$4 sm:$0xff]  }
  0x62   :  { %1486 = vmatpush2.bf16.msra.mxu0 %v6537_v46  ;;  %v6677_v46 = vld [vmem:[#allocation5 + $0x320] ss:$8 sps:$4 sm:$0xff]  }
  0x63   :  { %1679 = vmatpush2.bf16.msra.mxu1 %v6538_v47  ;;  %1487 = vmatprep.subr.bf16.mxu0 %v6539_v48  ;;  %v6679_v47 = vld [vmem:[#allocation5 + $0x324] ss:$8 sps:$4 sm:$0xff]  }
  0x64   :  { %1680 = vmatprep.subr.bf16.mxu1 %v6541_v50  ;;  %v6610_v48 = vld [vmem:[#allocation2 + $0xe8] ss:$28 sps:$4 sm:$0xff]  }
  0x65   :  { %v6619_v50 = vld [vmem:[#allocation2 + $0x124] ss:$28 sps:$4 sm:$0xff]  }
  0x66   :  { %1488 = vmatpush2.bf16.msra.mxu0 %v6543_v52  ;;  %v6667_v52 = vld [vmem:[#allocation5 + $0x2e4] ss:$8 sps:$4 sm:$0xff]  }
  0x67   :  { %1681 = vmatpush2.bf16.msra.mxu1 %v6544_v53  ;;  %1489 = vmatprep.subr.bf16.mxu0 %v6545_v54  ;;  %v6621_v53 = vld [vmem:[#allocation2 + $0x118] ss:$28 sps:$4 sm:$0xff]   ;;  %v6622_v54 = vld [vmem:[#allocation2 + $0x120] ss:$28 sps:$4 sm:$0xff]  }
  0x68   :  { %1682 = vmatprep.subr.bf16.mxu1 %v6547_v55  ;;  %v6665_v55 = vld [vmem:[#allocation5 + $0x2e0] ss:$8 sps:$4 sm:$0xff]  }
  0x6a   :  { %1490 = vmatpush2.bf16.msra.mxu0 %v6549_v56  ;;  %v6626_v56 = vld [vmem:[#allocation2 + $0x154] ss:$28 sps:$4 sm:$0xff]  }
  0x6b   :  { %1683 = vmatpush2.bf16.msra.mxu1 %v6550_v57  ;;  %1491 = vmatprep.subr.bf16.mxu0 %v6551_v58  ;;  %v6676_v57 = vld [vmem:[#allocation5 + $0x2d4] ss:$8 sps:$4 sm:$0xff]   ;;  %v6698_v58 = vld [vmem:[#allocation5 + $0x310] ss:$8 sps:$4 sm:$0xff]  }
  0x6c   :  { %1684 = vmatprep.subr.bf16.mxu1 %v6553_v59  ;;  %v6700_v59 = vld [vmem:[#allocation5 + $0x314] ss:$8 sps:$4 sm:$0xff]  }
  0x6e   :  { %1492 = vmatpush2.bf16.msra.mxu0 %v6555_v60  ;;  %v6628_v60 = vld [vmem:[#allocation2 + $0x15c] ss:$28 sps:$4 sm:$0xff]  }
  0x6f   :  { %1685 = vmatpush2.bf16.msra.mxu1 %v6556_v61  ;;  %1493 = vmatprep.subr.bf16.mxu0 %v6557_v62  ;;  %v6674_v61 = vld [vmem:[#allocation5 + $0x2d0] ss:$8 sps:$4 sm:$0xff]   ;;  %v6688_v62 = vld [vmem:[#allocation5 + $0x2c4] ss:$8 sps:$4 sm:$0xff]  }
  0x70   :  { %1686 = vmatprep.subr.bf16.mxu1 %v6559_v63  ;;  %v6630_v63 = vld [vmem:[#allocation2 + $0x150] ss:$28 sps:$4 sm:$0xff]  }
  0x72   :  { %1494 = vmatpush2.bf16.msra.mxu0 %v6561_v0  ;;  %v6631_v0 = vld [vmem:[#allocation2 + $0x158] ss:$28 sps:$4 sm:$0xff]  }
  0x73   :  { %1687 = vmatpush2.bf16.msra.mxu1 %v6562_v1  ;;  %1849 = vmatprep.subr.bf16.mxu0 %v6571_v2  ;;  %v6686_v1 = vld [vmem:[#allocation5 + $0x2c0] ss:$8 sps:$4 sm:$0xff]  }
  0x74   :  { %2042 = vmatprep.subr.bf16.mxu1 %v6574_v3  ;;  %v6638_v2 = vld [vmem:[#allocation2 + $0x18c] ss:$28 sps:$4 sm:$0xff]   ;;  %v6697_v3 = vld [vmem:[#allocation5 + $0x2b4] ss:$8 sps:$4 sm:$0xff]  }
  0x75   :  { %1496 = vmatmul.mubr.bf16.vlgmr.msra.gmra.mxu0 %v6563_v4  ;;  %v6640_v4 = vld [vmem:[#allocation2 + $0x194] ss:$28 sps:$4 sm:$0xff]  }
  0x76   :  { %1689 = vmatmul.mubr.bf16.vlgmr.msra.gmra.mxu1 %v6566_v5  ;;  %1850 = vmatpush1.bf16.msra.mxu0 %v6569_v6  ;;  %v6695_v5 = vld [vmem:[#allocation5 + $0x2b0] ss:$8 sps:$4 sm:$0xff]   ;;  %v6709_v6 = vld [vmem:[#allocation5 + $0x2a4] ss:$8 sps:$4 sm:$0xff]  }
  0x77   :  { %2043 = vmatpush1.bf16.msra.mxu1 %v6572_v7  ;;  %1505 = vmatprep.mubr.bf16.mxu0 %v6575_v8  ;;  %v6721_v7 = vld [vmem:[#allocation5 + $0x304] ss:$8 sps:$4 sm:$0xff]   ;;  %v6719_v8 = vld [vmem:[#allocation5 + $0x300] ss:$8 sps:$4 sm:$0xff]  }
  0x78   :  { %1698 = vmatprep.mubr.bf16.mxu1 %v6577_v9  ;;  %1851 = vmatprep.subr.bf16.mxu0 %v6583_v10  ;;  %v6707_v9 = vld [vmem:[#allocation5 + $0x2a0] ss:$8 sps:$4 sm:$0xff]  }
  0x79   :  { %2044 = vmatprep.subr.bf16.mxu1 %v6595_v11  ;;  %v6642_v10 = vld [vmem:[#allocation2 + $0x188] ss:$28 sps:$4 sm:$0xff]   ;;  %v6718_v11 = vld [vmem:[#allocation5 + $0x294] ss:$8 sps:$4 sm:$0xff]  }
  0x7a   :  { %1852 = vmatpush1.bf16.msra.mxu0 %v6581_v12  ;;  %v6643_v12 = vld [vmem:[#allocation2 + $0x190] ss:$28 sps:$4 sm:$0xff]  }
  0x7b   :  { %2045 = vmatpush1.bf16.msra.mxu1 %v6593_v14  ;;  %1853 = vmatprep.subr.bf16.mxu0 %v6592_v13  ;;  %v6647_v13 = vld [vmem:[#allocation2 + $0x1c4] ss:$28 sps:$4 sm:$0xff]   ;;  %v6649_v14 = vld [vmem:[#allocation2 + $0x1cc] ss:$28 sps:$4 sm:$0xff]  }
  0x7c   :  { %2046 = vmatprep.subr.bf16.mxu1 %v6616_v15  ;;  %v6716_v15 = vld [vmem:[#allocation5 + $0x290] ss:$8 sps:$4 sm:$0xff]  }
  0x7d   :  { %1506 = vmatmul.mubr.bf16.gmra.mxu0 %v6579_v16  ;;  %v6730_v16 = vld [vmem:[#allocation5 + $0x284] ss:$8 sps:$4 sm:$0xff]  }
  0x7e   :  { %1699 = vmatmul.mubr.bf16.gmra.mxu1 %v6580_v17  ;;  %1515 = vmatprep.mubr.bf16.mxu0 %v6584_v18  ;;  %v6728_v17 = vld [vmem:[#allocation5 + $0x280] ss:$8 sps:$4 sm:$0xff]  }
  0x7f   :  { %1708 = vmatprep.mubr.bf16.mxu1 %v6586_v19  ;;  %1854 = vmatpush1.bf16.msra.mxu0 %v6590_v20  ;;  %v6651_v18 = vld [vmem:[#allocation2 + $0x1c0] ss:$28 sps:$4 sm:$0xff]   ;;  %v6652_v19 = vld [vmem:[#allocation2 + $0x1c8] ss:$28 sps:$4 sm:$0xff]  }
  0x80   :  { %2047 = vmatpush1.bf16.msra.mxu1 %v6614_v21  ;;  %1855 = vmatprep.subr.bf16.mxu0 %v6604_v22  ;;  %v6659_v20 = vld [vmem:[#allocation2 + $0x1fc] ss:$28 sps:$4 sm:$0xff]   ;;  %v6661_v21 = vld [vmem:[#allocation2 + $0x204] ss:$28 sps:$4 sm:$0xff]  }
  0x81   :  { %2048 = vmatprep.subr.bf16.mxu1 %v6637_v23  ;;  %v6663_v22 = vld [vmem:[#allocation2 + $0x1f8] ss:$28 sps:$4 sm:$0xff]   ;;  %v6664_v23 = vld [vmem:[#allocation2 + $0x200] ss:$28 sps:$4 sm:$0xff]  }
  0x83   :  { %1856 = vmatpush1.bf16.msra.mxu0 %v6602_v24  ;;  %v6668_v24 = vld [vmem:[#allocation2 + $0x234] ss:$28 sps:$4 sm:$0xff]  }
  0x84   :  { %2049 = vmatpush1.bf16.msra.mxu1 %v6635_v25  ;;  %1857 = vmatprep.subr.bf16.mxu0 %v6613_v27  ;;  %v6670_v25 = vld [vmem:[#allocation2 + $0x23c] ss:$28 sps:$4 sm:$0xff]  }
  0x85   :  { %1516 = vmatmul.mubr.bf16.gmra.mxu0 %v6588_v26  ;;  %2050 = vmatprep.subr.bf16.mxu1 %v6658_v35  ;;  %v6672_v26 = vld [vmem:[#allocation2 + $0x230] ss:$28 sps:$4 sm:$0xff]   ;;  %v6673_v27 = vld [vmem:[#allocation2 + $0x238] ss:$28 sps:$4 sm:$0xff]   ;;  %v6694_v35 = vld [vmem:[#allocation2 + $0x2a8] ss:$28 sps:$4 sm:$0xff]  }
  0x86   :  { %1709 = vmatmul.mubr.bf16.gmra.mxu1 %v6589_v28  ;;  %1525 = vmatprep.mubr.bf16.mxu0 %v6596_v29  ;;  %v6680_v28 = vld [vmem:[#allocation2 + $0x26c] ss:$28 sps:$4 sm:$0xff]   ;;  %v6682_v29 = vld [vmem:[#allocation2 + $0x274] ss:$28 sps:$4 sm:$0xff]  }
  0x87   :  { %1718 = vmatprep.mubr.bf16.mxu1 %v6598_v30  ;;  %1858 = vmatpush1.bf16.msra.mxu0 %v6611_v31  ;;  %v6684_v30 = vld [vmem:[#allocation2 + $0x268] ss:$28 sps:$4 sm:$0xff]   ;;  %v6685_v31 = vld [vmem:[#allocation2 + $0x270] ss:$28 sps:$4 sm:$0xff]  }
  0x88   :  { %1859 = vmatprep.subr.bf16.mxu0 %v6625_v32  ;;  %2051 = vmatpush1.bf16.msra.mxu1 %v6656_v34  ;;  %v6689_v32 = vld [vmem:[#allocation2 + $0x2a4] ss:$28 sps:$4 sm:$0xff]  }
  0x89   :  { %2052 = vmatprep.subr.bf16.mxu1 %v6679_v47  ;;  %v6693_v34 = vld [vmem:[#allocation2 + $0x2a0] ss:$28 sps:$4 sm:$0xff]   ;;  %v6726_v47 = vld [vmem:[#allocation2 + $0x348] ss:$28 sps:$4 sm:$0xff]  }
  0x8b   :  { %1860 = vmatpush1.bf16.msra.mxu0 %v6623_v33  ;;  %v6691_v33 = vld [vmem:[#allocation2 + $0x2ac] ss:$28 sps:$4 sm:$0xff]  }
  0x8c   :  { %1861 = vmatprep.subr.bf16.mxu0 %v6634_v36  ;;  %2053 = vmatpush1.bf16.msra.mxu1 %v6677_v46  ;;  %v6701_v36 = vld [vmem:[#allocation2 + $0x2dc] ss:$28 sps:$4 sm:$0xff]  }
  0x8d   :  { %1526 = vmatmul.mubr.bf16.gmra.mxu0 %v6600_v37  ;;  %2054 = vmatprep.subr.bf16.mxu1 %v6700_v59  ;;  %v6703_v37 = vld [vmem:[#allocation2 + $0x2e4] ss:$28 sps:$4 sm:$0xff]   ;;  %v6789_v46 = vld [vmem:[#allocation8 + $0x194] ss:$28 sps:$4 sm:$0xff]  }
  0x8e   :  { %1719 = vmatmul.mubr.bf16.gmra.mxu1 %v6601_v38  ;;  %1535 = vmatprep.mubr.bf16.mxu0 %v6605_v39  ;;  %v6705_v38 = vld [vmem:[#allocation2 + $0x2d8] ss:$28 sps:$4 sm:$0xff]   ;;  %v6706_v39 = vld [vmem:[#allocation2 + $0x2e0] ss:$28 sps:$4 sm:$0xff]  }
  0x8f   :  { %1728 = vmatprep.mubr.bf16.mxu1 %v6607_v40  ;;  %1862 = vmatpush1.bf16.msra.mxu0 %v6632_v41  ;;  %v6710_v40 = vld [vmem:[#allocation2 + $0x314] ss:$28 sps:$4 sm:$0xff]   ;;  %v6712_v41 = vld [vmem:[#allocation2 + $0x31c] ss:$28 sps:$4 sm:$0xff]  }
  0x90   :  { %1863 = vmatprep.subr.bf16.mxu0 %v6646_v42  ;;  %2055 = vmatpush1.bf16.msra.mxu1 %v6698_v58  ;;  %v6714_v42 = vld [vmem:[#allocation2 + $0x310] ss:$28 sps:$4 sm:$0xff]   ;;  %v6797_v59 = vld [vmem:[#allocation8 + $0x158] ss:$28 sps:$4 sm:$0xff]  }
  0x91   :  { %2056 = vmatprep.subr.bf16.mxu1 %v6721_v7  ;;  %v6806_v58 = vld [vmem:[#allocation8 + $0x154] ss:$28 sps:$4 sm:$0xff]   ;;  %v6818_v7 = vld [vmem:[#allocation8 + $0xe4] ss:$28 sps:$4 sm:$0xff]  }
  0x93   :  { %1864 = vmatpush1.bf16.msra.mxu0 %v6644_v43  ;;  %v6715_v43 = vld [vmem:[#allocation2 + $0x318] ss:$28 sps:$4 sm:$0xff]  }
  0x94   :  { %1865 = vmatprep.subr.bf16.mxu0 %v6655_v45  ;;  %2057 = vmatpush1.bf16.msra.mxu1 %v6719_v8  ;;  %v6724_v45 = vld [vmem:[#allocation2 + $0x354] ss:$28 sps:$4 sm:$0xff]   ;;  %v6741_v8 = vld [vmem:[#allocation2 + $0x80] ss:$28 sps:$4 sm:$0xff]  }
  0x95   :  { %1536 = vmatmul.mubr.bf16.gmra.mxu0 %v6609_v44  ;;  %v6722_v44 = vld [vmem:[#allocation2 + $0x34c] ss:$28 sps:$4 sm:$0xff]   ;;  %3585 = vmatprep.subr.bf16.mxu1 %v6789_v46  ;;  %v6763_v46 = vld [vmem:[#allocation2 + $0x1d4] ss:$28 sps:$4 sm:$0xff]  }
  0x96   :  { %1729 = vmatmul.mubr.bf16.gmra.mxu1 %v6610_v48  ;;  %1545 = vmatprep.mubr.bf16.mxu0 %v6617_v49  ;;  %v6727_v48 = vld [vmem:[#allocation2 + $0x350] ss:$28 sps:$4 sm:$0xff]  }
  0x97   :  { %1738 = vmatprep.mubr.bf16.mxu1 %v6619_v50  ;;  %1866 = vmatpush2.bf16.msra.mxu0 %v6653_v51  ;;  %v6796_v49 = vld [vmem:[#allocation8 + $0x18c] ss:$28 sps:$4 sm:$0xff]   ;;  %v8224_v51 = vmov 0  }
  0x98   :  { %1867 = vmatprep.subr.bf16.mxu0 %v6667_v52  ;;  %v6733_v50 = vld [vmem:[#allocation2 + $0x14] ss:$28 sps:$4 sm:$0xff]  }
  0x99   :  { %v6731_v52 = vld [vmem:[#allocation2 + $0x10] ss:$28 sps:$4 sm:$0xff]  }
  0x9b   :  { %1868 = vmatpush2.bf16.msra.mxu0 %v6665_v55  ;;  %v6787_v55 = vld [vmem:[#allocation8 + $0x190] ss:$28 sps:$4 sm:$0xff]  }
  0x9c   :  { %1869 = vmatprep.subr.bf16.mxu0 %v6676_v57  ;;  %v6799_v57 = vld [vmem:[#allocation8 + $0x15c] ss:$28 sps:$4 sm:$0xff]  }
  0x9d   :  { %1546 = vmatmul.mubr.bf16.gmra.mxu0 %v6621_v53  ;;  %v6734_v53 = vld [vmem:[#allocation2 + $0x18] ss:$28 sps:$4 sm:$0xff]  }
  0x9e   :  { %1739 = vmatmul.mubr.bf16.gmra.mxu1 %v6622_v54  ;;  %1555 = vmatprep.mubr.bf16.mxu0 %v6626_v56  ;;  %v6735_v54 = vld [vmem:[#allocation2 + $0x4c] ss:$28 sps:$4 sm:$0xff]  }
  0x9f   :  { %1748 = vmatprep.mubr.bf16.mxu1 %v6628_v60  ;;  %1870 = vmatpush2.bf16.msra.mxu0 %v6674_v61  ;;  %v6794_v56 = vld [vmem:[#allocation8 + $0x188] ss:$28 sps:$4 sm:$0xff]   ;;  %v6804_v60 = vld [vmem:[#allocation8 + $0x150] ss:$28 sps:$4 sm:$0xff]  }
  0xa0   :  { %1871 = vmatprep.subr.bf16.mxu0 %v6688_v62  ;;  %v6737_v61 = vld [vmem:[#allocation2 + $0x48] ss:$28 sps:$4 sm:$0xff]   ;;  %v6738_v62 = vld [vmem:[#allocation2 + $0x50] ss:$28 sps:$4 sm:$0xff]  }
  0xa3   :  { %1872 = vmatpush2.bf16.msra.mxu0 %v6686_v1  ;;  %v6812_v1 = vld [vmem:[#allocation8 + $0x11c] ss:$28 sps:$4 sm:$0xff]  }
  0xa4   :  { %1873 = vmatprep.subr.bf16.mxu0 %v6697_v3  ;;  %v6810_v3 = vld [vmem:[#allocation8 + $0x118] ss:$28 sps:$4 sm:$0xff]  }
  0xa5   :  { %1556 = vmatmul.mubr.bf16.gmra.mxu0 %v6630_v63  ;;  %v6739_v63 = vld [vmem:[#allocation2 + $0x84] ss:$28 sps:$4 sm:$0xff]  }
  0xa6   :  { %1749 = vmatmul.mubr.bf16.gmra.mxu1 %v6631_v0  ;;  %1565 = vmatprep.mubr.bf16.mxu0 %v6638_v2  ;;  %v6809_v0 = vld [vmem:[#allocation8 + $0x124] ss:$28 sps:$4 sm:$0xff]  }
  0xa7   :  { %1758 = vmatprep.mubr.bf16.mxu1 %v6640_v4  ;;  %1874 = vmatpush2.bf16.msra.mxu0 %v6695_v5  ;;  %v6807_v2 = vld [vmem:[#allocation8 + $0x120] ss:$28 sps:$4 sm:$0xff]   ;;  %v6815_v4 = vld [vmem:[#allocation8 + $0xec] ss:$28 sps:$4 sm:$0xff]  }
  0xa8   :  { %1875 = vmatprep.subr.bf16.mxu0 %v6709_v6  ;;  %v6813_v5 = vld [vmem:[#allocation8 + $0xe8] ss:$28 sps:$4 sm:$0xff]   ;;  %v6816_v6 = vld [vmem:[#allocation8 + $0xe0] ss:$28 sps:$4 sm:$0xff]  }
  0xab   :  { %1876 = vmatpush2.bf16.msra.mxu0 %v6707_v9  ;;  %v6742_v9 = vld [vmem:[#allocation2 + $0x88] ss:$28 sps:$4 sm:$0xff]  }
  0xac   :  { %1877 = vmatprep.subr.bf16.mxu0 %v6718_v11  ;;  %v6819_v11 = vld [vmem:[#allocation8 + $0xb0] ss:$28 sps:$4 sm:$0xff]  }
  0xad   :  { %1566 = vmatmul.mubr.bf16.gmra.mxu0 %v6642_v10  ;;  %v6743_v10 = vld [vmem:[#allocation2 + $0xbc] ss:$28 sps:$4 sm:$0xff]  }
  0xae   :  { %1759 = vmatmul.mubr.bf16.gmra.mxu1 %v6643_v12  ;;  %1575 = vmatprep.mubr.bf16.mxu0 %v6647_v13  ;;  %v6821_v12 = vld [vmem:[#allocation8 + $0xb4] ss:$28 sps:$4 sm:$0xff]   ;;  %v6822_v13 = vld [vmem:[#allocation8 + $0xa8] ss:$28 sps:$4 sm:$0xff]  }
  0xaf   :  { %1768 = vmatprep.mubr.bf16.mxu1 %v6649_v14  ;;  %1878 = vmatpush2.bf16.msra.mxu0 %v6716_v15  ;;  %v6824_v14 = vld [vmem:[#allocation8 + $0xac] ss:$28 sps:$4 sm:$0xff]   ;;  %v6745_v15 = vld [vmem:[#allocation2 + $0xb8] ss:$28 sps:$4 sm:$0xff]  }
  0xb0   :  { %1879 = vmatprep.subr.bf16.mxu0 %v6730_v16  ;;  %v6746_v16 = vld [vmem:[#allocation2 + $0xc0] ss:$28 sps:$4 sm:$0xff]  }
  0xb3   :  { %1880 = vmatpush2.bf16.msra.mxu0 %v6728_v17  ;;  %v6747_v17 = vld [vmem:[#allocation2 + $0xf4] ss:$28 sps:$4 sm:$0xff]  }
  0xb4   :  { %3392 = vmatprep.subr.bf16.mxu0 %v6796_v49  ;;  %v6849_v49 = vld [vmem:[#allocation8 + $0x318] ss:$28 sps:$4 sm:$0xff]  }
  0xb5   :  { %1576 = vmatmul.mubr.bf16.gmra.mxu0 %v6651_v18  ;;  %v6825_v18 = vld [vmem:[#allocation8 + $0x78] ss:$28 sps:$4 sm:$0xff]  }
  0xb6   :  { %1769 = vmatmul.mubr.bf16.gmra.mxu1 %v6652_v19  ;;  %1585 = vmatprep.mubr.bf16.mxu0 %v6659_v20  ;;  %v6827_v19 = vld [vmem:[#allocation8 + $0x7c] ss:$28 sps:$4 sm:$0xff]   ;;  %v6828_v20 = vld [vmem:[#allocation8 + $0x70] ss:$28 sps:$4 sm:$0xff]  }
  0xb7   :  { %1778 = vmatprep.mubr.bf16.mxu1 %v6661_v21  ;;  %v6830_v21 = vld [vmem:[#allocation8 + $0x74] ss:$28 sps:$4 sm:$0xff]  }
  0xbd   :  { %1586 = vmatmul.mubr.bf16.gmra.mxu0 %v6663_v22  ;;  %v6749_v22 = vld [vmem:[#allocation2 + $0xf0] ss:$28 sps:$4 sm:$0xff]  }
  0xbe   :  { %1779 = vmatmul.mubr.bf16.gmra.mxu1 %v6664_v23  ;;  %1595 = vmatprep.mubr.bf16.mxu0 %v6668_v24  ;;  %v6750_v23 = vld [vmem:[#allocation2 + $0xf8] ss:$28 sps:$4 sm:$0xff]   ;;  %v6751_v24 = vld [vmem:[#allocation2 + $0x12c] ss:$28 sps:$4 sm:$0xff]  }
  0xbf   :  { %1788 = vmatprep.mubr.bf16.mxu1 %v6670_v25  ;;  %v6831_v25 = vld [vmem:[#allocation8 + $0x40] ss:$28 sps:$4 sm:$0xff]  }
  0xc5   :  { %1596 = vmatmul.mubr.bf16.gmra.mxu0 %v6672_v26  ;;  %v6833_v26 = vld [vmem:[#allocation8 + $0x44] ss:$28 sps:$4 sm:$0xff]  }
  0xc6   :  { %1789 = vmatmul.mubr.bf16.gmra.mxu1 %v6673_v27  ;;  %1605 = vmatprep.mubr.bf16.mxu0 %v6680_v28  ;;  %v6834_v27 = vld [vmem:[#allocation8 + $0x38] ss:$28 sps:$4 sm:$0xff]  }
  0xc7   :  { %1798 = vmatprep.mubr.bf16.mxu1 %v6682_v29  ;;  %v6836_v28 = vld [vmem:[#allocation8 + $0x3c] ss:$28 sps:$4 sm:$0xff]   ;;  %v6753_v29 = vld [vmem:[#allocation2 + $0x128] ss:$28 sps:$4 sm:$0xff]  }
  0xcd   :  { %1606 = vmatmul.mubr.bf16.gmra.mxu0 %v6684_v30  ;;  %v6754_v30 = vld [vmem:[#allocation2 + $0x130] ss:$28 sps:$4 sm:$0xff]  }
  0xce   :  { %1799 = vmatmul.mubr.bf16.gmra.mxu1 %v6685_v31  ;;  %1615 = vmatprep.mubr.bf16.mxu0 %v6689_v32  ;;  %v6755_v31 = vld [vmem:[#allocation2 + $0x164] ss:$28 sps:$4 sm:$0xff]  }
  0xcf   :  { %1808 = vmatprep.mubr.bf16.mxu1 %v6691_v33  ;;  %v6837_v32 = vld [vmem:[#allocation8 + $0x8] ss:$28 sps:$4 sm:$0xff]  }
  0xd0   :  { %v6839_v33 = vld [vmem:[#allocation8 + $0xc] ss:$28 sps:$4 sm:$0xff]  }
  0xd5   :  { %1616 = vmatmul.mubr.bf16.gmra.mxu0 %v6693_v34  ;;  %v6840_v34 = vld [vmem:[#allocation8] ss:$28 sps:$4 sm:$0xff]  }
  0xd6   :  { %1809 = vmatmul.mubr.bf16.gmra.mxu1 %v6694_v35  ;;  %1625 = vmatprep.mubr.bf16.mxu0 %v6701_v36  ;;  %v6842_v35 = vld [vmem:[#allocation8 + $0x4] ss:$28 sps:$4 sm:$0xff]  }
  0xd7   :  { %1818 = vmatprep.mubr.bf16.mxu1 %v6703_v37  ;;  %v6757_v36 = vld [vmem:[#allocation2 + $0x160] ss:$28 sps:$4 sm:$0xff]   ;;  %v6758_v37 = vld [vmem:[#allocation2 + $0x168] ss:$28 sps:$4 sm:$0xff]  }
  0xdd   :  { %1626 = vmatmul.mubr.bf16.gmra.mxu0 %v6705_v38  ;;  %v6759_v38 = vld [vmem:[#allocation2 + $0x19c] ss:$28 sps:$4 sm:$0xff]  }
  0xde   :  { %1819 = vmatmul.mubr.bf16.gmra.mxu1 %v6706_v39  ;;  %1635 = vmatprep.mubr.bf16.mxu0 %v6710_v40  ;;  %v317_v39 = vlaneseq  ;;  %v6843_v40 = vld [vmem:[#allocation8 + $0x350] ss:$28 sps:$4 sm:$0xff]  }
  0xdf   :  { %1828 = vmatprep.mubr.bf16.mxu1 %v6712_v41  ;;  %v6845_v41 = vld [vmem:[#allocation8 + $0x354] ss:$28 sps:$4 sm:$0xff]  }
  0xe5   :  { %1636 = vmatmul.mubr.bf16.gmra.mxu0 %v6714_v42  ;;  %v6846_v42 = vld [vmem:[#allocation8 + $0x348] ss:$28 sps:$4 sm:$0xff]  }
  0xe6   :  { %1829 = vmatmul.mubr.bf16.gmra.mxu1 %v6715_v43  ;;  %1645 = vmatprep.mubr.bf16.mxu0 %v6722_v44  ;;  %v6848_v43 = vld [vmem:[#allocation8 + $0x34c] ss:$28 sps:$4 sm:$0xff]   ;;  %v6761_v44 = vld [vmem:[#allocation2 + $0x198] ss:$28 sps:$4 sm:$0xff]  }
  0xe7   :  { %1838 = vmatprep.mubr.bf16.mxu1 %v6724_v45  ;;  %v6762_v45 = vld [vmem:[#allocation2 + $0x1a0] ss:$28 sps:$4 sm:$0xff]  }
  0xed   :  { %1646 = vmatmul.mubr.bf16.gmra.mxu0 %v6726_v47  ;;  %v8278_v47 = vshrl.u32 %v317_v39, 7 }
  0xee   :  { %1839 = vmatmul.mubr.bf16.gmra.mxu1 %v6727_v48  ;;  %1881 = vmatprep.mubr.bf16.mxu0 %v6733_v50  ;;  %v6851_v50 = vld [vmem:[#allocation8 + $0x31c] ss:$28 sps:$4 sm:$0xff]  }
  0xef   :  { %2074 = vmatprep.mubr.bf16.mxu1 %v8224_v51  ;;  %9729 = vst [vmem:[#allocation15_spill] sm:$0xff] %v8278_v47  ;;  %v9726_v48 = vsub.s32 0, %v8278_v47 }
  0xf5   :  { %1882 = vmatmul.mubr.bf16.vlgmr.msra.gmra.mxu0 %v6731_v52  ;;  %v315_v52 = vld [vmem:[#allocation7] sm:$0x3] }
  0xf6   :  { %2075 = vmatmul.mubr.bf16.vlgmr.msra.gmra.mxu1 %v6734_v53  ;;  %1891 = vmatprep.mubr.bf16.mxu0 %v6735_v54  ;;  %v9725_v53 = vsub.s32 1, %v8278_v47  ;;  %v6852_v54 = vld [vmem:[#allocation8 + $0x310] ss:$28 sps:$4 sm:$0xff]  }
  0xf7   :  { %2084 = vmatprep.mubr.bf16.mxu1 %v8224_v51  ;;  %3586 = vmatpush1.bf16.msra.mxu1 %v6787_v55  ;;  %v6854_v55 = vld [vmem:[#allocation8 + $0x314] ss:$28 sps:$4 sm:$0xff]  }
  0xf8   :  { %3393 = vmatpush1.bf16.msra.mxu0 %v6794_v56  ;;  %3587 = vmatprep.subr.bf16.mxu1 %v6799_v57  ;;  %v6765_v56 = vld [vmem:[#allocation2 + $0x1d0] ss:$28 sps:$4 sm:$0xff]   ;;  %v6766_v57 = vld [vmem:[#allocation2 + $0x1d8] ss:$28 sps:$4 sm:$0xff]  }
  0xf9   :  { %3394 = vmatprep.subr.bf16.mxu0 %v6806_v58  ;;  %v8285_v58 = vrot.slane %v315_v52, %v9726_v48 }
  0xfb   :  { %3588 = vmatpush1.bf16.msra.mxu1 %v6797_v59  ;;  %v6767_v59 = vld [vmem:[#allocation2 + $0x20c] ss:$28 sps:$4 sm:$0xff]  }
  0xfc   :  { %3395 = vmatpush1.bf16.msra.mxu0 %v6804_v60  ;;  %3589 = vmatprep.subr.bf16.mxu1 %v6809_v0  ;;  %v8289_v60 = vrot.slane %v315_v52, %v9725_v53  ;;  %v6855_v0 = vld [vmem:[#allocation8 + $0x2e0] ss:$28 sps:$4 sm:$0xff]  }
  0xfd   :  { %3396 = vmatprep.subr.bf16.mxu0 %v6812_v1  ;;  %1892 = vmatmul.mubr.bf16.gmra.mxu0 %v6737_v61  ;;  %v6857_v1 = vld [vmem:[#allocation8 + $0x2e4] ss:$28 sps:$4 sm:$0xff]  }
  0xfe   :  { %2085 = vmatmul.mubr.bf16.gmra.mxu1 %v6738_v62  ;;  %1901 = vmatprep.mubr.bf16.mxu0 %v6739_v63 }
  0xff   :  { %2094 = vmatprep.mubr.bf16.mxu1 %v8224_v51  ;;  %3590 = vmatpush1.bf16.msra.mxu1 %v6807_v2 }
 0x100   :  { %3397 = vmatpush1.bf16.msra.mxu0 %v6810_v3  ;;  %3591 = vmatprep.subr.bf16.mxu1 %v6815_v4 }
 0x101   :  { %3398 = vmatprep.subr.bf16.mxu0 %v6818_v7 }
 0x103   :  { %3592 = vmatpush1.bf16.msra.mxu1 %v6813_v5 }
 0x104   :  { %3399 = vmatpush1.bf16.msra.mxu0 %v6816_v6  ;;  %3593 = vmatprep.subr.bf16.mxu1 %v6821_v12  ;;  %v6771_v12 = vld [vmem:[#allocation2 + $0x244] ss:$28 sps:$4 sm:$0xff]  }
 0x105   :  { %1902 = vmatmul.mubr.bf16.gmra.mxu0 %v6741_v8  ;;  %3400 = vmatprep.subr.bf16.mxu0 %v6824_v14  ;;  %v6769_v8 = vld [vmem:[#allocation2 + $0x208] ss:$28 sps:$4 sm:$0xff]  }
 0x106   :  { %2095 = vmatmul.mubr.bf16.gmra.mxu1 %v6742_v9  ;;  %1911 = vmatprep.mubr.bf16.mxu0 %v6743_v10  ;;  %v6770_v9 = vld [vmem:[#allocation2 + $0x210] ss:$28 sps:$4 sm:$0xff]  }
 0x107   :  { %2104 = vmatprep.mubr.bf16.mxu1 %v8224_v51  ;;  %3594 = vmatpush1.bf16.msra.mxu1 %v6819_v11 }
 0x108   :  { %3401 = vmatpush1.bf16.msra.mxu0 %v6822_v13  ;;  %3595 = vmatprep.subr.bf16.mxu1 %v6827_v19 }
 0x109   :  { %3402 = vmatprep.subr.bf16.mxu0 %v6830_v21 }
 0x10b   :  { %3596 = vmatpush1.bf16.msra.mxu1 %v6825_v18 }
 0x10c   :  { %3403 = vmatpush1.bf16.msra.mxu0 %v6828_v20  ;;  %3597 = vmatprep.subr.bf16.mxu1 %v6833_v26 }
 0x10d   :  { %1912 = vmatmul.mubr.bf16.gmra.mxu0 %v6745_v15  ;;  %3404 = vmatprep.subr.bf16.mxu0 %v6836_v28  ;;  %v6774_v28 = vld [vmem:[#allocation2 + $0x248] ss:$28 sps:$4 sm:$0xff]  }
 0x10e   :  { %2105 = vmatmul.mubr.bf16.gmra.mxu1 %v6746_v16  ;;  %1921 = vmatprep.mubr.bf16.mxu0 %v6747_v17 }
 0x10f   :  { %2114 = vmatprep.mubr.bf16.mxu1 %v8224_v51  ;;  %3598 = vmatpush1.bf16.msra.mxu1 %v6831_v25 }
 0x110   :  { %3405 = vmatpush1.bf16.msra.mxu0 %v6834_v27  ;;  %3599 = vmatprep.subr.bf16.mxu1 %v6839_v33  ;;  %v6773_v27 = vld [vmem:[#allocation2 + $0x240] ss:$28 sps:$4 sm:$0xff]  }
 0x111   :  { %3406 = vmatprep.subr.bf16.mxu0 %v6842_v35 }
 0x113   :  { %3600 = vmatpush1.bf16.msra.mxu1 %v6837_v32 }
 0x114   :  { %3407 = vmatpush1.bf16.msra.mxu0 %v6840_v34  ;;  %3601 = vmatprep.subr.bf16.mxu1 %v6845_v41 }
 0x115   :  { %1922 = vmatmul.mubr.bf16.gmra.mxu0 %v6749_v22  ;;  %3408 = vmatprep.subr.bf16.mxu0 %v6848_v43 }
 0x116   :  { %2115 = vmatmul.mubr.bf16.gmra.mxu1 %v6750_v23  ;;  %1931 = vmatprep.mubr.bf16.mxu0 %v6751_v24 }
 0x117   :  { %2124 = vmatprep.mubr.bf16.mxu1 %v8224_v51  ;;  %3602 = vmatpush2.bf16.msra.mxu1 %v6843_v40 }
 0x118   :  { %3409 = vmatpush2.bf16.msra.mxu0 %v6846_v42  ;;  %3603 = vmatprep.subr.bf16.mxu1 %v6851_v50  ;;  %v6860_v50 = vld [vmem:[#allocation8 + $0x2dc] ss:$28 sps:$4 sm:$0xff]  }
 0x119   :  { %3410 = vmatprep.subr.bf16.mxu0 %v6854_v55  ;;  %v6781_v55 = vld [vmem:[#allocation2 + $0x2b4] ss:$28 sps:$4 sm:$0xff]  }
 0x11b   :  { %3604 = vmatpush2.bf16.msra.mxu1 %v6849_v49  ;;  %v6778_v49 = vld [vmem:[#allocation2 + $0x280] ss:$28 sps:$4 sm:$0xff]  }
 0x11c   :  { %3411 = vmatpush2.bf16.msra.mxu0 %v6852_v54  ;;  %3605 = vmatprep.subr.bf16.mxu1 %v6857_v1  ;;  %v6863_v1 = vld [vmem:[#allocation8 + $0x2ac] ss:$28 sps:$4 sm:$0xff]  }
 0x11d   :  { %1932 = vmatmul.mubr.bf16.gmra.mxu0 %v6753_v29  ;;  %3412 = vmatprep.subr.bf16.mxu0 %v6860_v50 }
 0x11e   :  { %2125 = vmatmul.mubr.bf16.gmra.mxu1 %v6754_v30  ;;  %1941 = vmatprep.mubr.bf16.mxu0 %v6755_v31  ;;  %v6775_v31 = vld [vmem:[#allocation2 + $0x27c] ss:$28 sps:$4 sm:$0xff]  }
 0x11f   :  { %2134 = vmatprep.mubr.bf16.mxu1 %v8224_v51  ;;  %3606 = vmatpush2.bf16.msra.mxu1 %v6855_v0 }
 0x120   :  { %3607 = vmatprep.subr.bf16.mxu1 %v6863_v1  ;;  %v6879_v1 = vld [vmem:[#allocation8 + $0x200] ss:$28 sps:$4 sm:$0xff]  }
 0x125   :  { %1942 = vmatmul.mubr.bf16.gmra.mxu0 %v6757_v36 }
 0x126   :  { %2135 = vmatmul.mubr.bf16.gmra.mxu1 %v6758_v37  ;;  %1951 = vmatprep.mubr.bf16.mxu0 %v6759_v38 }
 0x127   :  { %2144 = vmatprep.mubr.bf16.mxu1 %v8224_v51 }
 0x12d   :  { %1952 = vmatmul.mubr.bf16.gmra.mxu0 %v6761_v44 }
 0x12e   :  { %2145 = vmatmul.mubr.bf16.gmra.mxu1 %v6762_v45  ;;  %1961 = vmatprep.mubr.bf16.mxu0 %v6763_v46  ;;  %v6777_v46 = vld [vmem:[#allocation2 + $0x278] ss:$28 sps:$4 sm:$0xff]  }
 0x12f   :  { %2154 = vmatprep.mubr.bf16.mxu1 %v8224_v51 }
 0x135   :  { %v1497_v61 = vpop.f32.mrf.mxu0  ;;  %1962 = vmatmul.mubr.bf16.gmra.mxu0 %v6765_v56  ;;  %v6858_v56 = vld [vmem:[#allocation8 + $0x2d8] ss:$28 sps:$4 sm:$0xff]  }
 0x136   :  { %v1690_v62 = vpop.f32.mrf.mxu1  ;;  %2155 = vmatmul.mubr.bf16.gmra.mxu1 %v6766_v57  ;;  %v1498_v63 = vadd.f32 %v1497_v61, %v8285_v58  ;;  %1971 = vmatprep.mubr.bf16.mxu0 %v6767_v59 }
 0x137   :  { %2164 = vmatprep.mubr.bf16.mxu1 %v8224_v51  ;;  %v1499_v2 = vpop.f32.mrf.mxu0  ;;  %3413 = vmatpush2.bf16.msra.mxu0 %v6858_v56 }
 0x138   :  { %v1692_v3 = vpop.f32.mrf.mxu1  ;;  %v8293_v4 = vadd.f32 %v1690_v62, %v1498_v63  ;;  %v1500_v5 = vadd.f32 %v1499_v2, %v8289_v60  ;;  %v6866_v2 = vld [vmem:[#allocation8 + $0x2a4] ss:$28 sps:$4 sm:$0xff]  }
 0x139   :  { %v1501_v6 = vpop.f32.mrf.mxu0  ;;  %3414 = vmatprep.subr.bf16.mxu0 %v6866_v2  ;;  %v6884_v2 = vld [vmem:[#allocation8 + $0x1fc] ss:$28 sps:$4 sm:$0xff]  }
 0x13a   :  { %v1694_v7 = vpop.f32.mrf.mxu1  ;;  %v8296_v10 = vadd.f32 %v1692_v3, %v1500_v5  ;;  %v1502_v11 = vadd.f32 %v1501_v6, %v8285_v58  ;;  %v6861_v6 = vld [vmem:[#allocation8 + $0x2a8] ss:$28 sps:$4 sm:$0xff]  }
 0x13b   :  { %v1503_v13 = vpop.f32.mrf.mxu0  ;;  %3608 = vmatpush2.bf16.msra.mxu1 %v6861_v6  ;;  %v6882_v6 = vld [vmem:[#allocation8 + $0x1f8] ss:$28 sps:$4 sm:$0xff]  }
 0x13c   :  { %v1696_v14 = vpop.f32.mrf.mxu1  ;;  %v8299_v15 = vadd.f32 %v1694_v7, %v1502_v11  ;;  %v1504_v16 = vadd.f32 %v1503_v13, %v8289_v60  ;;  %v6864_v7 = vld [vmem:[#allocation8 + $0x2a0] ss:$28 sps:$4 sm:$0xff]  }
 0x13d   :  { %v1507_v17 = vpop.f32.mrf.mxu0  ;;  %1972 = vmatmul.mubr.bf16.gmra.mxu0 %v6769_v8 }
 0x13e   :  { %v1700_v18 = vpop.f32.mrf.mxu1  ;;  %2165 = vmatmul.mubr.bf16.gmra.mxu1 %v6770_v9  ;;  %v8302_v19 = vadd.f32 %v1696_v14, %v1504_v16  ;;  %v1508_v20 = vadd.f32 %v1507_v17, %v8285_v58  ;;  %1981 = vmatprep.mubr.bf16.mxu0 %v6771_v12  ;;  %v6779_v16 = vld [vmem:[#allocation2 + $0x2b0] ss:$28 sps:$4 sm:$0xff]   ;;  %v6782_v17 = vld [vmem:[#allocation2 + $0x2b8] ss:$28 sps:$4 sm:$0xff]  }
 0x13f   :  { %2174 = vmatprep.mubr.bf16.mxu1 %v8224_v51  ;;  %v1509_v21 = vpop.f32.mrf.mxu0  ;;  %3415 = vmatpush2.bf16.msra.mxu0 %v6864_v7 }
 0x140   :  { %v1702_v22 = vpop.f32.mrf.mxu1  ;;  %v8306_v23 = vadd.f32 %v1700_v18, %v1508_v20  ;;  %v1510_v24 = vadd.f32 %v1509_v21, %v8289_v60  ;;  %v6869_v18 = vld [vmem:[#allocation8 + $0x274] ss:$28 sps:$4 sm:$0xff]  }
 0x141   :  { %v1511_v25 = vpop.f32.mrf.mxu0  ;;  %3609 = vmatprep.subr.bf16.mxu1 %v6869_v18 }
 0x142   :  { %v1704_v26 = vpop.f32.mrf.mxu1  ;;  %v8309_v29 = vadd.f32 %v1702_v22, %v1510_v24  ;;  %v1512_v30 = vadd.f32 %v1511_v25, %v8285_v58  ;;  %v6785_v22 = vld [vmem:[#allocation2 + $0x2ec] ss:$28 sps:$4 sm:$0xff]  }
 0x143   :  { %v1513_v32 = vpop.f32.mrf.mxu0  ;;  %v6867_v24 = vld [vmem:[#allocation8 + $0x270] ss:$28 sps:$4 sm:$0xff]  }
 0x144   :  { %v1706_v33 = vpop.f32.mrf.mxu1  ;;  %v8312_v34 = vadd.f32 %v1704_v26, %v1512_v30  ;;  %v1514_v35 = vadd.f32 %v1513_v32, %v8289_v60  ;;  %v6872_v25 = vld [vmem:[#allocation8 + $0x26c] ss:$28 sps:$4 sm:$0xff]   ;;  %3610 = vmatpush2.bf16.msra.mxu1 %v6867_v24 }
 0x145   :  { %v1517_v36 = vpop.f32.mrf.mxu0  ;;  %1982 = vmatmul.mubr.bf16.gmra.mxu0 %v6773_v27  ;;  %3416 = vmatprep.subr.bf16.mxu0 %v6872_v25 }
 0x146   :  { %v1710_v37 = vpop.f32.mrf.mxu1  ;;  %2175 = vmatmul.mubr.bf16.gmra.mxu1 %v6774_v28  ;;  %v8315_v38 = vadd.f32 %v1706_v33, %v1514_v35  ;;  %v1518_v39 = vadd.f32 %v1517_v36, %v8285_v58  ;;  %1991 = vmatprep.mubr.bf16.mxu0 %v6775_v31  ;;  %v6870_v28 = vld [vmem:[#allocation8 + $0x268] ss:$28 sps:$4 sm:$0xff]  }
 0x147   :  { %2184 = vmatprep.mubr.bf16.mxu1 %v8224_v51  ;;  %v1519_v40 = vpop.f32.mrf.mxu0  ;;  %3417 = vmatpush2.bf16.msra.mxu0 %v6870_v28 }
 0x148   :  { %v1712_v41 = vpop.f32.mrf.mxu1  ;;  %v8319_v42 = vadd.f32 %v1710_v37, %v1518_v39  ;;  %v1520_v43 = vadd.f32 %v1519_v40, %v8289_v60  ;;  %v6875_v37 = vld [vmem:[#allocation8 + $0x23c] ss:$28 sps:$4 sm:$0xff]   ;;  %v6878_v39 = vld [vmem:[#allocation8 + $0x234] ss:$28 sps:$4 sm:$0xff]  }
 0x149   :  { %v1521_v44 = vpop.f32.mrf.mxu0  ;;  %3611 = vmatprep.subr.bf16.mxu1 %v6875_v37  ;;  %3418 = vmatprep.subr.bf16.mxu0 %v6878_v39 }
 0x14a   :  { %v1714_v45 = vpop.f32.mrf.mxu1  ;;  %v8322_v52 = vadd.f32 %v1712_v41, %v1520_v43  ;;  %v1522_v54 = vadd.f32 %v1521_v44, %v8285_v58  ;;  %v6873_v43 = vld [vmem:[#allocation8 + $0x238] ss:$28 sps:$4 sm:$0xff]   ;;  %v6876_v44 = vld [vmem:[#allocation8 + $0x230] ss:$28 sps:$4 sm:$0xff]  }
 0x14b   :  { %v1523_v57 = vpop.f32.mrf.mxu0  ;;  %3612 = vmatpush2.bf16.msra.mxu1 %v6873_v43  ;;  %3419 = vmatpush2.bf16.msra.mxu0 %v6876_v44 }
 0x14c   :  { %v1716_v59 = vpop.f32.mrf.mxu1  ;;  %v8325_v61 = vadd.f32 %v1714_v45, %v1522_v54  ;;  %v1524_v62 = vadd.f32 %v1523_v57, %v8289_v60  ;;  %v6783_v54 = vld [vmem:[#allocation2 + $0x2e8] ss:$28 sps:$4 sm:$0xff]   ;;  %3420 = vmatprep.subr.bf16.mxu0 %v6884_v2 }
 0x14d   :  { %v1527_v63 = vpop.f32.mrf.mxu0  ;;  %1992 = vmatmul.mubr.bf16.gmra.mxu0 %v6777_v46 }
 0x14e   :  { %v1720_v0 = vpop.f32.mrf.mxu1  ;;  %2185 = vmatmul.mubr.bf16.gmra.mxu1 %v6778_v49  ;;  %v8328_v3 = vadd.f32 %v1716_v59, %v1524_v62  ;;  %v1528_v5 = vadd.f32 %v1527_v63, %v8285_v58  ;;  %2001 = vmatprep.mubr.bf16.mxu0 %v6781_v55  ;;  %v6786_v55 = vld [vmem:[#allocation2 + $0x2f0] ss:$28 sps:$4 sm:$0xff]   ;;  %v6792_v59 = vld [vmem:[#allocation2 + $0x324] ss:$28 sps:$4 sm:$0xff]  }
 0x14f   :  { %2194 = vmatprep.mubr.bf16.mxu1 %v8224_v51  ;;  %v1529_v8 = vpop.f32.mrf.mxu0  ;;  %v6881_v62 = vld [vmem:[#allocation8 + $0x204] ss:$28 sps:$4 sm:$0xff]   ;;  %3421 = vmatpush2.bf16.msra.mxu0 %v6882_v6 }
 0x150   :  { %v1722_v9 = vpop.f32.mrf.mxu1  ;;  %v8332_v11 = vadd.f32 %v1720_v0, %v1528_v5  ;;  %v1530_v12 = vadd.f32 %v1529_v8, %v8289_v60  ;;  %3613 = vmatprep.subr.bf16.mxu1 %v6881_v62 }
 0x151   :  { %v1531_v13 = vpop.f32.mrf.mxu0  ;;  %3614 = vmatpush2.bf16.msra.mxu1 %v6879_v1 }
 0x152   :  { %v1724_v14 = vpop.f32.mrf.mxu1  ;;  %v8335_v20 = vadd.f32 %v1722_v9, %v1530_v12  ;;  %v1532_v21 = vadd.f32 %v1531_v13, %v8285_v58 }
 0x153   :  { %v1533_v26 = vpop.f32.mrf.mxu0 }
 0x154   :  { %v1726_v27 = vpop.f32.mrf.mxu1  ;;  %v8338_v30 = vadd.f32 %v1724_v14, %v1532_v21  ;;  %v1534_v31 = vadd.f32 %v1533_v26, %v8289_v60  ;;  %v6887_v14 = vld [vmem:[#allocation8 + $0x1cc] ss:$28 sps:$4 sm:$0xff]   ;;  %v6790_v26 = vld [vmem:[#allocation2 + $0x320] ss:$28 sps:$4 sm:$0xff]  }
 0x155   :  { %v1537_v32 = vpop.f32.mrf.mxu0  ;;  %2002 = vmatmul.mubr.bf16.gmra.mxu0 %v6779_v16  ;;  %v6890_v16 = vld [vmem:[#allocation8 + $0x1c4] ss:$28 sps:$4 sm:$0xff]   ;;  %3615 = vmatprep.subr.bf16.mxu1 %v6887_v14 }
 0x156   :  { %v1730_v33 = vpop.f32.mrf.mxu1  ;;  %2195 = vmatmul.mubr.bf16.gmra.mxu1 %v6782_v17  ;;  %v8341_v35 = vadd.f32 %v1726_v27, %v1534_v31  ;;  %v1538_v36 = vadd.f32 %v1537_v32, %v8285_v58  ;;  %2011 = vmatprep.mubr.bf16.mxu0 %v6785_v22  ;;  %v6885_v21 = vld [vmem:[#allocation8 + $0x1c8] ss:$28 sps:$4 sm:$0xff]   ;;  %v6888_v22 = vld [vmem:[#allocation8 + $0x1c0] ss:$28 sps:$4 sm:$0xff]  }
 0x157   :  { %2204 = vmatprep.mubr.bf16.mxu1 %v8224_v51  ;;  %v1539_v40 = vpop.f32.mrf.mxu0  ;;  %v6793_v27 = vld [vmem:[#allocation2 + $0x328] ss:$28 sps:$4 sm:$0xff]   ;;  %3422 = vmatprep.subr.bf16.mxu0 %v6890_v16  ;;  %v6802_v32 = vld [vmem:[#allocation2 + $0x35c] ss:$28 sps:$4 sm:$0xff]  }
 0x158   :  { %v1732_v41 = vpop.f32.mrf.mxu1  ;;  %v8345_v45 = vadd.f32 %v1730_v33, %v1538_v36  ;;  %v1540_v46 = vadd.f32 %v1539_v40, %v8289_v60  ;;  %3616 = vmatpush2.bf16.msra.mxu1 %v6885_v21  ;;  %3423 = vmatpush2.bf16.msra.mxu0 %v6888_v22 }
 0x159   :  { %v1541_v49 = vpop.f32.mrf.mxu0 }
 0x15a   :  { %v1734_v50 = vpop.f32.mrf.mxu1  ;;  %v8348_v56 = vadd.f32 %v1732_v41, %v1540_v46  ;;  %v1542_v57 = vadd.f32 %v1541_v49, %v8285_v58 }
 0x15b   :  { %v8351_v63 = vpop.f32.mrf.mxu0 }
 0x15c   :  { %v8353_v0 = vpop.f32.mrf.mxu1  ;;  %v8355_v5 = vadd.f32 %v1734_v50, %v1542_v57  ;;  %v6803_v57 = vld [vmem:[#allocation2 + $0x360] ss:$28 sps:$4 sm:$0xff]  }
 0x15d   :  { %v1547_v7 = vpop.f32.mrf.mxu0  ;;  %2012 = vmatmul.mubr.bf16.gmra.mxu0 %v6783_v54 }
 0x15e   :  { %v1740_v8 = vpop.f32.mrf.mxu1  ;;  %2205 = vmatmul.mubr.bf16.gmra.mxu1 %v6786_v55  ;;  %v1548_v9 = vadd.f32 %v1547_v7, %v8285_v58  ;;  %2021 = vmatprep.mubr.bf16.mxu0 %v6792_v59  ;;  %v6800_v55 = vld [vmem:[#allocation2 + $0x358] ss:$28 sps:$4 sm:$0xff]  }
 0x15f   :  { %2214 = vmatprep.mubr.bf16.mxu1 %v8224_v51  ;;  %v1549_v12 = vpop.f32.mrf.mxu0 }
 0x160   :  { %v1742_v13 = vpop.f32.mrf.mxu1  ;;  %v8359_v17 = vadd.f32 %v1740_v8, %v1548_v9  ;;  %v1550_v18 = vadd.f32 %v1549_v12, %v8289_v60 }
 0x161   :  { %v1551_v24 = vpop.f32.mrf.mxu0 }
 0x162   :  { %v1744_v25 = vpop.f32.mrf.mxu1  ;;  %v8362_v28 = vadd.f32 %v1742_v13, %v1550_v18  ;;  %v1552_v31 = vadd.f32 %v1551_v24, %v8285_v58 }
 0x163   :  { %v8365_v33 = vpop.f32.mrf.mxu0 }
 0x164   :  { %v8367_v36 = vpop.f32.mrf.mxu1  ;;  %v8369_v37 = vadd.f32 %v1744_v25, %v1552_v31 }
 0x165   :  { %v1557_v39 = vpop.f32.mrf.mxu0  ;;  %2022 = vmatmul.mubr.bf16.gmra.mxu0 %v6790_v26 }
 0x166   :  { %v1750_v40 = vpop.f32.mrf.mxu1  ;;  %2215 = vmatmul.mubr.bf16.gmra.mxu1 %v6793_v27  ;;  %v1558_v41 = vadd.f32 %v1557_v39, %v8285_v58  ;;  %2031 = vmatprep.mubr.bf16.mxu0 %v6802_v32 }
 0x167   :  { %2224 = vmatprep.mubr.bf16.mxu1 %v8224_v51  ;;  %v1559_v43 = vpop.f32.mrf.mxu0 }
 0x168   :  { %v1752_v44 = vpop.f32.mrf.mxu1  ;;  %v8373_v46 = vadd.f32 %v1750_v40, %v1558_v41  ;;  %v1560_v49 = vadd.f32 %v1559_v43, %v8289_v60 }
 0x169   :  { %v1561_v50 = vpop.f32.mrf.mxu0 }
 0x16a   :  { %v1754_v54 = vpop.f32.mrf.mxu1  ;;  %v8376_v59 = vadd.f32 %v1752_v44, %v1560_v49  ;;  %v1562_v62 = vadd.f32 %v1561_v50, %v8285_v58 }
 0x16b   :  { %v8379_v1 = vpop.f32.mrf.mxu0 }
 0x16c   :  { %v8381_v2 = vpop.f32.mrf.mxu1  ;;  %v8383_v6 = vadd.f32 %v1754_v54, %v1562_v62 }
 0x16d   :  { %v1567_v51 = vpop.f32.mrf.mxu0  ;;  %2032 = vmatmul.mubr.bf16.gmra.mxu0 %v6800_v55 }
 0x16e   :  { %v1760_v7 = vpop.f32.mrf.mxu1  ;;  %2225 = vmatmul.mubr.bf16.gmra.mxu1 %v6803_v57  ;;  %v1568_v8 = vadd.f32 %v1567_v51, %v8285_v58  ;;  %v6891_v51 = vld [vmem:[#allocation8 + $0x360] ss:$28 sps:$4 sm:$0xff]  }
 0x16f   :  { %v1569_v9 = vpop.f32.mrf.mxu0  ;;  %6343 = vmatprep.subr.bf16.mxu1 %v6891_v51 }
 0x170   :  { %v1762_v12 = vpop.f32.mrf.mxu1  ;;  %v8386_v13 = vadd.f32 %v1760_v7, %v1568_v8  ;;  %v1570_v14 = vadd.f32 %v1569_v9, %v8289_v60  ;;  %v6895_v9 = vld [vmem:[#allocation8 + $0x19c] ss:$28 sps:$4 sm:$0xff]  }
 0x171   :  { %v1571_v16 = vpop.f32.mrf.mxu0  ;;  %3778 = vmatprep.subr.bf16.mxu0 %v6895_v9 }
 0x172   :  { %v1764_v18 = vpop.f32.mrf.mxu1  ;;  %v8389_v21 = vadd.f32 %v1762_v12, %v1570_v14  ;;  %v1572_v22 = vadd.f32 %v1571_v16, %v8285_v58 }
 0x173   :  { %v8392_v24 = vpop.f32.mrf.mxu0 }
 0x174   :  { %v8394_v25 = vpop.f32.mrf.mxu1  ;;  %v8396_v26 = vadd.f32 %v1764_v18, %v1572_v22 }
 0x175   :  { %v1577_v27 = vpop.f32.mrf.mxu0 }
 0x176   :  { %v1770_v31 = vpop.f32.mrf.mxu1  ;;  %v1578_v32 = vadd.f32 %v1577_v27, %v8285_v58 }
 0x177   :  { %v1579_v39 = vpop.f32.mrf.mxu0 }
 0x178   :  { %v1772_v40 = vpop.f32.mrf.mxu1  ;;  %v8399_v41 = vadd.f32 %v1770_v31, %v1578_v32  ;;  %v1580_v43 = vadd.f32 %v1579_v39, %v8289_v60 }
 0x179   :  { %v1581_v44 = vpop.f32.mrf.mxu0 }
 0x17a   :  { %v1774_v49 = vpop.f32.mrf.mxu1  ;;  %v8402_v50 = vadd.f32 %v1772_v40, %v1580_v43  ;;  %v1582_v54 = vadd.f32 %v1581_v44, %v8285_v58 }
 0x17b   :  { %v8405_v55 = vpop.f32.mrf.mxu0 }
 0x17c   :  { %v8407_v57 = vpop.f32.mrf.mxu1  ;;  %v8409_v62 = vadd.f32 %v1774_v49, %v1582_v54 }
 0x17d   :  { %v1587_v7 = vpop.f32.mrf.mxu0 }
 0x17e   :  { %v1780_v8 = vpop.f32.mrf.mxu1  ;;  %v1588_v12 = vadd.f32 %v1587_v7, %v8285_v58 }
 0x17f   :  { %v1589_v14 = vpop.f32.mrf.mxu0 }
 0x180   :  { %v1782_v16 = vpop.f32.mrf.mxu1  ;;  %v8412_v18 = vadd.f32 %v1780_v8, %v1588_v12  ;;  %v1590_v22 = vadd.f32 %v1589_v14, %v8289_v60 }
 0x181   :  { %v1591_v27 = vpop.f32.mrf.mxu0 }
 0x182   :  { %v1784_v31 = vpop.f32.mrf.mxu1  ;;  %v8415_v32 = vadd.f32 %v1782_v16, %v1590_v22  ;;  %v1592_v39 = vadd.f32 %v1591_v27, %v8285_v58 }
 0x183   :  { %v8418_v40 = vpop.f32.mrf.mxu0 }
 0x184   :  { %v8420_v43 = vpop.f32.mrf.mxu1  ;;  %v8422_v44 = vadd.f32 %v1784_v31, %v1592_v39 }
 0x185   :  { %v1597_v49 = vpop.f32.mrf.mxu0 }
 0x186   :  { %9730 = vst [vmem:[#allocation16_spill] sm:$0xff] %v8422_v44  ;;  %v1790_v54 = vpop.f32.mrf.mxu1  ;;  %v1598_v51 = vadd.f32 %v1597_v49, %v8285_v58 }
 0x187   :  { %v1599_v7 = vpop.f32.mrf.mxu0 }
 0x188   :  { %v1792_v8 = vpop.f32.mrf.mxu1  ;;  %v8425_v9 = vadd.f32 %v1790_v54, %v1598_v51  ;;  %v1600_v12 = vadd.f32 %v1599_v7, %v8289_v60 }
 0x189   :  { %v1601_v14 = vpop.f32.mrf.mxu0 }
 0x18a   :  { %9731 = vst [vmem:[#allocation17_spill] sm:$0xff] %v8425_v9  ;;  %v1794_v16 = vpop.f32.mrf.mxu1  ;;  %v8428_v22 = vadd.f32 %v1792_v8, %v1600_v12  ;;  %v1602_v27 = vadd.f32 %v1601_v14, %v8285_v58 }
 0x18b   :  { %v8431_v53 = vpop.f32.mrf.mxu0 }
 0x18c   :  { %9732 = vst [vmem:[#allocation18_spill] sm:$0xff] %v8428_v22  ;;  %9733 = vst [vmem:[#allocation19_spill] sm:$0xff] %v8431_v53  ;;  %v8433_v31 = vpop.f32.mrf.mxu1  ;;  %v8435_v39 = vadd.f32 %v1794_v16, %v1602_v27 }
 0x18d   :  { %9734 = vst [vmem:[#allocation20_spill] sm:$0xff] %v8433_v31  ;;  %v1607_v48 = vpop.f32.mrf.mxu0 }
 0x18e   :  { %9735 = vst [vmem:[#allocation21_spill] sm:$0xff] %v8435_v39  ;;  %v1800_v49 = vpop.f32.mrf.mxu1  ;;  %v1608_v47 = vadd.f32 %v1607_v48, %v8285_v58 }
 0x18f   :  { %v1609_v54 = vpop.f32.mrf.mxu0 }
 0x190   :  { %v1802_v51 = vpop.f32.mrf.mxu1  ;;  %v8438_v9 = vadd.f32 %v1800_v49, %v1608_v47  ;;  %v1610_v7 = vadd.f32 %v1609_v54, %v8289_v60 }
 0x191   :  { %v1611_v8 = vpop.f32.mrf.mxu0 }
 0x192   :  { %9736 = vst [vmem:[#allocation22_spill] sm:$0xff] %v8438_v9  ;;  %v1804_v12 = vpop.f32.mrf.mxu1  ;;  %v8441_v22 = vadd.f32 %v1802_v51, %v1610_v7  ;;  %v1612_v14 = vadd.f32 %v1611_v8, %v8285_v58 }
 0x193   :  { %v8444_v53 = vpop.f32.mrf.mxu0 }
 0x194   :  { %9737 = vst [vmem:[#allocation23_spill] sm:$0xff] %v8441_v22  ;;  %9738 = vst [vmem:[#allocation24_spill] sm:$0xff] %v8444_v53  ;;  %v8446_v16 = vpop.f32.mrf.mxu1  ;;  %v8448_v27 = vadd.f32 %v1804_v12, %v1612_v14 }
 0x195   :  { %9739 = vst [vmem:[#allocation25_spill] sm:$0xff] %v8446_v16  ;;  %v1617_v31 = vpop.f32.mrf.mxu0 }
 0x196   :  { %9740 = vst [vmem:[#allocation26_spill] sm:$0xff] %v8448_v27  ;;  %v1810_v48 = vpop.f32.mrf.mxu1  ;;  %v1618_v39 = vadd.f32 %v1617_v31, %v8285_v58 }
 0x197   :  { %v1619_v47 = vpop.f32.mrf.mxu0 }
 0x198   :  { %v1812_v49 = vpop.f32.mrf.mxu1  ;;  %v8451_v9 = vadd.f32 %v1810_v48, %v1618_v39  ;;  %v1620_v54 = vadd.f32 %v1619_v47, %v8289_v60 }
 0x199   :  { %v1621_v51 = vpop.f32.mrf.mxu0 }
 0x19a   :  { %9741 = vst [vmem:[#allocation27_spill] sm:$0xff] %v8451_v9  ;;  %v1814_v7 = vpop.f32.mrf.mxu1  ;;  %v8454_v22 = vadd.f32 %v1812_v49, %v1620_v54  ;;  %v1622_v8 = vadd.f32 %v1621_v51, %v8285_v58 }
 0x19b   :  { %v8457_v53 = vpop.f32.mrf.mxu0 }
 0x19c   :  { %9742 = vst [vmem:[#allocation28_spill] sm:$0xff] %v8454_v22  ;;  %9743 = vst [vmem:[#allocation29_spill] sm:$0xff] %v8457_v53  ;;  %v8459_v12 = vpop.f32.mrf.mxu1  ;;  %v8461_v14 = vadd.f32 %v1814_v7, %v1622_v8 }
 0x19d   :  { %9744 = vst [vmem:[#allocation30_spill] sm:$0xff] %v8459_v12  ;;  %v1627_v27 = vpop.f32.mrf.mxu0 }
 0x19e   :  { %9745 = vst [vmem:[#allocation31_spill] sm:$0xff] %v8461_v14  ;;  %v1820_v31 = vpop.f32.mrf.mxu1  ;;  %v1628_v16 = vadd.f32 %v1627_v27, %v8285_v58 }
 0x19f   :  { %v1629_v39 = vpop.f32.mrf.mxu0 }
 0x1a0   :  { %v1822_v48 = vpop.f32.mrf.mxu1  ;;  %v8464_v9 = vadd.f32 %v1820_v31, %v1628_v16  ;;  %v1630_v47 = vadd.f32 %v1629_v39, %v8289_v60 }
 0x1a1   :  { %v1631_v49 = vpop.f32.mrf.mxu0 }
 0x1a2   :  { %9746 = vst [vmem:[#allocation32_spill] sm:$0xff] %v8464_v9  ;;  %v1824_v54 = vpop.f32.mrf.mxu1  ;;  %v8467_v22 = vadd.f32 %v1822_v48, %v1630_v47  ;;  %v1632_v51 = vadd.f32 %v1631_v49, %v8285_v58 }
 0x1a3   :  { %v8470_v53 = vpop.f32.mrf.mxu0 }
 0x1a4   :  { %9747 = vst [vmem:[#allocation33_spill] sm:$0xff] %v8467_v22  ;;  %9748 = vst [vmem:[#allocation34_spill] sm:$0xff] %v8470_v53  ;;  %v8472_v7 = vpop.f32.mrf.mxu1  ;;  %v8474_v8 = vadd.f32 %v1824_v54, %v1632_v51 }
 0x1a5   :  { %9749 = vst [vmem:[#allocation35_spill] sm:$0xff] %v8472_v7  ;;  %v1637_v14 = vpop.f32.mrf.mxu0 }
 0x1a6   :  { %9750 = vst [vmem:[#allocation36_spill] sm:$0xff] %v8474_v8  ;;  %v1830_v27 = vpop.f32.mrf.mxu1  ;;  %v1638_v12 = vadd.f32 %v1637_v14, %v8285_v58 }
 0x1a7   :  { %v1639_v16 = vpop.f32.mrf.mxu0 }
 0x1a8   :  { %v1832_v31 = vpop.f32.mrf.mxu1  ;;  %v8477_v9 = vadd.f32 %v1830_v27, %v1638_v12  ;;  %v1640_v39 = vadd.f32 %v1639_v16, %v8289_v60 }
 0x1a9   :  { %v1641_v48 = vpop.f32.mrf.mxu0 }
 0x1aa   :  { %9751 = vst [vmem:[#allocation37_spill] sm:$0xff] %v8477_v9  ;;  %v1834_v47 = vpop.f32.mrf.mxu1  ;;  %v8480_v22 = vadd.f32 %v1832_v31, %v1640_v39  ;;  %v1642_v49 = vadd.f32 %v1641_v48, %v8285_v58 }
 0x1ab   :  { %v8483_v53 = vpop.f32.mrf.mxu0 }
 0x1ac   :  { %9752 = vst [vmem:[#allocation38_spill] sm:$0xff] %v8480_v22  ;;  %9753 = vst [vmem:[#allocation39_spill] sm:$0xff] %v8483_v53  ;;  %v8485_v54 = vpop.f32.mrf.mxu1  ;;  %v8487_v51 = vadd.f32 %v1834_v47, %v1642_v49 }
 0x1ad   :  { %9754 = vst [vmem:[#allocation40_spill] sm:$0xff] %v8485_v54  ;;  %v1647_v8 = vpop.f32.mrf.mxu0 }
 0x1ae   :  { %9755 = vst [vmem:[#allocation41_spill] sm:$0xff] %v8487_v51  ;;  %v1840_v14 = vpop.f32.mrf.mxu1  ;;  %v1648_v7 = vadd.f32 %v1647_v8, %v8285_v58 }
 0x1af   :  { %v1649_v12 = vpop.f32.mrf.mxu0 }
 0x1b0   :  { %v1842_v27 = vpop.f32.mrf.mxu1  ;;  %v8490_v9 = vadd.f32 %v1840_v14, %v1648_v7  ;;  %v1650_v16 = vadd.f32 %v1649_v12, %v8289_v60 }
 0x1b1   :  { %v1651_v31 = vpop.f32.mrf.mxu0 }
 0x1b2   :  { %9756 = vst [vmem:[#allocation42_spill] sm:$0xff] %v8490_v9  ;;  %v1844_v39 = vpop.f32.mrf.mxu1  ;;  %v8493_v22 = vadd.f32 %v1842_v27, %v1650_v16  ;;  %v1652_v48 = vadd.f32 %v1651_v31, %v8285_v58 }
 0x1b3   :  { %v8496_v53 = vpop.f32.mrf.mxu0 }
 0x1b4   :  { %9757 = vst [vmem:[#allocation43_spill] sm:$0xff] %v8493_v22  ;;  %9758 = vst [vmem:[#allocation44_spill] sm:$0xff] %v8496_v53  ;;  %v8498_v47 = vpop.f32.mrf.mxu1  ;;  %v8500_v49 = vadd.f32 %v1844_v39, %v1652_v48 }
 0x1b5   :  { %9759 = vst [vmem:[#allocation45_spill] sm:$0xff] %v8498_v47  ;;  %v1883_v54 = vpop.f32.mrf.mxu0 }
 0x1b6   :  { %9760 = vst [vmem:[#allocation46_spill] sm:$0xff] %v8500_v49  ;;  %v2076_v8 = vpop.f32.mrf.mxu1  ;;  %v1884_v51 = vadd.f32 %v1883_v54, %v8293_v4 }
 0x1b7   :  { %v1885_v7 = vpop.f32.mrf.mxu0 }
 0x1b8   :  { %v2078_v14 = vpop.f32.mrf.mxu1  ;;  %v2077_v9 = vadd.f32 %v2076_v8, %v1884_v51  ;;  %v1886_v12 = vadd.f32 %v1885_v7, %v8296_v10 }
 0x1b9   :  { %v1887_v44 = vpop.f32.mrf.mxu0 }
 0x1ba   :  { %v2080_v27 = vpop.f32.mrf.mxu1  ;;  %v5943_v16 = vmul.f32 -1.442695, %v2077_v9  ;;  %v2079_v22 = vadd.f32 %v2078_v14, %v1886_v12  ;;  %v1888_v58 = vadd.f32 %v1887_v44, %v8299_v15 }
 0x1bb   :  { %v1889_v31 = vpop.f32.mrf.mxu0 }
 0x1bc   :  { %v2082_v53 = vpop.f32.mrf.mxu1  ;;  %6955 = vpow2.f32 %v5943_v16  ;;  %v5944_v39 = vmul.f32 -1.442695, %v2079_v22  ;;  %v2081_v48 = vadd.f32 %v2080_v27, %v1888_v58  ;;  %v1890_v49 = vadd.f32 %v1889_v31, %v8302_v19 }
 0x1bd   :  { %v1893_v47 = vpop.f32.mrf.mxu0 }
 0x1be   :  { %v2086_v4 = vpop.f32.mrf.mxu1  ;;  %6957 = vpow2.f32 %v5944_v39  ;;  %v5945_v54 = vmul.f32 -1.442695, %v2081_v48  ;;  %v2083_v51 = vadd.f32 %v2082_v53, %v1890_v49  ;;  %v1894_v10 = vadd.f32 %v1893_v47, %v8306_v23 }
 0x1bf   :  { %v1895_v8 = vpop.f32.mrf.mxu0 }
 0x1c0   :  { %v2088_v7 = vpop.f32.mrf.mxu1  ;;  %6959 = vpow2.f32 %v5945_v54  ;;  %v5946_v9 = vmul.f32 -1.442695, %v2083_v51  ;;  %v2087_v14 = vadd.f32 %v2086_v4, %v1894_v10  ;;  %v1896_v15 = vadd.f32 %v1895_v8, %v8309_v29 }
 0x1c1   :  { %v1897_v44 = vpop.f32.mrf.mxu0 }
 0x1c2   :  { %v2090_v12 = vpop.f32.mrf.mxu1  ;;  %6961 = vpow2.f32 %v5946_v9  ;;  %v5947_v22 = vmul.f32 -1.442695, %v2087_v14  ;;  %v2089_v27 = vadd.f32 %v2088_v7, %v1896_v15  ;;  %v1898_v19 = vadd.f32 %v1897_v44, %v8312_v34 }
 0x1c3   :  { %v1899_v16 = vpop.f32.mrf.mxu0 }
 0x1c4   :  { %v2092_v58 = vpop.f32.mrf.mxu1  ;;  %6963 = vpow2.f32 %v5947_v22  ;;  %v5948_v53 = vmul.f32 -1.442695, %v2089_v27  ;;  %v2091_v49 = vadd.f32 %v2090_v12, %v1898_v19  ;;  %v1900_v23 = vadd.f32 %v1899_v16, %v8315_v38 }
 0x1c5   :  { %v1903_v47 = vpop.f32.mrf.mxu0 }
 0x1c6   :  { %v2096_v31 = vpop.f32.mrf.mxu1  ;;  %6965 = vpow2.f32 %v5948_v53  ;;  %v5949_v39 = vmul.f32 -1.442695, %v2091_v49  ;;  %v2093_v48 = vadd.f32 %v2092_v58, %v1900_v23  ;;  %v1904_v29 = vadd.f32 %v1903_v47, %v8319_v42 }
 0x1c7   :  { %v1905_v4 = vpop.f32.mrf.mxu0 }
 0x1c8   :  { %v2098_v54 = vpop.f32.mrf.mxu1  ;;  %6967 = vpow2.f32 %v5949_v39  ;;  %v5950_v51 = vmul.f32 -1.442695, %v2093_v48  ;;  %v2097_v10 = vadd.f32 %v2096_v31, %v1904_v29  ;;  %v1906_v34 = vadd.f32 %v1905_v4, %v8322_v52 }
 0x1c9   :  { %v6956_v8 = vpop.eup %6955  ;;  %v1907_v7 = vpop.f32.mrf.mxu0 }
 0x1ca   :  { %v2100_v9 = vpop.f32.mrf.mxu1  ;;  %v2427_v14 = vadd.f32 1.0, %v6956_v8  ;;  %6969 = vpow2.f32 %v5950_v51  ;;  %v5951_v38 = vmul.f32 -1.442695, %v2097_v10  ;;  %v2099_v15 = vadd.f32 %v2098_v54, %v1906_v34 }
 0x1cb   :  { %v6958_v44 = vpop.eup %6957  ;;  %v1908_v12 = vadd.f32 %v1907_v7, %v8325_v61  ;;  %v1909_v22 = vpop.f32.mrf.mxu0 }
 0x1cc   :  { %v2102_v27 = vpop.f32.mrf.mxu1  ;;  %6971 = vrcp.f32 %v2427_v14  ;;  %v2428_v42 = vadd.f32 1.0, %v6958_v44  ;;  %v5952_v19 = vmul.f32 -1.442695, %v2099_v15  ;;  %v1910_v16 = vadd.f32 %v1909_v22, %v8328_v3 }
 0x1cd   :  { %v6960_v58 = vpop.eup %6959  ;;  %6973 = vpow2.f32 %v5951_v38  ;;  %v2101_v52 = vadd.f32 %v2100_v9, %v1908_v12  ;;  %v1913_v53 = vpop.f32.mrf.mxu0 }
 0x1ce   :  { %v2106_v49 = vpop.f32.mrf.mxu1  ;;  %6975 = vrcp.f32 %v2428_v42  ;;  %v2429_v23 = vadd.f32 1.0, %v6960_v58  ;;  %v2103_v47 = vadd.f32 %v2102_v27, %v1910_v16  ;;  %v1914_v31 = vadd.f32 %v1913_v53, %v8332_v11 }
 0x1cf   :  { %v6962_v39 = vpop.eup %6961  ;;  %6977 = vpow2.f32 %v5952_v19  ;;  %v5953_v61 = vmul.f32 -1.442695, %v2101_v52  ;;  %v1915_v48 = vpop.f32.mrf.mxu0 }
 0x1d0   :  { %v2108_v29 = vpop.f32.mrf.mxu1  ;;  %6979 = vrcp.f32 %v2429_v23  ;;  %v2430_v4 = vadd.f32 1.0, %v6962_v39  ;;  %v5954_v54 = vmul.f32 -1.442695, %v2103_v47  ;;  %v2107_v51 = vadd.f32 %v2106_v49, %v1914_v31 }
 0x1d1   :  { %v6964_v3 = vpop.eup %6963  ;;  %6981 = vpow2.f32 %v5953_v61  ;;  %v1916_v10 = vadd.f32 %v1915_v48, %v8335_v20  ;;  %v1917_v34 = vpop.f32.mrf.mxu0  ;;  %v1544_v20 = vadd.f32 %v8351_v63, %v8289_v60 }
 0x1d2   :  { %v2110_v8 = vpop.f32.mrf.mxu1  ;;  %6983 = vrcp.f32 %v2430_v4  ;;  %v2431_v7 = vadd.f32 1.0, %v6964_v3  ;;  %v5955_v9 = vmul.f32 -1.442695, %v2107_v51  ;;  %v1918_v11 = vadd.f32 %v1917_v34, %v8338_v30 }
 0x1d3   :  { %v6966_v14 = vpop.eup %6965  ;;  %6985 = vpow2.f32 %v5954_v54  ;;  %v2109_v38 = vadd.f32 %v2108_v29, %v1916_v10  ;;  %v1919_v15 = vpop.f32.mrf.mxu0  ;;  %v1737_v51 = vadd.f32 %v8353_v0, %v1544_v20 }
 0x1d4   :  { %v2112_v44 = vpop.f32.mrf.mxu1  ;;  %6987 = vrcp.f32 %v2431_v7  ;;  %v2432_v12 = vadd.f32 1.0, %v6966_v14  ;;  %v2111_v22 = vadd.f32 %v2110_v8, %v1918_v11  ;;  %v1920_v27 = vadd.f32 %v1919_v15, %v8341_v35 }
 0x1d5   :  { %v6968_v42 = vpop.eup %6967  ;;  %6989 = vpow2.f32 %v5955_v9  ;;  %v5956_v19 = vmul.f32 -1.442695, %v2109_v38  ;;  %v1923_v16 = vpop.f32.mrf.mxu0 }
 0x1d6   :  { %v2116_v58 = vpop.f32.mrf.mxu1  ;;  %6991 = vrcp.f32 %v2432_v12  ;;  %v2433_v30 = vadd.f32 1.0, %v6968_v42  ;;  %v5957_v52 = vmul.f32 -1.442695, %v2111_v22  ;;  %v2113_v53 = vadd.f32 %v2112_v44, %v1920_v27 }
 0x1d7   :  { %v6970_v49 = vpop.eup %6969  ;;  %6993 = vpow2.f32 %v5956_v19  ;;  %v1924_v23 = vadd.f32 %v1923_v16, %v8345_v45  ;;  %v1925_v47 = vpop.f32.mrf.mxu0  ;;  %v1554_v44 = vadd.f32 %v8365_v33, %v8289_v60 }
 0x1d8   :  { %v2118_v31 = vpop.f32.mrf.mxu1  ;;  %6995 = vrcp.f32 %v2433_v30  ;;  %v2434_v35 = vadd.f32 1.0, %v6970_v49  ;;  %v5958_v39 = vmul.f32 -1.442695, %v2113_v53  ;;  %v1926_v61 = vadd.f32 %v1925_v47, %v8348_v56 }
 0x1d9   :  { %v6972_v63 = vpop.eup %6971  ;;  %6997 = vpow2.f32 %v5957_v52  ;;  %v2117_v48 = vadd.f32 %v2116_v58, %v1924_v23  ;;  %v1927_v29 = vpop.f32.mrf.mxu0 }
 0x1da   :  { %v2120_v4 = vpop.f32.mrf.mxu1  ;;  %v6974_v54 = vpop.eup %6973  ;;  %6999 = vrcp.f32 %v2434_v35  ;;  %v2119_v3 = vadd.f32 %v2118_v31, %v1926_v61  ;;  %v1928_v10 = vadd.f32 %v1927_v29, %v8355_v5  ;;  %v1747_v31 = vadd.f32 %v8367_v36, %v1554_v44  ;;  %v6893_v29 = vld [vmem:[#allocation8 + $0x198] ss:$28 sps:$4 sm:$0xff]   ;;  %v6900_v44 = vld [vmem:[#allocation8 + $0x168] ss:$28 sps:$4 sm:$0xff]  }
 0x1db   :  { %v6976_v45 = vpop.eup %6975  ;;  %v2435_v34 = vadd.f32 1.0, %v6974_v54  ;;  %7001 = vpow2.f32 %v5958_v39  ;;  %v5959_v8 = vmul.f32 -1.442695, %v2117_v48  ;;  %v1929_v7 = vpop.f32.mrf.mxu0  ;;  %v6892_v48 = vld [vmem:[#allocation8 + $0x1a0] ss:$28 sps:$4 sm:$0xff]  }
 0x1dc   :  { %v2122_v9 = vpop.f32.mrf.mxu1  ;;  %v6978_v11 = vpop.eup %6977  ;;  %v5960_v56 = vmul.f32 -1.442695, %v2119_v3  ;;  %v2121_v14 = vadd.f32 %v2120_v4, %v1928_v10  ;;  %v1930_v38 = vadd.f32 %v1929_v7, %v1737_v51  ;;  %v6898_v3 = vld [vmem:[#allocation8 + $0x164] ss:$28 sps:$4 sm:$0xff]  }
 0x1dd   :  { %v6980_v15 = vpop.eup %6979  ;;  %7003 = vrcp.f32 %v2435_v34  ;;  %v2436_v0 = vadd.f32 1.0, %v6978_v11  ;;  %v1933_v12 = vpop.f32.mrf.mxu0  ;;  %v6899_v10 = vld [vmem:[#allocation8 + $0x328] ss:$28 sps:$4 sm:$0xff]  }
 0x1de   :  { %v2126_v22 = vpop.f32.mrf.mxu1  ;;  %v6982_v27 = vpop.eup %6981  ;;  %7005 = vpow2.f32 %v5959_v8  ;;  %v5961_v5 = vmul.f32 -1.442695, %v2121_v14  ;;  %v2123_v42 = vadd.f32 %v2122_v9, %v1930_v38  ;;  %v1934_v20 = vadd.f32 %v1933_v12, %v8359_v17 }
 0x1df   :  { %v6984_v19 = vpop.eup %6983  ;;  %7007 = vrcp.f32 %v2436_v0  ;;  %v2437_v16 = vadd.f32 1.0, %v6982_v27  ;;  %v1935_v58 = vpop.f32.mrf.mxu0  ;;  %v8527_v52 = vpack.c.bf16 %v6980_v15, %v6972_v63  ;;  %v6896_v15 = vld [vmem:[#allocation8 + $0x160] ss:$28 sps:$4 sm:$0xff]  }
 0x1e0   :  { %v2128_v30 = vpop.f32.mrf.mxu1  ;;  %v6986_v53 = vpop.eup %6985  ;;  %7009 = vpow2.f32 %v5960_v56  ;;  %v5962_v33 = vmul.f32 -1.442695, %v2123_v42  ;;  %v2127_v49 = vadd.f32 %v2126_v22, %v1934_v20  ;;  %v1936_v23 = vadd.f32 %v1935_v58, %v8362_v28  ;;  %v6907_v42 = vld [vmem:[#allocation8 + $0x2f0] ss:$28 sps:$4 sm:$0xff]  }
 0x1e1   :  { %v6988_v47 = vpop.eup %6987  ;;  %7011 = vrcp.f32 %v2437_v16  ;;  %v2438_v35 = vadd.f32 1.0, %v6986_v53  ;;  %v1937_v39 = vpop.f32.mrf.mxu0  ;;  %v8531_v61 = vpack.c.bf16 %v6984_v19, %v6976_v45  ;;  %v1564_v19 = vadd.f32 %v8379_v1, %v8289_v60  ;;  %v6901_v1 = vld [vmem:[#allocation8 + $0x128] ss:$28 sps:$4 sm:$0xff]  }
 0x1e2   :  { %v2130_v17 = vpop.f32.mrf.mxu1  ;;  %v6990_v4 = vpop.eup %6989  ;;  %7013 = vpow2.f32 %v5961_v5  ;;  %v5963_v63 = vmul.f32 -1.442695, %v2127_v49  ;;  %v2129_v54 = vadd.f32 %v2128_v30, %v1936_v23  ;;  %v1938_v51 = vadd.f32 %v1937_v39, %v8369_v37  ;;  %v6903_v5 = vld [vmem:[#allocation8 + $0x12c] ss:$28 sps:$4 sm:$0xff]  }
 0x1e3   :  { %v6992_v28 = vpop.eup %6991  ;;  %7015 = vrcp.f32 %v2438_v35  ;;  %v2439_v34 = vadd.f32 1.0, %v6990_v4  ;;  %3424 = vmatprep.mubr.bf16.mxu0 %v8531_v61  ;;  %3617 = vmatprep.mubr.bf16.mxu1 %v8531_v61  ;;  %v1939_v36 = vpop.f32.mrf.mxu0 }
 0x1e4   :  { %v2132_v45 = vpop.f32.mrf.mxu1  ;;  %v6994_v8 = vpop.eup %6993  ;;  %7017 = vpow2.f32 %v5962_v33  ;;  %v5964_v7 = vmul.f32 -1.442695, %v2129_v54  ;;  %v2131_v9 = vadd.f32 %v2130_v17, %v1938_v51  ;;  %v1940_v11 = vadd.f32 %v1939_v36, %v1747_v31  ;;  %3425 = vmatmul.mubr.bf16.vlgmr.msra.gmra.mxu0 %v8527_v52  ;;  %3618 = vmatmul.mubr.bf16.vlgmr.msra.gmra.mxu1 %v8527_v52  ;;  %v6906_v54 = vld [vmem:[#allocation8 + $0xf4] ss:$28 sps:$4 sm:$0xff]  }
 0x1e5   :  { %v6996_v37 = vpop.eup %6995  ;;  %7019 = vrcp.f32 %v2439_v34  ;;  %v2440_v56 = vadd.f32 1.0, %v6994_v8  ;;  %6344 = vmatpush3.bf16.msra.mxu1 %v6892_v48  ;;  %v1943_v14 = vpop.f32.mrf.mxu0  ;;  %3779 = vmatpush1.bf16.msra.mxu0 %v6893_v29  ;;  %v6908_v48 = vld [vmem:[#allocation8 + $0x130] ss:$28 sps:$4 sm:$0xff]  }
 0x1e6   :  { %v2136_v38 = vpop.f32.mrf.mxu1  ;;  %v6998_v0 = vpop.eup %6997  ;;  %7021 = vpow2.f32 %v5963_v63  ;;  %v5965_v12 = vmul.f32 -1.442695, %v2131_v9  ;;  %v2133_v22 = vadd.f32 %v2132_v45, %v1940_v11  ;;  %v1944_v27 = vadd.f32 %v1943_v14, %v8373_v46  ;;  %3780 = vmatprep.subr.bf16.mxu0 %v6898_v3  ;;  %6345 = vmatprep.subr.bf16.mxu1 %v6899_v10  ;;  %v6916_v14 = vld [vmem:[#allocation8 + $0xf8] ss:$28 sps:$4 sm:$0xff]  }
 0x1e7   :  { %v7000_v20 = vpop.eup %6999  ;;  %7023 = vrcp.f32 %v2440_v56  ;;  %v2441_v16 = vadd.f32 1.0, %v6998_v0  ;;  %v1945_v58 = vpop.f32.mrf.mxu0  ;;  %v8541_v53 = vpack.c.bf16 %v6996_v37, %v6988_v47  ;;  %v1757_v3 = vadd.f32 %v8381_v2, %v1564_v19  ;;  %v6904_v37 = vld [vmem:[#allocation8 + $0xf0] ss:$28 sps:$4 sm:$0xff]   ;;  %v6911_v56 = vld [vmem:[#allocation8 + $0xbc] ss:$28 sps:$4 sm:$0xff]  }
 0x1e8   :  { %v2138_v30 = vpop.f32.mrf.mxu1  ;;  %v7002_v33 = vpop.eup %7001  ;;  %7025 = vpow2.f32 %v5964_v7  ;;  %v5966_v49 = vmul.f32 -1.442695, %v2133_v22  ;;  %v2137_v23 = vadd.f32 %v2136_v38, %v1944_v27  ;;  %v1946_v46 = vadd.f32 %v1945_v58, %v8376_v59  ;;  %v6915_v59 = vld [vmem:[#allocation8 + $0x2b8] ss:$28 sps:$4 sm:$0xff]  }
 0x1e9   :  { %7027 = vrcp.f32 %v2441_v16  ;;  %v2442_v31 = vadd.f32 1.0, %v7002_v33  ;;  %v1947_v35 = vpop.f32.mrf.mxu0  ;;  %v8544_v17 = vpack.c.bf16 %v7000_v20, %v6992_v28  ;;  %3781 = vmatpush1.bf16.msra.mxu0 %v6896_v15  ;;  %6346 = vmatpush3.bf16.msra.mxu1 %v6900_v44  ;;  %v1574_v2 = vadd.f32 %v8392_v24, %v8289_v60 }
 0x1ea   :  { %v2140_v39 = vpop.f32.mrf.mxu1  ;;  %v7004_v29 = vpop.eup %7003  ;;  %7029 = vpow2.f32 %v5965_v12  ;;  %v5967_v47 = vmul.f32 -1.442695, %v2137_v23  ;;  %v2139_v4 = vadd.f32 %v2138_v30, %v1946_v46  ;;  %v1948_v63 = vadd.f32 %v1947_v35, %v8383_v6  ;;  %3782 = vmatprep.subr.bf16.mxu0 %v6903_v5  ;;  %6347 = vmatprep.subr.bf16.mxu1 %v6907_v42  ;;  %v6923_v12 = vld [vmem:[#allocation8 + $0x280] ss:$28 sps:$4 sm:$0xff]   ;;  %v6909_v30 = vld [vmem:[#allocation8 + $0xb8] ss:$28 sps:$4 sm:$0xff]  }
 0x1eb   :  { %v7006_v51 = vpop.eup %7005  ;;  %7031 = vrcp.f32 %v2442_v31  ;;  %3434 = vmatprep.mubr.bf16.mxu0 %v8544_v17  ;;  %3627 = vmatprep.mubr.bf16.mxu1 %v8544_v17  ;;  %v1949_v10 = vpop.f32.mrf.mxu0  ;;  %v6914_v35 = vld [vmem:[#allocation8 + $0x84] ss:$28 sps:$4 sm:$0xff]  }
 0x1ec   :  { %v2142_v28 = vpop.f32.mrf.mxu1  ;;  %v7008_v34 = vpop.eup %7007  ;;  %v2443_v36 = vadd.f32 1.0, %v7006_v51  ;;  %7033 = vpow2.f32 %v5966_v49  ;;  %v5968_v45 = vmul.f32 -1.442695, %v2139_v4  ;;  %v2141_v8 = vadd.f32 %v2140_v39, %v1948_v63  ;;  %3435 = vmatmul.mubr.bf16.gmra.mxu0 %v8541_v53  ;;  %3628 = vmatmul.mubr.bf16.gmra.mxu1 %v8541_v53  ;;  %v6924_v39 = vld [vmem:[#allocation8 + $0xc0] ss:$28 sps:$4 sm:$0xff]  }
 0x1ed   :  { %v7010_v6 = vpop.eup %7009  ;;  %7035 = vpow2.f32 %v5967_v47  ;;  %v1950_v7 = vadd.f32 %v1949_v10, %v1757_v3  ;;  %v1953_v9 = vpop.f32.mrf.mxu0  ;;  %3783 = vmatpush1.bf16.msra.mxu0 %v6901_v1  ;;  %6348 = vmatpush3.bf16.msra.mxu1 %v6908_v48 }
 0x1ee   :  { %v2146_v11 = vpop.f32.mrf.mxu1  ;;  %v7012_v38 = vpop.eup %7011  ;;  %7037 = vrcp.f32 %v2443_v36  ;;  %v2444_v15 = vadd.f32 1.0, %v7010_v6  ;;  %v5969_v44 = vmul.f32 -1.442695, %v2141_v8  ;;  %v1954_v0 = vadd.f32 %v1953_v9, %v8386_v13  ;;  %3784 = vmatprep.subr.bf16.mxu0 %v6906_v54  ;;  %6349 = vmatprep.subr.bf16.mxu1 %v6915_v59  ;;  %v6912_v8 = vld [vmem:[#allocation8 + $0x80] ss:$28 sps:$4 sm:$0xff]  }
 0x1ef   :  { %v7014_v22 = vpop.eup %7013  ;;  %7039 = vpow2.f32 %v5968_v45  ;;  %v2143_v24 = vadd.f32 %v2142_v28, %v1950_v7  ;;  %v1955_v27 = vpop.f32.mrf.mxu0  ;;  %v8555_v42 = vpack.c.bf16 %v7012_v38, %v7004_v29  ;;  %v1767_v13 = vadd.f32 %v8394_v25, %v1574_v2  ;;  %v6932_v6 = vld [vmem:[#allocation8 + $0x88] ss:$28 sps:$4 sm:$0xff]  }
 0x1f0   :  { %v2148_v5 = vpop.f32.mrf.mxu1  ;;  %v7016_v20 = vpop.eup %7015  ;;  %7041 = vrcp.f32 %v2444_v15  ;;  %v2445_v19 = vadd.f32 1.0, %v7014_v22  ;;  %v2147_v16 = vadd.f32 %v2146_v11, %v1954_v0  ;;  %v1956_v58 = vadd.f32 %v1955_v27, %v8389_v21  ;;  %v6931_v21 = vld [vmem:[#allocation8 + $0x248] ss:$28 sps:$4 sm:$0xff]  }
 0x1f1   :  { %v7018_v33 = vpop.eup %7017  ;;  %7043 = vpow2.f32 %v5969_v44  ;;  %v5970_v49 = vmul.f32 -1.442695, %v2143_v24  ;;  %v1957_v23 = vpop.f32.mrf.mxu0  ;;  %v8559_v31 = vpack.c.bf16 %v7016_v20, %v7008_v34  ;;  %3785 = vmatpush1.bf16.msra.mxu0 %v6904_v37  ;;  %6350 = vmatpush3.bf16.msra.mxu1 %v6916_v14  ;;  %v1584_v34 = vadd.f32 %v8405_v55, %v8289_v60  ;;  %v6919_v37 = vld [vmem:[#allocation8 + $0x4c] ss:$28 sps:$4 sm:$0xff]  }
 0x1f2   :  { %v2150_v46 = vpop.f32.mrf.mxu1  ;;  %v7020_v1 = vpop.eup %7019  ;;  %7045 = vrcp.f32 %v2445_v19  ;;  %v2446_v48 = vadd.f32 1.0, %v7018_v33  ;;  %v5971_v29 = vmul.f32 -1.442695, %v2147_v16  ;;  %v2149_v47 = vadd.f32 %v2148_v5, %v1956_v58  ;;  %3786 = vmatprep.subr.bf16.mxu0 %v6911_v56  ;;  %6351 = vmatprep.subr.bf16.mxu1 %v6923_v12  ;;  %v6939_v56 = vld [vmem:[#allocation8 + $0x210] ss:$28 sps:$4 sm:$0xff]  }
 0x1f3   :  { %v7022_v4 = vpop.eup %7021  ;;  %7047 = vpow2.f32 %v5970_v49  ;;  %v1958_v25 = vadd.f32 %v1957_v23, %v8396_v26  ;;  %3444 = vmatprep.mubr.bf16.mxu0 %v8559_v31  ;;  %3637 = vmatprep.mubr.bf16.mxu1 %v8559_v31  ;;  %v1959_v63 = vpop.f32.mrf.mxu0  ;;  %v1777_v5 = vadd.f32 %v8407_v57, %v1584_v34  ;;  %v6917_v58 = vld [vmem:[#allocation8 + $0x48] ss:$28 sps:$4 sm:$0xff]   ;;  %v6940_v33 = vld [vmem:[#allocation8 + $0x50] ss:$28 sps:$4 sm:$0xff]   ;;  %v6947_v57 = vld [vmem:[#allocation8 + $0x1d8] ss:$28 sps:$4 sm:$0xff]  }
 0x1f4   :  { %v2152_v54 = vpop.f32.mrf.mxu1  ;;  %v7024_v59 = vpop.eup %7023  ;;  %7049 = vrcp.f32 %v2446_v48  ;;  %v2447_v51 = vadd.f32 1.0, %v7022_v4  ;;  %v5972_v3 = vmul.f32 -1.442695, %v2149_v47  ;;  %v1960_v10 = vadd.f32 %v1959_v63, %v1767_v13  ;;  %3445 = vmatmul.mubr.bf16.gmra.mxu0 %v8555_v42  ;;  %3638 = vmatmul.mubr.bf16.gmra.mxu1 %v8555_v42 }
 0x1f5   :  { %v7026_v28 = vpop.eup %7025  ;;  %7051 = vpow2.f32 %v5971_v29  ;;  %v2151_v26 = vadd.f32 %v2150_v46, %v1958_v25  ;;  %v1963_v36 = vpop.f32.mrf.mxu0  ;;  %3787 = vmatpush1.bf16.msra.mxu0 %v6909_v30  ;;  %6352 = vmatpush3.bf16.msra.mxu1 %v6924_v39  ;;  %v6922_v30 = vld [vmem:[#allocation8 + $0x14] ss:$28 sps:$4 sm:$0xff]   ;;  %v1594_v25 = vadd.f32 %v8418_v40, %v8289_v60 }
 0x1f6   :  { %v2156_v45 = vpop.f32.mrf.mxu1  ;;  %v7028_v2 = vpop.eup %7027  ;;  %7053 = vrcp.f32 %v2447_v51  ;;  %v2448_v7 = vadd.f32 1.0, %v7026_v28  ;;  %v2153_v9 = vadd.f32 %v2152_v54, %v1960_v10  ;;  %v1964_v11 = vadd.f32 %v1963_v36, %v8399_v41  ;;  %3788 = vmatprep.subr.bf16.mxu0 %v6914_v35  ;;  %6353 = vmatprep.subr.bf16.mxu1 %v6931_v21  ;;  %v6927_v36 = vld [vmem:[#allocation8 + $0x35c] ss:$28 sps:$4 sm:$0xff]  }
 0x1f7   :  { %v7030_v14 = vpop.eup %7029  ;;  %7055 = vpow2.f32 %v5972_v3  ;;  %v5973_v55 = vmul.f32 -1.442695, %v2151_v26  ;;  %v1965_v38 = vpop.f32.mrf.mxu0  ;;  %v8569_v44 = vpack.c.bf16 %v7028_v2, %v7020_v1  ;;  %v6948_v3 = vld [vmem:[#allocation8 + $0x18] ss:$28 sps:$4 sm:$0xff]  }
 0x1f8   :  { %v2158_v15 = vpop.f32.mrf.mxu1  ;;  %v7032_v0 = vpop.eup %7031  ;;  %7057 = vrcp.f32 %v2448_v7  ;;  %v2449_v12 = vadd.f32 1.0, %v7030_v14  ;;  %v5974_v22 = vmul.f32 -1.442695, %v2153_v9  ;;  %v2157_v24 = vadd.f32 %v2156_v45, %v1964_v11 }
 0x1f9   :  { %v7034_v27 = vpop.eup %7033  ;;  %7059 = vpow2.f32 %v5973_v55  ;;  %v1966_v41 = vadd.f32 %v1965_v38, %v8402_v50  ;;  %v1967_v20 = vpop.f32.mrf.mxu0  ;;  %v8573_v16 = vpack.c.bf16 %v7032_v0, %v7024_v59  ;;  %3789 = vmatpush1.bf16.msra.mxu0 %v6912_v8  ;;  %6354 = vmatpush3.bf16.msra.mxu1 %v6932_v6 }
 0x1fa   :  { %v2160_v19 = vpop.f32.mrf.mxu1  ;;  %v7036_v13 = vpop.eup %7035  ;;  %7061 = vrcp.f32 %v2449_v12  ;;  %v2450_v49 = vadd.f32 1.0, %v7034_v27  ;;  %v5975_v23 = vmul.f32 -1.442695, %v2157_v24  ;;  %v1968_v46 = vadd.f32 %v1967_v20, %v8409_v62  ;;  %3790 = vmatprep.subr.bf16.mxu0 %v6919_v37  ;;  %6355 = vmatprep.subr.bf16.mxu1 %v6939_v56  ;;  %v6920_v62 = vld [vmem:[#allocation8 + $0x10] ss:$28 sps:$4 sm:$0xff]  }
 0x1fb   :  { %v7038_v35 = vpop.eup %7037  ;;  %v2451_v50 = vadd.f32 1.0, %v7036_v13  ;;  %7063 = vpow2.f32 %v5974_v22  ;;  %v2159_v39 = vadd.f32 %v2158_v15, %v1966_v41  ;;  %3454 = vmatprep.mubr.bf16.mxu0 %v8573_v16  ;;  %3647 = vmatprep.mubr.bf16.mxu1 %v8573_v16  ;;  %v1969_v1 = vpop.f32.mrf.mxu0  ;;  %v1787_v56 = vadd.f32 %v8420_v43, %v1594_v25  ;;  %v9761_v22 = vld [vmem:[#allocation16_spill] sm:$0xff]  ;;  %v6925_v20 = vld [vmem:[#allocation8 + $0x358] ss:$28 sps:$4 sm:$0xff]   ;;  %v6930_v13 = vld [vmem:[#allocation8 + $0x324] ss:$28 sps:$4 sm:$0xff]  }
 0x1fc   :  { %v2162_v48 = vpop.f32.mrf.mxu1  ;;  %v7040_v29 = vpop.eup %7039  ;;  %7065 = vrcp.f32 %v2450_v49  ;;  %v2161_v47 = vadd.f32 %v2160_v19, %v1968_v46  ;;  %v1970_v21 = vadd.f32 %v1969_v1, %v1777_v5  ;;  %3455 = vmatmul.mubr.bf16.gmra.mxu0 %v8569_v44  ;;  %3648 = vmatmul.mubr.bf16.gmra.mxu1 %v8569_v44  ;;  %v9762_v1 = vld [vmem:[#allocation17_spill] sm:$0xff] }
 0x1fd   :  { %v7042_v4 = vpop.eup %7041  ;;  %7067 = vrcp.f32 %v2451_v50  ;;  %v2452_v63 = vadd.f32 1.0, %v7040_v29  ;;  %v5976_v54 = vmul.f32 -1.442695, %v2159_v39  ;;  %v1973_v59 = vpop.f32.mrf.mxu0  ;;  %3791 = vmatpush1.bf16.msra.mxu0 %v6917_v58  ;;  %6356 = vmatpush3.bf16.msra.mxu1 %v6940_v33 }
 0x1fe   :  { %v2166_v51 = vpop.f32.mrf.mxu1  ;;  %v7044_v10 = vpop.eup %7043  ;;  %7069 = vpow2.f32 %v5975_v23  ;;  %v5977_v28 = vmul.f32 -1.442695, %v2161_v47  ;;  %v2163_v34 = vadd.f32 %v2162_v48, %v1970_v21  ;;  %v1974_v26 = vadd.f32 %v1973_v59, %v8412_v18  ;;  %3792 = vmatprep.subr.bf16.mxu0 %v6922_v30  ;;  %6357 = vmatprep.subr.bf16.mxu1 %v6947_v57  ;;  %v9763_v47 = vld [vmem:[#allocation19_spill] sm:$0xff] }
 0x1ff   :  { %v7046_v45 = vpop.eup %7045  ;;  %7071 = vrcp.f32 %v2452_v63  ;;  %v2453_v40 = vadd.f32 1.0, %v7044_v10  ;;  %v1975_v8 = vpop.f32.mrf.mxu0  ;;  %v1604_v21 = vadd.f32 %v9763_v47, %v8289_v60  ;;  %v6928_v63 = vld [vmem:[#allocation8 + $0x320] ss:$28 sps:$4 sm:$0xff]  }
 0x200   :  { %v2168_v6 = vpop.f32.mrf.mxu1  ;;  %v7048_v2 = vpop.eup %7047  ;;  %7073 = vpow2.f32 %v5976_v54  ;;  %v5978_v7 = vmul.f32 -1.442695, %v2163_v34  ;;  %v2167_v9 = vadd.f32 %v2166_v51, %v1974_v26  ;;  %v1976_v11 = vadd.f32 %v1975_v8, %v8415_v32  ;;  %v9769_v47 = vld [vmem:[#allocation23_spill] sm:$0xff] }
 0x201   :  { %v7050_v37 = vpop.eup %7049  ;;  %7075 = vrcp.f32 %v2453_v40  ;;  %v2454_v14 = vadd.f32 1.0, %v7048_v2  ;;  %v1977_v18 = vpop.f32.mrf.mxu0  ;;  %v8585_v38 = vpack.c.bf16 %v7046_v45, %v7038_v35  ;;  %3793 = vmatpush1.bf16.msra.mxu0 %v6920_v62  ;;  %6358 = vmatpush3.bf16.msra.mxu1 %v6948_v3  ;;  %v9764_v3 = vld [vmem:[#allocation18_spill] sm:$0xff] }
 0x202   :  { %v2170_v55 = vpop.f32.mrf.mxu1  ;;  %v7052_v15 = vpop.eup %7051  ;;  %7077 = vpow2.f32 %v5977_v28  ;;  %v5979_v0 = vmul.f32 -1.442695, %v2167_v9  ;;  %v2169_v12 = vadd.f32 %v2168_v6, %v1976_v11  ;;  %v1978_v24 = vadd.f32 %v1977_v18, %v9761_v22  ;;  %3794 = vmatprep.subr.bf16.mxu0 %v6927_v36  ;;  %v6935_v28 = vld [vmem:[#allocation8 + $0x2ec] ss:$28 sps:$4 sm:$0xff]  }
 0x203   :  { %v7054_v27 = vpop.eup %7053  ;;  %7079 = vrcp.f32 %v2454_v14  ;;  %v2455_v32 = vadd.f32 1.0, %v7052_v15  ;;  %v8588_v5 = vpack.c.bf16 %v7050_v37, %v7042_v4  ;;  %v1979_v43 = vpop.f32.mrf.mxu0  ;;  %v9766_v37 = vld [vmem:[#allocation20_spill] sm:$0xff] }
 0x204   :  { %v2172_v41 = vpop.f32.mrf.mxu1  ;;  %v7056_v19 = vpop.eup %7055  ;;  %7081 = vpow2.f32 %v5978_v7  ;;  %v5980_v58 = vmul.f32 -1.442695, %v2169_v12  ;;  %v2171_v30 = vadd.f32 %v2170_v55, %v1978_v24  ;;  %v1980_v33 = vadd.f32 %v1979_v43, %v1787_v56  ;;  %v9765_v7 = vld [vmem:[#allocation21_spill] sm:$0xff]  ;;  %v6933_v15 = vld [vmem:[#allocation8 + $0x2e8] ss:$28 sps:$4 sm:$0xff]  }
 0x205   :  { %v7058_v49 = vpop.eup %7057  ;;  %7083 = vrcp.f32 %v2455_v32  ;;  %v2456_v23 = vadd.f32 1.0, %v7056_v19  ;;  %3464 = vmatprep.mubr.bf16.mxu0 %v8588_v5  ;;  %3657 = vmatprep.mubr.bf16.mxu1 %v8588_v5  ;;  %v1983_v46 = vpop.f32.mrf.mxu0  ;;  %v1797_v56 = vadd.f32 %v9766_v37, %v1604_v21  ;;  %v9767_v43 = vld [vmem:[#allocation24_spill] sm:$0xff] }
 0x206   :  { %v2176_v57 = vpop.f32.mrf.mxu1  ;;  %v7060_v35 = vpop.eup %7059  ;;  %7085 = vpow2.f32 %v5979_v0  ;;  %v5981_v50 = vmul.f32 -1.442695, %v2171_v30  ;;  %v2173_v39 = vadd.f32 %v2172_v41, %v1980_v33  ;;  %3465 = vmatmul.mubr.bf16.gmra.mxu0 %v8585_v38  ;;  %3658 = vmatmul.mubr.bf16.gmra.mxu1 %v8585_v38  ;;  %v1984_v48 = vadd.f32 %v1983_v46, %v9762_v1 }
 0x207   :  { %v7062_v29 = vpop.eup %7061  ;;  %7087 = vrcp.f32 %v2456_v23  ;;  %v2457_v62 = vadd.f32 1.0, %v7060_v35  ;;  %v1985_v4 = vpop.f32.mrf.mxu0  ;;  %3795 = vmatpush2.bf16.msra.mxu0 %v6925_v20  ;;  %v1614_v41 = vadd.f32 %v9767_v43, %v8289_v60 }
 0x208   :  { %v2178_v25 = vpop.f32.mrf.mxu1  ;;  %v7064_v54 = vpop.eup %7063  ;;  %7089 = vpow2.f32 %v5980_v58  ;;  %v5982_v59 = vmul.f32 -1.442695, %v2173_v39  ;;  %v2177_v51 = vadd.f32 %v2176_v57, %v1984_v48  ;;  %v1986_v10 = vadd.f32 %v1985_v4, %v9764_v3  ;;  %3796 = vmatprep.subr.bf16.mxu0 %v6930_v13 }
 0x209   :  { %v7066_v34 = vpop.eup %7065  ;;  %7091 = vrcp.f32 %v2457_v62  ;;  %v2458_v26 = vadd.f32 1.0, %v7064_v54  ;;  %v1987_v36 = vpop.f32.mrf.mxu0  ;;  %v8598_v40 = vpack.c.bf16 %v7062_v29, %v7054_v27  ;;  %v6938_v27 = vld [vmem:[#allocation8 + $0x2b4] ss:$28 sps:$4 sm:$0xff]  }
 0x20a   :  { %v2180_v45 = vpop.f32.mrf.mxu1  ;;  %v7068_v8 = vpop.eup %7067  ;;  %7093 = vpow2.f32 %v5981_v50  ;;  %v5983_v6 = vmul.f32 -1.442695, %v2177_v51  ;;  %v2179_v2 = vadd.f32 %v2178_v25, %v1986_v10  ;;  %v1988_v9 = vadd.f32 %v1987_v36, %v9765_v7  ;;  %v6936_v62 = vld [vmem:[#allocation8 + $0x2b0] ss:$28 sps:$4 sm:$0xff]   ;;  %v6943_v10 = vld [vmem:[#allocation8 + $0x27c] ss:$28 sps:$4 sm:$0xff]  }
 0x20b   :  { %v7070_v11 = vpop.eup %7069  ;;  %7095 = vrcp.f32 %v2458_v26  ;;  %v8602_v14 = vpack.c.bf16 %v7066_v34, %v7058_v49  ;;  %v1989_v18 = vpop.f32.mrf.mxu0  ;;  %3797 = vmatpush2.bf16.msra.mxu0 %v6928_v63  ;;  %v9768_v49 = vld [vmem:[#allocation22_spill] sm:$0xff]  ;;  %v9770_v25 = vld [vmem:[#allocation25_spill] sm:$0xff] }
 0x20c   :  { %v2182_v55 = vpop.f32.mrf.mxu1  ;;  %v7072_v0 = vpop.eup %7071  ;;  %v2459_v12 = vadd.f32 1.0, %v7070_v11  ;;  %7097 = vpow2.f32 %v5982_v59  ;;  %v5984_v22 = vmul.f32 -1.442695, %v2179_v2  ;;  %v2181_v24 = vadd.f32 %v2180_v45, %v1988_v9  ;;  %3798 = vmatprep.subr.bf16.mxu0 %v6935_v28 }
 0x20d   :  { %v7074_v32 = vpop.eup %7073  ;;  %7099 = vpow2.f32 %v5983_v6  ;;  %3474 = vmatprep.mubr.bf16.mxu0 %v8602_v14  ;;  %3667 = vmatprep.mubr.bf16.mxu1 %v8602_v14  ;;  %v1990_v20 = vadd.f32 %v1989_v18, %v1797_v56  ;;  %v1993_v19 = vpop.f32.mrf.mxu0  ;;  %v1807_v63 = vadd.f32 %v9770_v25, %v1614_v41  ;;  %v6941_v18 = vld [vmem:[#allocation8 + $0x278] ss:$28 sps:$4 sm:$0xff]  }
 0x20e   :  { %v2186_v58 = vpop.f32.mrf.mxu1  ;;  %v7076_v30 = vpop.eup %7075  ;;  %7101 = vrcp.f32 %v2459_v12  ;;  %v2460_v33 = vadd.f32 1.0, %v7074_v32  ;;  %v5985_v13 = vmul.f32 -1.442695, %v2181_v24  ;;  %3475 = vmatmul.mubr.bf16.gmra.mxu0 %v8598_v40  ;;  %3668 = vmatmul.mubr.bf16.gmra.mxu1 %v8598_v40  ;;  %v1994_v23 = vadd.f32 %v1993_v19, %v9768_v49 }
 0x20f   :  { %v7078_v46 = vpop.eup %7077  ;;  %7103 = vpow2.f32 %v5984_v22  ;;  %v2183_v57 = vadd.f32 %v2182_v55, %v1990_v20  ;;  %v1995_v35 = vpop.f32.mrf.mxu0  ;;  %v8611_v39 = vpack.c.bf16 %v7076_v30, %v7068_v8  ;;  %3799 = vmatpush2.bf16.msra.mxu0 %v6933_v15  ;;  %v9771_v8 = vld [vmem:[#allocation26_spill] sm:$0xff]  ;;  %v9772_v15 = vld [vmem:[#allocation29_spill] sm:$0xff]  ;;  %v9773_v20 = vld [vmem:[#allocation27_spill] sm:$0xff] }
 0x210   :  { %v2188_v50 = vpop.f32.mrf.mxu1  ;;  %v7080_v1 = vpop.eup %7079  ;;  %7105 = vrcp.f32 %v2460_v33  ;;  %v2461_v48 = vadd.f32 1.0, %v7078_v46  ;;  %v2187_v29 = vadd.f32 %v2186_v58, %v1994_v23  ;;  %v1996_v21 = vadd.f32 %v1995_v35, %v9769_v47  ;;  %3800 = vmatprep.subr.bf16.mxu0 %v6938_v27  ;;  %v6946_v27 = vld [vmem:[#allocation8 + $0x244] ss:$28 sps:$4 sm:$0xff]   ;;  %v9775_v47 = vld [vmem:[#allocation28_spill] sm:$0xff] }
 0x211   :  { %v7082_v4 = vpop.eup %7081  ;;  %7107 = vpow2.f32 %v5985_v13  ;;  %v5986_v54 = vmul.f32 -1.442695, %v2183_v57  ;;  %v1997_v59 = vpop.f32.mrf.mxu0  ;;  %v8615_v3 = vpack.c.bf16 %v7080_v1, %v7072_v0  ;;  %v1624_v0 = vadd.f32 %v9772_v15, %v8289_v60 }
 0x212   :  { %v2190_v51 = vpop.f32.mrf.mxu1  ;;  %v7084_v28 = vpop.eup %7083  ;;  %7109 = vrcp.f32 %v2461_v48  ;;  %v2462_v34 = vadd.f32 1.0, %v7082_v4  ;;  %v5987_v26 = vmul.f32 -1.442695, %v2187_v29  ;;  %v2189_v36 = vadd.f32 %v2188_v50, %v1996_v21  ;;  %v6944_v50 = vld [vmem:[#allocation8 + $0x240] ss:$28 sps:$4 sm:$0xff]  }
 0x213   :  { %v7086_v45 = vpop.eup %7085  ;;  %7111 = vpow2.f32 %v5986_v54  ;;  %v1998_v6 = vadd.f32 %v1997_v59, %v9771_v8  ;;  %3484 = vmatprep.mubr.bf16.mxu0 %v8615_v3  ;;  %3677 = vmatprep.mubr.bf16.mxu1 %v8615_v3  ;;  %v1999_v2 = vpop.f32.mrf.mxu0  ;;  %v9774_v48 = vld [vmem:[#allocation30_spill] sm:$0xff] }
 0x214   :  { %v2192_v7 = vpop.f32.mrf.mxu1  ;;  %v7088_v9 = vpop.eup %7087  ;;  %7113 = vrcp.f32 %v2462_v34  ;;  %v2463_v11 = vadd.f32 1.0, %v7086_v45  ;;  %v5988_v37 = vmul.f32 -1.442695, %v2189_v36  ;;  %v2000_v56 = vadd.f32 %v1999_v2, %v1807_v63  ;;  %3801 = vmatpush2.bf16.msra.mxu0 %v6936_v62  ;;  %v6951_v63 = vld [vmem:[#allocation8 + $0x20c] ss:$28 sps:$4 sm:$0xff]  }
 0x215   :  { %v7090_v55 = vpop.eup %7089  ;;  %7115 = vpow2.f32 %v5987_v26  ;;  %v2191_v12 = vadd.f32 %v2190_v51, %v1998_v6  ;;  %v2003_v22 = vpop.f32.mrf.mxu0  ;;  %3802 = vmatprep.subr.bf16.mxu0 %v6943_v10  ;;  %v1817_v29 = vadd.f32 %v9774_v48, %v1624_v0  ;;  %v9776_v10 = vld [vmem:[#allocation31_spill] sm:$0xff] }
 0x216   :  { %v2196_v24 = vpop.f32.mrf.mxu1  ;;  %v7092_v32 = vpop.eup %7091  ;;  %7117 = vrcp.f32 %v2463_v11  ;;  %v2464_v43 = vadd.f32 1.0, %v7090_v55  ;;  %v2193_v41 = vadd.f32 %v2192_v7, %v2000_v56  ;;  %3485 = vmatmul.mubr.bf16.gmra.mxu0 %v8611_v39  ;;  %3678 = vmatmul.mubr.bf16.gmra.mxu1 %v8611_v39  ;;  %v2004_v19 = vadd.f32 %v2003_v22, %v9773_v20 }
 0x217   :  { %v7094_v58 = vpop.eup %7093  ;;  %7119 = vpow2.f32 %v5988_v37  ;;  %v5989_v30 = vmul.f32 -1.442695, %v2191_v12  ;;  %v2005_v33 = vpop.f32.mrf.mxu0  ;;  %v8625_v49 = vpack.c.bf16 %v7092_v32, %v7084_v28  ;;  %v9777_v37 = vld [vmem:[#allocation34_spill] sm:$0xff]  ;;  %v6954_v12 = vld [vmem:[#allocation8 + $0x1d4] ss:$28 sps:$4 sm:$0xff]   ;;  %v9778_v32 = vld [vmem:[#allocation32_spill] sm:$0xff] }
 0x218   :  { %v2198_v13 = vpop.f32.mrf.mxu1  ;;  %v7096_v23 = vpop.eup %7095  ;;  %7121 = vrcp.f32 %v2464_v43  ;;  %v2465_v46 = vadd.f32 1.0, %v7094_v58  ;;  %v5990_v57 = vmul.f32 -1.442695, %v2193_v41  ;;  %v2197_v35 = vadd.f32 %v2196_v24, %v2004_v19  ;;  %3803 = vmatpush2.bf16.msra.mxu0 %v6941_v18 }
 0x219   :  { %v7098_v1 = vpop.eup %7097  ;;  %7123 = vpow2.f32 %v5989_v30  ;;  %v2006_v21 = vadd.f32 %v2005_v33, %v9775_v47  ;;  %v2007_v62 = vpop.f32.mrf.mxu0  ;;  %v8629_v25 = vpack.c.bf16 %v7096_v23, %v7088_v9  ;;  %3804 = vmatprep.subr.bf16.mxu0 %v6946_v27  ;;  %v6949_v9 = vld [vmem:[#allocation8 + $0x208] ss:$28 sps:$4 sm:$0xff]   ;;  %v1634_v56 = vadd.f32 %v9777_v37, %v8289_v60  ;;  %v9779_v23 = vld [vmem:[#allocation33_spill] sm:$0xff] }
 0x21a   :  { %v2200_v4 = vpop.f32.mrf.mxu1  ;;  %v7100_v54 = vpop.eup %7099  ;;  %7125 = vrcp.f32 %v2465_v46  ;;  %v2466_v59 = vadd.f32 1.0, %v7098_v1  ;;  %v5991_v51 = vmul.f32 -1.442695, %v2197_v35  ;;  %v2008_v28 = vadd.f32 %v2007_v62, %v9776_v10 }
 0x21b   :  { %v7102_v34 = vpop.eup %7101  ;;  %v2467_v26 = vadd.f32 1.0, %v7100_v54  ;;  %7127 = vpow2.f32 %v5990_v57  ;;  %v2199_v36 = vadd.f32 %v2198_v13, %v2006_v21  ;;  %3494 = vmatprep.mubr.bf16.mxu0 %v8629_v25  ;;  %3687 = vmatprep.mubr.bf16.mxu1 %v8629_v25  ;;  %v2009_v45 = vpop.f32.mrf.mxu0  ;;  %v6952_v57 = vld [vmem:[#allocation8 + $0x1d0] ss:$28 sps:$4 sm:$0xff]  }
 0x21c   :  { %v2202_v8 = vpop.f32.mrf.mxu1  ;;  %v7104_v6 = vpop.eup %7103  ;;  %7129 = vrcp.f32 %v2466_v59  ;;  %v2201_v2 = vadd.f32 %v2200_v4, %v2008_v28  ;;  %v2010_v7 = vadd.f32 %v2009_v45, %v1817_v29  ;;  %3805 = vmatpush2.bf16.msra.mxu0 %v6944_v50  ;;  %v9780_v50 = vld [vmem:[#allocation35_spill] sm:$0xff]  ;;  %v9781_v54 = vld [vmem:[#allocation36_spill] sm:$0xff] }
 0x21d   :  { %v7106_v11 = vpop.eup %7105  ;;  %7131 = vrcp.f32 %v2467_v26  ;;  %v2468_v18 = vadd.f32 1.0, %v7104_v6  ;;  %v5992_v55 = vmul.f32 -1.442695, %v2199_v36  ;;  %v2013_v15 = vpop.f32.mrf.mxu0  ;;  %3806 = vmatprep.subr.bf16.mxu0 %v6951_v63  ;;  %v1827_v1 = vadd.f32 %v9780_v50, %v1634_v56 }
 0x21e   :  { %v2206_v0 = vpop.f32.mrf.mxu1  ;;  %v7108_v22 = vpop.eup %7107  ;;  %7133 = vpow2.f32 %v5991_v51  ;;  %v5993_v24 = vmul.f32 -1.442695, %v2201_v2  ;;  %v2203_v27 = vadd.f32 %v2202_v8, %v2010_v7  ;;  %3495 = vmatmul.mubr.bf16.gmra.mxu0 %v8625_v49  ;;  %3688 = vmatmul.mubr.bf16.gmra.mxu1 %v8625_v49  ;;  %v2014_v43 = vadd.f32 %v2013_v15, %v9778_v32 }
 0x21f   :  { %v7110_v41 = vpop.eup %7109  ;;  %7135 = vrcp.f32 %v2468_v18  ;;  %v2469_v20 = vadd.f32 1.0, %v7108_v22  ;;  %v2015_v19 = vpop.f32.mrf.mxu0 }
 0x220   :  { %v2208_v58 = vpop.f32.mrf.mxu1  ;;  %v7112_v30 = vpop.eup %7111  ;;  %7137 = vpow2.f32 %v5992_v55  ;;  %v5994_v33 = vmul.f32 -1.442695, %v2203_v27  ;;  %v2207_v13 = vadd.f32 %v2206_v0, %v2014_v43  ;;  %v2016_v46 = vadd.f32 %v2015_v19, %v9779_v23  ;;  %3807 = vmatpush2.bf16.msra.mxu0 %v6949_v9  ;;  %v9782_v55 = vld [vmem:[#allocation37_spill] sm:$0xff]  ;;  %v9784_v19 = vld [vmem:[#allocation38_spill] sm:$0xff] }
 0x221   :  { %v7114_v35 = vpop.eup %7113  ;;  %7139 = vrcp.f32 %v2469_v20  ;;  %v2470_v48 = vadd.f32 1.0, %v7112_v30  ;;  %v2017_v29 = vpop.f32.mrf.mxu0  ;;  %v8641_v21 = vpack.c.bf16 %v7110_v41, %v7102_v34  ;;  %3808 = vmatprep.subr.bf16.mxu0 %v6954_v12  ;;  %v9783_v12 = vld [vmem:[#allocation39_spill] sm:$0xff] }
 0x222   :  { %v2210_v47 = vpop.f32.mrf.mxu1  ;;  %v7116_v62 = vpop.eup %7115  ;;  %7141 = vpow2.f32 %v5993_v24  ;;  %v5995_v4 = vmul.f32 -1.442695, %v2207_v13  ;;  %v2209_v63 = vadd.f32 %v2208_v58, %v2016_v46  ;;  %v2018_v59 = vadd.f32 %v2017_v29, %v9781_v54 }
 0x223   :  { %v7118_v51 = vpop.eup %7117  ;;  %7143 = vrcp.f32 %v2470_v48  ;;  %v2471_v10 = vadd.f32 1.0, %v7116_v62  ;;  %v8644_v28 = vpack.c.bf16 %v7114_v35, %v7106_v11  ;;  %v2019_v26 = vpop.f32.mrf.mxu0  ;;  %v1644_v22 = vadd.f32 %v9783_v12, %v8289_v60 }
 0x224   :  { %v2212_v36 = vpop.f32.mrf.mxu1  ;;  %v7120_v45 = vpop.eup %7119  ;;  %7145 = vpow2.f32 %v5994_v33  ;;  %v5996_v8 = vmul.f32 -1.442695, %v2209_v63  ;;  %v2211_v6 = vadd.f32 %v2210_v47, %v2018_v59  ;;  %v2020_v34 = vadd.f32 %v2019_v26, %v1827_v1  ;;  %3809 = vmatpush2.bf16.msra.mxu0 %v6952_v57  ;;  %v9785_v1 = vld [vmem:[#allocation41_spill] sm:$0xff]  ;;  %v9786_v47 = vld [vmem:[#allocation40_spill] sm:$0xff] }
 0x225   :  { %v7122_v2 = vpop.eup %7121  ;;  %7147 = vrcp.f32 %v2471_v10  ;;  %v2472_v7 = vadd.f32 1.0, %v7120_v45  ;;  %3504 = vmatprep.mubr.bf16.mxu0 %v8644_v28  ;;  %3697 = vmatprep.mubr.bf16.mxu1 %v8644_v28  ;;  %v2023_v9 = vpop.f32.mrf.mxu0  ;;  %v1837_v62 = vadd.f32 %v9786_v47, %v1644_v22  ;;  %v9787_v45 = vld [vmem:[#allocation44_spill] sm:$0xff] }
 0x226   :  { %v2216_v37 = vpop.f32.mrf.mxu1  ;;  %v7124_v56 = vpop.eup %7123  ;;  %7149 = vpow2.f32 %v5995_v4  ;;  %v5997_v11 = vmul.f32 -1.442695, %v2211_v6  ;;  %v2213_v18 = vadd.f32 %v2212_v36, %v2020_v34  ;;  %3505 = vmatmul.mubr.bf16.gmra.mxu0 %v8641_v21  ;;  %3698 = vmatmul.mubr.bf16.gmra.mxu1 %v8641_v21  ;;  %v2024_v15 = vadd.f32 %v2023_v9, %v9782_v55 }
 0x227   :  { %v7126_v0 = vpop.eup %7125  ;;  %7151 = vrcp.f32 %v2472_v7  ;;  %v2473_v24 = vadd.f32 1.0, %v7124_v56  ;;  %v2025_v27 = vpop.f32.mrf.mxu0  ;;  %v9788_v56 = vld [vmem:[#allocation42_spill] sm:$0xff] }
 0x228   :  { %v2218_v32 = vpop.f32.mrf.mxu1  ;;  %v7128_v43 = vpop.eup %7127  ;;  %7153 = vpow2.f32 %v5996_v8  ;;  %v5998_v41 = vmul.f32 -1.442695, %v2213_v18  ;;  %v2217_v20 = vadd.f32 %v2216_v37, %v2024_v15  ;;  %v2026_v58 = vadd.f32 %v2025_v27, %v9784_v19  ;;  %v9789_v27 = vld [vmem:[#allocation43_spill] sm:$0xff] }
 0x229   :  { %v7130_v30 = vpop.eup %7129  ;;  %7155 = vrcp.f32 %v2473_v24  ;;  %v2474_v33 = vadd.f32 1.0, %v7128_v43  ;;  %v2027_v13 = vpop.f32.mrf.mxu0  ;;  %v8654_v46 = vpack.c.bf16 %v7126_v0, %v7118_v51  ;;  %v1654_v8 = vadd.f32 %v9787_v45, %v8289_v60 }
 0x22a   :  { %v2220_v23 = vpop.f32.mrf.mxu1  ;;  %v7132_v57 = vpop.eup %7131  ;;  %7157 = vpow2.f32 %v5997_v11  ;;  %v5999_v35 = vmul.f32 -1.442695, %v2217_v20  ;;  %v2219_v50 = vadd.f32 %v2218_v32, %v2026_v58  ;;  %v2028_v48 = vadd.f32 %v2027_v13, %v9785_v1  ;;  %v9791_v1 = vld [vmem:[#allocation46_spill] sm:$0xff] }
 0x22b   :  { %v7134_v29 = vpop.eup %7133  ;;  %7159 = vrcp.f32 %v2474_v33  ;;  %v8658_v4 = vpack.c.bf16 %v7130_v30, %v7122_v2  ;;  %v2029_v63 = vpop.f32.mrf.mxu0 }
 0x22c   :  { %v2222_v54 = vpop.f32.mrf.mxu1  ;;  %v7136_v59 = vpop.eup %7135  ;;  %v2475_v10 = vadd.f32 1.0, %v7134_v29  ;;  %7161 = vpow2.f32 %v5998_v41  ;;  %v6000_v26 = vmul.f32 -1.442695, %v2219_v50  ;;  %v2221_v51 = vadd.f32 %v2220_v23, %v2028_v48  ;;  %v9790_v41 = vld [vmem:[#allocation45_spill] sm:$0xff] }
 0x22d   :  { %v7138_v36 = vpop.eup %7137  ;;  %7163 = vpow2.f32 %v5999_v35  ;;  %3514 = vmatprep.mubr.bf16.mxu0 %v8658_v4  ;;  %3707 = vmatprep.mubr.bf16.mxu1 %v8658_v4  ;;  %v2030_v6 = vadd.f32 %v2029_v63, %v1837_v62  ;;  %v2033_v34 = vpop.f32.mrf.mxu0  ;;  %v1847_v20 = vadd.f32 %v9790_v41, %v1654_v8 }
 0x22e   :  { %v2226_v2 = vpop.f32.mrf.mxu1  ;;  %v7140_v7 = vpop.eup %7139  ;;  %7165 = vrcp.f32 %v2475_v10  ;;  %v2476_v9 = vadd.f32 1.0, %v7138_v36  ;;  %v6001_v37 = vmul.f32 -1.442695, %v2221_v51  ;;  %3515 = vmatmul.mubr.bf16.gmra.mxu0 %v8654_v46  ;;  %3708 = vmatmul.mubr.bf16.gmra.mxu1 %v8654_v46  ;;  %v2034_v11 = vadd.f32 %v2033_v34, %v9788_v56 }
 0x22f   :  { %v7142_v18 = vpop.eup %7141  ;;  %7167 = vpow2.f32 %v6000_v26  ;;  %v2223_v60 = vadd.f32 %v2222_v54, %v2030_v6  ;;  %v2035_v55 = vpop.f32.mrf.mxu0  ;;  %v8667_v0 = vpack.c.bf16 %v7140_v7, %v7132_v57 }
 0x230   :  { %v2228_v15 = vpop.f32.mrf.mxu1  ;;  %v7144_v12 = vpop.eup %7143  ;;  %7169 = vrcp.f32 %v2476_v9  ;;  %v2477_v22 = vadd.f32 1.0, %v7142_v18  ;;  %v2227_v24 = vadd.f32 %v2226_v2, %v2034_v11  ;;  %v2036_v32 = vadd.f32 %v2035_v55, %v9789_v27 }
 0x231   :  { %v7146_v43 = vpop.eup %7145  ;;  %7171 = vpow2.f32 %v6001_v37  ;;  %v6002_v19 = vmul.f32 -1.442695, %v2223_v60  ;;  %v2037_v58 = vpop.f32.mrf.mxu0  ;;  %v8671_v33 = vpack.c.bf16 %v7144_v12, %v7136_v59 }
 0x232   :  { %v2230_v30 = vpop.f32.mrf.mxu1  ;;  %v7148_v13 = vpop.eup %7147  ;;  %7173 = vrcp.f32 %v2477_v22  ;;  %v2478_v23 = vadd.f32 1.0, %v7146_v43  ;;  %v6003_v57 = vmul.f32 -1.442695, %v2227_v24  ;;  %v2229_v35 = vadd.f32 %v2228_v15, %v2036_v32 }
 0x233   :  { %v7150_v50 = vpop.eup %7149  ;;  %7175 = vpow2.f32 %v6002_v19  ;;  %v2038_v48 = vadd.f32 %v2037_v58, %v9791_v1  ;;  %3524 = vmatprep.mubr.bf16.mxu0 %v8671_v33  ;;  %3717 = vmatprep.mubr.bf16.mxu1 %v8671_v33  ;;  %v2039_v29 = vpop.f32.mrf.mxu0 }
 0x234   :  { %v7152_v47 = vpop.eup %7151  ;;  %7177 = vrcp.f32 %v2478_v23  ;;  %v2479_v62 = vadd.f32 1.0, %v7150_v50  ;;  %v6004_v63 = vmul.f32 -1.442695, %v2229_v35  ;;  %v2040_v54 = vadd.f32 %v2039_v29, %v1847_v20  ;;  %v2232_v26 = vpop.f32.mrf.mxu1 }
 0x235   :  { %v7154_v59 = vpop.eup %7153  ;;  %7179 = vpow2.f32 %v6003_v57  ;;  %v2231_v10 = vadd.f32 %v2230_v30, %v2038_v48 }
 0x236   :  { %v7156_v51 = vpop.eup %7155  ;;  %7181 = vrcp.f32 %v2479_v62  ;;  %v2480_v36 = vadd.f32 1.0, %v7154_v59  ;;  %v2233_v45 = vadd.f32 %v2232_v26, %v2040_v54  ;;  %3525 = vmatmul.mubr.bf16.gmra.mxu0 %v8667_v0  ;;  %3718 = vmatmul.mubr.bf16.gmra.mxu1 %v8667_v0 }
 0x237   :  { %v7158_v8 = vpop.eup %7157  ;;  %7183 = vpow2.f32 %v6004_v63  ;;  %v6005_v6 = vmul.f32 -1.442695, %v2231_v10  ;;  %v8678_v34 = vpack.c.bf16 %v7156_v51, %v7148_v13 }
 0x238   :  { %v7160_v2 = vpop.eup %7159  ;;  %7185 = vrcp.f32 %v2480_v36  ;;  %v2481_v7 = vadd.f32 1.0, %v7158_v8  ;;  %v6006_v9 = vmul.f32 -1.442695, %v2233_v45 }
 0x239   :  { %v7162_v37 = vpop.eup %7161  ;;  %7187 = vpow2.f32 %v6005_v6  ;;  %v8680_v56 = vpack.c.bf16 %v7160_v2, %v7152_v47 }
 0x23a   :  { %v7164_v11 = vpop.eup %7163  ;;  %7189 = vrcp.f32 %v2481_v7  ;;  %v2482_v18 = vadd.f32 1.0, %v7162_v37 }
 0x23b   :  { %v7166_v60 = vpop.eup %7165  ;;  %7191 = vpow2.f32 %v6006_v9  ;;  %3534 = vmatprep.mubr.bf16.mxu0 %v8680_v56  ;;  %3727 = vmatprep.mubr.bf16.mxu1 %v8680_v56  ;;  %v2483_v15 = vadd.f32 1.0, %v7164_v11 }
 0x23c   :  { %v7168_v55 = vpop.eup %7167  ;;  %7193 = vrcp.f32 %v2482_v18 }
 0x23d   :  { %v7170_v12 = vpop.eup %7169  ;;  %v2484_v24 = vadd.f32 1.0, %v7168_v55  ;;  %7195 = vrcp.f32 %v2483_v15 }
 0x23e   :  { %v7172_v22 = vpop.eup %7171  ;;  %3535 = vmatmul.mubr.bf16.gmra.mxu0 %v8678_v34  ;;  %3728 = vmatmul.mubr.bf16.gmra.mxu1 %v8678_v34 }
 0x23f   :  { %v7174_v27 = vpop.eup %7173  ;;  %v2485_v32 = vadd.f32 1.0, %v7172_v22 }
 0x240   :  { %v7176_v43 = vpop.eup %7175  ;;  %v8686_v41 = vpack.c.bf16 %v7174_v27, %v7166_v60 }
 0x241   :  { %v7178_v20 = vpop.eup %7177  ;;  %7197 = vrcp.f32 %v2485_v32  ;;  %v2486_v19 = vadd.f32 1.0, %v7176_v43 }
 0x242   :  { %v7180_v58 = vpop.eup %7179  ;;  %7199 = vrcp.f32 %v2484_v24  ;;  %v8688_v30 = vpack.c.bf16 %v7178_v20, %v7170_v12 }
 0x243   :  { %v7182_v13 = vpop.eup %7181  ;;  %7201 = vrcp.f32 %v2486_v19  ;;  %v2487_v57 = vadd.f32 1.0, %v7180_v58 }
 0x244   :  { %v7184_v23 = vpop.eup %7183  ;;  %3544 = vmatprep.mubr.bf16.mxu0 %v8688_v30  ;;  %3737 = vmatprep.mubr.bf16.mxu1 %v8688_v30 }
 0x245   :  { %v7186_v35 = vpop.eup %7185  ;;  %v2488_v1 = vadd.f32 1.0, %v7184_v23  ;;  %7203 = vrcp.f32 %v2487_v57 }
 0x246   :  { %v7188_v50 = vpop.eup %7187  ;;  %3545 = vmatmul.mubr.bf16.gmra.mxu0 %v8686_v41  ;;  %3738 = vmatmul.mubr.bf16.gmra.mxu1 %v8686_v41 }
 0x247   :  { %v7190_v48 = vpop.eup %7189  ;;  %v2489_v29 = vadd.f32 1.0, %v7188_v50 }
 0x248   :  { %v7192_v47 = vpop.eup %7191  ;;  %v8694_v62 = vpack.c.bf16 %v7190_v48, %v7182_v13 }
 0x249   :  { %v7194_v63 = vpop.eup %7193  ;;  %7205 = vrcp.f32 %v2489_v29  ;;  %v2490_v54 = vadd.f32 1.0, %v7192_v47 }
 0x24a   :  { %7207 = vrcp.f32 %v2488_v1  ;;  %v8696_v59 = vpack.c.bf16 %v7194_v63, %v7186_v35  ;;  %v7196_v10 = vpop.eup %7195 }
 0x24b   :  { %7209 = vrcp.f32 %v2490_v54 }
 0x24c   :  { %3554 = vmatprep.mubr.bf16.mxu0 %v8696_v59  ;;  %3747 = vmatprep.mubr.bf16.mxu1 %v8696_v59 }
 0x24e   :  { %v7198_v26 = vpop.eup %7197  ;;  %3555 = vmatmul.mubr.bf16.gmra.mxu0 %v8694_v62  ;;  %3748 = vmatmul.mubr.bf16.gmra.mxu1 %v8694_v62 }
 0x24f   :  { %v7200_v51 = vpop.eup %7199  ;;  %v8702_v36 = vpack.c.bf16 %v7198_v26, %v7196_v10 }
 0x250   :  { %v7202_v45 = vpop.eup %7201 }
 0x251   :  { %v8704_v8 = vpack.c.bf16 %v7202_v45, %v7200_v51 }
 0x252   :  { %v7204_v6 = vpop.eup %7203 }
 0x253   :  { %3564 = vmatprep.mubr.bf16.mxu0 %v8704_v8  ;;  %3757 = vmatprep.mubr.bf16.mxu1 %v8704_v8 }
 0x256   :  { %v7206_v2 = vpop.eup %7205  ;;  %3565 = vmatmul.mubr.bf16.gmra.mxu0 %v8702_v36  ;;  %3758 = vmatmul.mubr.bf16.gmra.mxu1 %v8702_v36 }
 0x257   :  { %v7208_v7 = vpop.eup %7207  ;;  %v8710_v9 = vpack.c.bf16 %v7206_v2, %v7204_v6 }
 0x258   :  { %v7210_v37 = vpop.eup %7209 }
 0x259   :  { %v8712_v11 = vpack.c.bf16 %v7210_v37, %v7208_v7 }
 0x25b   :  { %3574 = vmatprep.mubr.bf16.mxu0 %v8712_v11  ;;  %3767 = vmatprep.mubr.bf16.mxu1 %v8712_v11 }
 0x25e   :  { %3575 = vmatmul.mubr.bf16.gmra.mxu0 %v8710_v9  ;;  %3768 = vmatmul.mubr.bf16.gmra.mxu1 %v8710_v9 }
 0x25f   :  { %3810 = vmatprep.mubr.bf16.mxu0 %v8531_v61  ;;  %4003 = vmatprep.mubr.bf16.mxu1 %v8531_v61 }
 0x266   :  { %3811 = vmatmul.mubr.bf16.vlgmr.msra.gmra.mxu0 %v8527_v52  ;;  %4004 = vmatmul.mubr.bf16.vlgmr.msra.gmra.mxu1 %v8527_v52  ;;  %v9792_v52 = vld [vmem:[#allocation15_spill] sm:$0xff] }
 0x267   :  { %3820 = vmatprep.mubr.bf16.mxu0 %v8544_v17  ;;  %4011 = vmatprep.mubr.bf16.mxu1 %v8544_v17  ;;  %v2791_v61 = vsub.s32 2, %v9792_v52  ;;  %v2795_v17 = vsub.s32 3, %v9792_v52 }
 0x26e   :  { %3821 = vmatmul.mubr.bf16.gmra.mxu0 %v8541_v53  ;;  %4012 = vmatmul.mubr.bf16.gmra.mxu1 %v8541_v53  ;;  %v2779_v53 = vld [vmem:[%s9723_s4] sm:$0xff] }
 0x26f   :  { %3830 = vmatprep.mubr.bf16.mxu0 %v8559_v31  ;;  %4019 = vmatprep.mubr.bf16.mxu1 %v8559_v31 }
 0x276   :  { %3831 = vmatmul.mubr.bf16.gmra.mxu0 %v8555_v42  ;;  %4020 = vmatmul.mubr.bf16.gmra.mxu1 %v8555_v42  ;;  %v9793_v42 = vsub.s32 0, %v9792_v52 }
 0x277   :  { %3840 = vmatprep.mubr.bf16.mxu0 %v8573_v16  ;;  %4027 = vmatprep.mubr.bf16.mxu1 %v8573_v16  ;;  %v9794_v16 = vsub.s32 1, %v9792_v52 }
 0x278   :  { %v8759_v31 = vrot.slane %v2779_v53, %v9793_v42 }
 0x27e   :  { %3841 = vmatmul.mubr.bf16.gmra.mxu0 %v8569_v44  ;;  %4028 = vmatmul.mubr.bf16.gmra.mxu1 %v8569_v44  ;;  %v8761_v44 = vrot.slane %v2779_v53, %v2791_v61 }
 0x27f   :  { %3850 = vmatprep.mubr.bf16.mxu0 %v8588_v5  ;;  %4035 = vmatprep.mubr.bf16.mxu1 %v8588_v5  ;;  %v8767_v5 = vrot.slane %v2779_v53, %v2795_v17 }
 0x286   :  { %3851 = vmatmul.mubr.bf16.gmra.mxu0 %v8585_v38  ;;  %4036 = vmatmul.mubr.bf16.gmra.mxu1 %v8585_v38  ;;  %v8765_v38 = vrot.slane %v2779_v53, %v9794_v16 }
 0x287   :  { %3860 = vmatprep.mubr.bf16.mxu0 %v8602_v14  ;;  %4043 = vmatprep.mubr.bf16.mxu1 %v8602_v14 }
 0x28e   :  { %3861 = vmatmul.mubr.bf16.gmra.mxu0 %v8598_v40  ;;  %4044 = vmatmul.mubr.bf16.gmra.mxu1 %v8598_v40 }
 0x28f   :  { %3870 = vmatprep.mubr.bf16.mxu0 %v8615_v3  ;;  %4051 = vmatprep.mubr.bf16.mxu1 %v8615_v3 }
 0x296   :  { %3871 = vmatmul.mubr.bf16.gmra.mxu0 %v8611_v39  ;;  %4052 = vmatmul.mubr.bf16.gmra.mxu1 %v8611_v39 }
 0x297   :  { %3880 = vmatprep.mubr.bf16.mxu0 %v8629_v25  ;;  %4059 = vmatprep.mubr.bf16.mxu1 %v8629_v25 }
 0x29e   :  { %3881 = vmatmul.mubr.bf16.gmra.mxu0 %v8625_v49  ;;  %4060 = vmatmul.mubr.bf16.gmra.mxu1 %v8625_v49 }
 0x29f   :  { %3890 = vmatprep.mubr.bf16.mxu0 %v8644_v28  ;;  %4067 = vmatprep.mubr.bf16.mxu1 %v8644_v28 }
 0x2a4   :  { %v3426_v40 = vpop.f32.mrf.mxu0  ;;  %v3619_v14 = vpop.f32.mrf.mxu1 }
 0x2a5   :  { %v3427_v39 = vadd.f32 %v3426_v40, %v8759_v31  ;;  %v3620_v3 = vadd.f32 %v3619_v14, %v8761_v44 }
 0x2a6   :  { %3891 = vmatmul.mubr.bf16.gmra.mxu0 %v8641_v21  ;;  %4068 = vmatmul.mubr.bf16.gmra.mxu1 %v8641_v21  ;;  %v3428_v49 = vpop.f32.mrf.mxu0  ;;  %v3621_v25 = vpop.f32.mrf.mxu1 }
 0x2a7   :  { %v6119_v28 = vmul.f32 -1.442695, %v3427_v39  ;;  %v6121_v18 = vmul.f32 -1.442695, %v3620_v3  ;;  %3900 = vmatprep.mubr.bf16.mxu0 %v8658_v4  ;;  %4075 = vmatprep.mubr.bf16.mxu1 %v8658_v4  ;;  %v3429_v60 = vadd.f32 %v3428_v49, %v8765_v38  ;;  %v3622_v55 = vadd.f32 %v3621_v25, %v8767_v5 }
 0x2a8   :  { %v3430_v15 = vpop.f32.mrf.mxu0  ;;  %v3623_v12 = vpop.f32.mrf.mxu1 }
 0x2a9   :  { %7211 = vpow2.f32 %v6119_v28  ;;  %v6120_v22 = vmul.f32 -1.442695, %v3429_v60  ;;  %v6122_v24 = vmul.f32 -1.442695, %v3622_v55  ;;  %v3431_v27 = vadd.f32 %v3430_v15, %v8759_v31 }
 0x2aa   :  { %7213 = vpow2.f32 %v6121_v18  ;;  %v3624_v21 = vadd.f32 %v3623_v12, %v8761_v44  ;;  %v3432_v32 = vpop.f32.mrf.mxu0  ;;  %v3625_v43 = vpop.f32.mrf.mxu1 }
 0x2ab   :  { %7215 = vpow2.f32 %v6120_v22  ;;  %v6126_v20 = vmul.f32 -1.442695, %v3431_v27  ;;  %v3433_v4 = vadd.f32 %v3432_v32, %v8765_v38  ;;  %v3626_v19 = vadd.f32 %v3625_v43, %v8767_v5 }
 0x2ac   :  { %7217 = vpow2.f32 %v6122_v24  ;;  %v6128_v58 = vmul.f32 -1.442695, %v3624_v21  ;;  %v3436_v13 = vpop.f32.mrf.mxu0  ;;  %v3629_v23 = vpop.f32.mrf.mxu1 }
 0x2ad   :  { %7219 = vpow2.f32 %v6126_v20  ;;  %v6127_v57 = vmul.f32 -1.442695, %v3433_v4  ;;  %v6129_v35 = vmul.f32 -1.442695, %v3626_v19  ;;  %v3437_v50 = vadd.f32 %v3436_v13, %v8759_v31 }
 0x2ae   :  { %7221 = vpow2.f32 %v6128_v58  ;;  %v3630_v1 = vadd.f32 %v3629_v23, %v8761_v44  ;;  %3901 = vmatmul.mubr.bf16.gmra.mxu0 %v8654_v46  ;;  %4076 = vmatmul.mubr.bf16.gmra.mxu1 %v8654_v46  ;;  %v3438_v48 = vpop.f32.mrf.mxu0  ;;  %v3631_v29 = vpop.f32.mrf.mxu1 }
 0x2af   :  { %7223 = vpow2.f32 %v6127_v57  ;;  %v6133_v47 = vmul.f32 -1.442695, %v3437_v50  ;;  %3910 = vmatprep.mubr.bf16.mxu0 %v8671_v33  ;;  %4083 = vmatprep.mubr.bf16.mxu1 %v8671_v33  ;;  %v3439_v63 = vadd.f32 %v3438_v48, %v8765_v38  ;;  %v3632_v54 = vadd.f32 %v3631_v29, %v8767_v5 }
 0x2b0   :  { %7225 = vpow2.f32 %v6129_v35  ;;  %v6135_v10 = vmul.f32 -1.442695, %v3630_v1  ;;  %v3440_v26 = vpop.f32.mrf.mxu0  ;;  %v3633_v51 = vpop.f32.mrf.mxu1 }
 0x2b1   :  { %7227 = vpow2.f32 %v6133_v47  ;;  %v6134_v45 = vmul.f32 -1.442695, %v3439_v63  ;;  %v6136_v6 = vmul.f32 -1.442695, %v3632_v54  ;;  %v3441_v46 = vadd.f32 %v3440_v26, %v8759_v31 }
 0x2b2   :  { %7229 = vpow2.f32 %v6135_v10  ;;  %v3634_v2 = vadd.f32 %v3633_v51, %v8761_v44  ;;  %v3442_v7 = vpop.f32.mrf.mxu0  ;;  %v3635_v37 = vpop.f32.mrf.mxu1 }
 0x2b3   :  { %7231 = vpow2.f32 %v6134_v45  ;;  %v6140_v33 = vmul.f32 -1.442695, %v3441_v46  ;;  %v3443_v61 = vadd.f32 %v3442_v7, %v8765_v38  ;;  %v3636_v53 = vadd.f32 %v3635_v37, %v8767_v5 }
 0x2b4   :  { %7233 = vpow2.f32 %v6136_v6  ;;  %v6142_v17 = vmul.f32 -1.442695, %v3634_v2  ;;  %v3446_v42 = vpop.f32.mrf.mxu0  ;;  %v8793_v16 = vpop.f32.mrf.mxu1 }
 0x2b5   :  { %7235 = vpow2.f32 %v6140_v33  ;;  %v6141_v40 = vmul.f32 -1.442695, %v3443_v61  ;;  %v6143_v14 = vmul.f32 -1.442695, %v3636_v53  ;;  %v3447_v26 = vadd.f32 %v3446_v42, %v8759_v31 }
 0x2b6   :  { %v7212_v39 = vpop.eup %7211  ;;  %7237 = vpow2.f32 %v6142_v17  ;;  %3911 = vmatmul.mubr.bf16.gmra.mxu0 %v8667_v0  ;;  %4084 = vmatmul.mubr.bf16.gmra.mxu1 %v8667_v0  ;;  %v3448_v3 = vpop.f32.mrf.mxu0  ;;  %v3640_v6 = vadd.f32 %v8793_v16, %v8761_v44 }
 0x2b7   :  { %v8797_v49 = vpop.f32.mrf.mxu1  ;;  %v7214_v25 = vpop.eup %7213  ;;  %v4804_v28 = vadd.f32 1.0, %v7212_v39  ;;  %7239 = vpow2.f32 %v6141_v40  ;;  %3920 = vmatprep.mubr.bf16.mxu0 %v8680_v56  ;;  %4091 = vmatprep.mubr.bf16.mxu1 %v8680_v56  ;;  %v3449_v37 = vadd.f32 %v3448_v3, %v8765_v38  ;;  %v6147_v40 = vmul.f32 -1.442695, %v3447_v26 }
 0x2b8   :  { %v7216_v18 = vpop.eup %7215  ;;  %v4806_v60 = vadd.f32 1.0, %v7214_v25  ;;  %7241 = vpow2.f32 %v6143_v14  ;;  %v3450_v55 = vpop.f32.mrf.mxu0  ;;  %v3642_v53 = vadd.f32 %v8797_v49, %v8767_v5  ;;  %v6149_v25 = vmul.f32 -1.442695, %v3640_v6 }
 0x2b9   :  { %v8801_v15 = vpop.f32.mrf.mxu1  ;;  %v7218_v12 = vpop.eup %7217  ;;  %7243 = vrcp.f32 %v4804_v28  ;;  %v4805_v22 = vadd.f32 1.0, %v7216_v18  ;;  %v3451_v16 = vadd.f32 %v3450_v55, %v8759_v31 }
 0x2ba   :  { %v7220_v0 = vpop.eup %7219  ;;  %7245 = vrcp.f32 %v4806_v60  ;;  %v4807_v24 = vadd.f32 1.0, %v7218_v12  ;;  %v8803_v27 = vpop.f32.mrf.mxu0  ;;  %v3644_v28 = vadd.f32 %v8801_v15, %v8761_v44  ;;  %v6148_v60 = vmul.f32 -1.442695, %v3449_v37 }
 0x2bb   :  { %v8805_v21 = vpop.f32.mrf.mxu1  ;;  %v7222_v32 = vpop.eup %7221  ;;  %7247 = vrcp.f32 %v4805_v22  ;;  %v4811_v43 = vadd.f32 1.0, %v7220_v0  ;;  %v3453_v55 = vadd.f32 %v8803_v27, %v8765_v38  ;;  %v6150_v12 = vmul.f32 -1.442695, %v3642_v53 }
 0x2bc   :  { %v7224_v56 = vpop.eup %7223  ;;  %7249 = vrcp.f32 %v4807_v24  ;;  %v4813_v20 = vadd.f32 1.0, %v7222_v32  ;;  %v8807_v4 = vpop.f32.mrf.mxu0  ;;  %v3646_v22 = vadd.f32 %v8805_v21, %v8767_v5  ;;  %v6154_v32 = vmul.f32 -1.442695, %v3451_v16 }
 0x2bd   :  { %v8809_v19 = vpop.f32.mrf.mxu1  ;;  %v7226_v58 = vpop.eup %7225  ;;  %7251 = vrcp.f32 %v4811_v43  ;;  %v4812_v13 = vadd.f32 1.0, %v7224_v56  ;;  %v3457_v27 = vadd.f32 %v8807_v4, %v8759_v31 }
 0x2be   :  { %v7228_v23 = vpop.eup %7227  ;;  %7253 = vrcp.f32 %v4813_v20  ;;  %v4814_v57 = vadd.f32 1.0, %v7226_v58  ;;  %3921 = vmatmul.mubr.bf16.gmra.mxu0 %v8678_v34  ;;  %4092 = vmatmul.mubr.bf16.gmra.mxu1 %v8678_v34  ;;  %v8813_v35 = vpop.f32.mrf.mxu0  ;;  %v3650_v56 = vadd.f32 %v8809_v19, %v8761_v44  ;;  %v6157_v4 = vmul.f32 -1.442695, %v3646_v22 }
 0x2bf   :  { %v8815_v50 = vpop.f32.mrf.mxu1  ;;  %v7230_v1 = vpop.eup %7229  ;;  %7255 = vrcp.f32 %v4812_v13  ;;  %v4818_v48 = vadd.f32 1.0, %v7228_v23  ;;  %3930 = vmatprep.mubr.bf16.mxu0 %v8688_v30  ;;  %4099 = vmatprep.mubr.bf16.mxu1 %v8688_v30  ;;  %v6155_v13 = vmul.f32 -1.442695, %v3453_v55  ;;  %v3459_v23 = vadd.f32 %v8813_v35, %v8765_v38 }
 0x2c0   :  { %v7232_v29 = vpop.eup %7231  ;;  %7257 = vrcp.f32 %v4814_v57  ;;  %v4820_v47 = vadd.f32 1.0, %v7230_v1  ;;  %v8819_v63 = vpop.f32.mrf.mxu0  ;;  %v3652_v1 = vadd.f32 %v8815_v50, %v8767_v5  ;;  %v6163_v35 = vmul.f32 -1.442695, %v3650_v56 }
 0x2c1   :  { %v8821_v54 = vpop.f32.mrf.mxu1  ;;  %v7234_v10 = vpop.eup %7233  ;;  %7259 = vrcp.f32 %v4818_v48  ;;  %v4819_v34 = vadd.f32 1.0, %v7232_v29  ;;  %v6162_v6 = vmul.f32 -1.442695, %v3459_v23 }
 0x2c2   :  { %v7236_v51 = vpop.eup %7235  ;;  %7261 = vrcp.f32 %v4820_v47  ;;  %v4821_v45 = vadd.f32 1.0, %v7234_v10  ;;  %v8826_v46 = vpop.f32.mrf.mxu0  ;;  %v6161_v47 = vmul.f32 -1.442695, %v3457_v27  ;;  %v3461_v10 = vadd.f32 %v8819_v63, %v8759_v31 }
 0x2c3   :  { %v8828_v30 = vpop.f32.mrf.mxu1  ;;  %v7238_v2 = vpop.eup %7237  ;;  %7263 = vrcp.f32 %v4819_v34  ;;  %v4825_v7 = vadd.f32 1.0, %v7236_v51  ;;  %v3654_v26 = vadd.f32 %v8821_v54, %v8761_v44  ;;  %v3463_v63 = vadd.f32 %v8826_v46, %v8765_v38 }
 0x2c4   :  { %v7240_v33 = vpop.eup %7239  ;;  %7265 = vrcp.f32 %v4821_v45  ;;  %v4827_v61 = vadd.f32 1.0, %v7238_v2  ;;  %v6164_v2 = vmul.f32 -1.442695, %v3652_v1 }
 0x2c5   :  { %v7242_v17 = vpop.eup %7241  ;;  %7267 = vrcp.f32 %v4825_v7  ;;  %v4826_v42 = vadd.f32 1.0, %v7240_v33  ;;  %v3656_v7 = vadd.f32 %v8828_v30, %v8767_v5  ;;  %v6170_v53 = vmul.f32 -1.442695, %v3654_v26 }
 0x2c6   :  { %v7244_v14 = vpop.eup %7243  ;;  %7269 = vrcp.f32 %v4827_v61  ;;  %v4828_v39 = vadd.f32 1.0, %v7242_v17  ;;  %v8836_v3 = vpop.f32.mrf.mxu0  ;;  %3931 = vmatmul.mubr.bf16.gmra.mxu0 %v8686_v41  ;;  %4100 = vmatmul.mubr.bf16.gmra.mxu1 %v8686_v41  ;;  %v6168_v61 = vmul.f32 -1.442695, %v3461_v10  ;;  %v6169_v30 = vmul.f32 -1.442695, %v3463_v63 }
 0x2c7   :  { %v8838_v18 = vpop.f32.mrf.mxu1  ;;  %v7246_v49 = vpop.eup %7245  ;;  %5476 = vst [vmem:[#allocation10] sm:$0xff] %v7244_v14  ;;  %7271 = vrcp.f32 %v4826_v42  ;;  %3940 = vmatprep.mubr.bf16.mxu0 %v8696_v59  ;;  %4107 = vmatprep.mubr.bf16.mxu1 %v8696_v59  ;;  %v6156_v59 = vmul.f32 -1.442695, %v3644_v28  ;;  %v6171_v16 = vmul.f32 -1.442695, %v3656_v7 }
 0x2c8   :  { %v7248_v15 = vpop.eup %7247  ;;  %5478 = vst [vmem:[#allocation10 + $0x10] sm:$0xff] %v7246_v49  ;;  %7273 = vrcp.f32 %v4828_v39  ;;  %v8848_v0 = vpop.f32.mrf.mxu0 }
 0x2c9   :  { %v8850_v41 = vpop.f32.mrf.mxu1  ;;  %v7250_v24 = vpop.eup %7249  ;;  %5477 = vst [vmem:[#allocation10 + $0x8] sm:$0xff] %v7248_v15  ;;  %7275 = vpow2.f32 %v6147_v40 }
 0x2ca   :  { %v7252_v43 = vpop.eup %7251  ;;  %5479 = vst [vmem:[#allocation10 + $0x18] sm:$0xff] %v7250_v24  ;;  %7277 = vpow2.f32 %v6149_v25  ;;  %v8856_v20 = vpop.f32.mrf.mxu0 }
 0x2cb   :  { %v8858_v21 = vpop.f32.mrf.mxu1  ;;  %v7254_v58 = vpop.eup %7253  ;;  %5483 = vst [vmem:[#allocation10 + $0x38] sm:$0xff] %v7252_v43  ;;  %7279 = vpow2.f32 %v6148_v60 }
 0x2cc   :  { %v7256_v57 = vpop.eup %7255  ;;  %5485 = vst [vmem:[#allocation10 + $0x48] sm:$0xff] %v7254_v58  ;;  %7281 = vpow2.f32 %v6150_v12  ;;  %v8864_v48 = vpop.f32.mrf.mxu0 }
 0x2cd   :  { %v8866_v19 = vpop.f32.mrf.mxu1  ;;  %v7258_v29 = vpop.eup %7257  ;;  %5484 = vst [vmem:[#allocation10 + $0x40] sm:$0xff] %v7256_v57  ;;  %7283 = vpow2.f32 %v6154_v32 }
 0x2ce   :  { %v7260_v34 = vpop.eup %7259  ;;  %5486 = vst [vmem:[#allocation10 + $0x50] sm:$0xff] %v7258_v29  ;;  %7285 = vpow2.f32 %v6156_v59  ;;  %v8872_v51 = vpop.f32.mrf.mxu0  ;;  %3941 = vmatmul.mubr.bf16.gmra.mxu0 %v8694_v62  ;;  %4108 = vmatmul.mubr.bf16.gmra.mxu1 %v8694_v62 }
 0x2cf   :  { %v8874_v50 = vpop.f32.mrf.mxu1  ;;  %v7262_v45 = vpop.eup %7261  ;;  %5490 = vst [vmem:[#allocation10 + $0x70] sm:$0xff] %v7260_v34  ;;  %7287 = vpow2.f32 %v6155_v13  ;;  %3950 = vmatprep.mubr.bf16.mxu0 %v8704_v8  ;;  %4115 = vmatprep.mubr.bf16.mxu1 %v8704_v8 }
 0x2d0   :  { %v7264_v54 = vpop.eup %7263  ;;  %5492 = vst [vmem:[#allocation10 + $0x80] sm:$0xff] %v7262_v45  ;;  %7289 = vpow2.f32 %v6157_v4  ;;  %v8884_v37 = vpop.f32.mrf.mxu0 }
 0x2d1   :  { %v8886_v62 = vpop.f32.mrf.mxu1  ;;  %v7266_v33 = vpop.eup %7265  ;;  %5491 = vst [vmem:[#allocation10 + $0x78] sm:$0xff] %v7264_v54  ;;  %7291 = vpow2.f32 %v6161_v47 }
 0x2d2   :  { %v7268_v46 = vpop.eup %7267  ;;  %5493 = vst [vmem:[#allocation10 + $0x88] sm:$0xff] %v7266_v33  ;;  %7293 = vpow2.f32 %v6163_v35  ;;  %v8888_v8 = vpop.f32.mrf.mxu0 }
 0x2d3   :  { %v8890_v17 = vpop.f32.mrf.mxu1  ;;  %v7270_v42 = vpop.eup %7269  ;;  %5497 = vst [vmem:[#allocation10 + $0xa8] sm:$0xff] %v7268_v46  ;;  %7295 = vpow2.f32 %v6162_v6  ;;  %v3467_v46 = vadd.f32 %v8836_v3, %v8759_v31  ;;  %v3662_v3 = vadd.f32 %v8850_v41, %v8767_v5 }
 0x2d4   :  { %v7272_v40 = vpop.eup %7271  ;;  %5499 = vst [vmem:[#allocation10 + $0xb8] sm:$0xff] %v7270_v42  ;;  %7297 = vpow2.f32 %v6164_v2  ;;  %v8892_v14 = vpop.f32.mrf.mxu0 }
 0x2d5   :  { %v8894_v39 = vpop.f32.mrf.mxu1  ;;  %v7274_v25 = vpop.eup %7273  ;;  %5498 = vst [vmem:[#allocation10 + $0xb0] sm:$0xff] %v7272_v40  ;;  %7299 = vpow2.f32 %v6168_v61 }
 0x2d6   :  { %v7276_v28 = vpop.eup %7275  ;;  %5500 = vst [vmem:[#allocation10 + $0xc0] sm:$0xff] %v7274_v25  ;;  %7301 = vpow2.f32 %v6170_v53  ;;  %v8896_v49 = vpop.f32.mrf.mxu0  ;;  %3951 = vmatmul.mubr.bf16.gmra.mxu0 %v8702_v36  ;;  %4116 = vmatmul.mubr.bf16.gmra.mxu1 %v8702_v36 }
 0x2d7   :  { %v8898_v60 = vpop.f32.mrf.mxu1  ;;  %v7278_v55 = vpop.eup %7277  ;;  %v4832_v15 = vadd.f32 1.0, %v7276_v28  ;;  %7303 = vpow2.f32 %v6169_v30  ;;  %3960 = vmatprep.mubr.bf16.mxu0 %v8712_v11  ;;  %4123 = vmatprep.mubr.bf16.mxu1 %v8712_v11  ;;  %v3469_v28 = vadd.f32 %v8848_v0, %v8765_v38 }
 0x2d8   :  { %v7280_v12 = vpop.eup %7279  ;;  %v4834_v22 = vadd.f32 1.0, %v7278_v55  ;;  %7305 = vpow2.f32 %v6171_v16  ;;  %v8904_v24 = vpop.f32.mrf.mxu0 }
 0x2d9   :  { %v8906_v32 = vpop.f32.mrf.mxu1  ;;  %v7282_v27 = vpop.eup %7281  ;;  %7307 = vrcp.f32 %v4832_v15  ;;  %v4833_v43 = vadd.f32 1.0, %v7280_v12 }
 0x2da   :  { %v7284_v59 = vpop.eup %7283  ;;  %7309 = vrcp.f32 %v4834_v22  ;;  %v4835_v36 = vadd.f32 1.0, %v7282_v27  ;;  %v8908_v56 = vpop.f32.mrf.mxu0 }
 0x2db   :  { %v8910_v58 = vpop.f32.mrf.mxu1  ;;  %v7286_v13 = vpop.eup %7285  ;;  %7311 = vrcp.f32 %v4833_v43  ;;  %v4839_v11 = vadd.f32 1.0, %v7284_v59  ;;  %v6175_v43 = vmul.f32 -1.442695, %v3467_v46  ;;  %v3471_v59 = vadd.f32 %v8856_v20, %v8759_v31 }
 0x2dc   :  { %v7288_v23 = vpop.eup %7287  ;;  %7313 = vrcp.f32 %v4835_v36  ;;  %v4841_v57 = vadd.f32 1.0, %v7286_v13  ;;  %v8912_v4 = vpop.f32.mrf.mxu0  ;;  %v6178_v20 = vmul.f32 -1.442695, %v3662_v3  ;;  %v3481_v3 = vadd.f32 %v8888_v8, %v8759_v31 }
 0x2dd   :  { %v8914_v1 = vpop.f32.mrf.mxu1  ;;  %v7290_v29 = vpop.eup %7289  ;;  %7315 = vrcp.f32 %v4839_v11  ;;  %v4840_v47 = vadd.f32 1.0, %v7288_v23  ;;  %v3664_v11 = vadd.f32 %v8858_v21, %v8761_v44 }
 0x2de   :  { %v7292_v10 = vpop.eup %7291  ;;  %7317 = vrcp.f32 %v4841_v57  ;;  %v4842_v34 = vadd.f32 1.0, %v7290_v29  ;;  %v8916_v35 = vpop.f32.mrf.mxu0  ;;  %3961 = vmatmul.mubr.bf16.gmra.mxu0 %v8710_v9  ;;  %4124 = vmatmul.mubr.bf16.gmra.mxu1 %v8710_v9  ;;  %v3660_v9 = vadd.f32 %v8838_v18, %v8761_v44  ;;  %v6176_v29 = vmul.f32 -1.442695, %v3469_v28 }
 0x2df   :  { %v8918_v26 = vpop.f32.mrf.mxu1  ;;  %v7294_v45 = vpop.eup %7293  ;;  %7319 = vrcp.f32 %v4840_v47  ;;  %v4846_v6 = vadd.f32 1.0, %v7292_v10  ;;  %v3473_v47 = vadd.f32 %v8864_v48, %v8765_v38  ;;  %v6184_v48 = vmul.f32 -1.442695, %v3664_v11 }
 0x2e0   :  { %v7296_v63 = vpop.eup %7295  ;;  %7321 = vrcp.f32 %v4842_v34  ;;  %v4848_v54 = vadd.f32 1.0, %v7294_v45  ;;  %v8922_v2 = vpop.f32.mrf.mxu0  ;;  %v6177_v13 = vmul.f32 -1.442695, %v3660_v9  ;;  %v3666_v34 = vadd.f32 %v8866_v19, %v8767_v5 }
 0x2e1   :  { %v8924_v7 = vpop.f32.mrf.mxu1  ;;  %v7298_v33 = vpop.eup %7297  ;;  %7323 = vrcp.f32 %v4846_v6  ;;  %v4847_v61 = vadd.f32 1.0, %v7296_v63  ;;  %v6182_v63 = vmul.f32 -1.442695, %v3471_v59  ;;  %v3479_v9 = vadd.f32 %v8884_v37, %v8765_v38 }
 0x2e2   :  { %v7300_v53 = vpop.eup %7299  ;;  %7325 = vrcp.f32 %v4848_v54  ;;  %v4849_v42 = vadd.f32 1.0, %v7298_v33  ;;  %v8930_v30 = vpop.f32.mrf.mxu0  ;;  %v3477_v54 = vadd.f32 %v8872_v51, %v8759_v31  ;;  %v6185_v51 = vmul.f32 -1.442695, %v3666_v34 }
 0x2e3   :  { %v8932_v40 = vpop.f32.mrf.mxu1  ;;  %v7302_v16 = vpop.eup %7301  ;;  %7327 = vrcp.f32 %v4847_v61  ;;  %v4853_v25 = vadd.f32 1.0, %v7300_v53  ;;  %v3670_v61 = vadd.f32 %v8874_v50, %v8761_v44  ;;  %v3676_v11 = vadd.f32 %v8894_v39, %v8767_v5 }
 0x2e4   :  { %v7304_v55 = vpop.eup %7303  ;;  %7329 = vrcp.f32 %v4849_v42  ;;  %v4855_v15 = vadd.f32 1.0, %v7302_v16  ;;  %v8938_v12 = vpop.f32.mrf.mxu0  ;;  %v6183_v42 = vmul.f32 -1.442695, %v3473_v47  ;;  %v6196_v47 = vmul.f32 -1.442695, %v3481_v3 }
 0x2e5   :  { %v8940_v22 = vpop.f32.mrf.mxu1  ;;  %v7306_v18 = vpop.eup %7305  ;;  %7331 = vrcp.f32 %v4853_v25  ;;  %v4854_v27 = vadd.f32 1.0, %v7304_v55  ;;  %v3672_v25 = vadd.f32 %v8886_v62, %v8767_v5  ;;  %v6191_v37 = vmul.f32 -1.442695, %v3670_v61 }
 0x2e6   :  { %v7308_v36 = vpop.eup %7307  ;;  %7333 = vrcp.f32 %v4855_v15  ;;  %v4856_v0 = vadd.f32 1.0, %v7306_v18  ;;  %v8946_v23 = vpop.f32.mrf.mxu0  ;;  %v6189_v15 = vmul.f32 -1.442695, %v3477_v54  ;;  %v6199_v54 = vmul.f32 -1.442695, %v3676_v11 }
 0x2e7   :  { %v8948_v41 = vpop.f32.mrf.mxu1  ;;  %v7310_v57 = vpop.eup %7309  ;;  %5504 = vst [vmem:[#allocation10 + $0xe0] sm:$0xff] %v7308_v36  ;;  %7335 = vrcp.f32 %v4854_v27  ;;  %v3674_v27 = vadd.f32 %v8890_v17, %v8761_v44  ;;  %v6190_v36 = vmul.f32 -1.442695, %v3479_v9  ;;  %v6192_v8 = vmul.f32 -1.442695, %v3672_v25 }
 0x2e8   :  { %v7312_v10 = vpop.eup %7311  ;;  %5506 = vst [vmem:[#allocation10 + $0xf0] sm:$0xff] %v7310_v57  ;;  %7337 = vrcp.f32 %v4856_v0  ;;  %v8954_v45 = vpop.f32.mrf.mxu0  ;;  %v3483_v0 = vadd.f32 %v8892_v14, %v8765_v38 }
 0x2e9   :  { %v8956_v21 = vpop.f32.mrf.mxu1  ;;  %v7314_v6 = vpop.eup %7313  ;;  %5505 = vst [vmem:[#allocation10 + $0xe8] sm:$0xff] %v7312_v10  ;;  %7339 = vpow2.f32 %v6175_v43 }
 0x2ea   :  { %v7316_v33 = vpop.eup %7315  ;;  %5507 = vst [vmem:[#allocation10 + $0xf8] sm:$0xff] %v7314_v6  ;;  %7341 = vpow2.f32 %v6177_v13  ;;  %v8962_v46 = vpop.f32.mrf.mxu0  ;;  %v6197_v39 = vmul.f32 -1.442695, %v3483_v0 }
 0x2eb   :  { %v8964_v19 = vpop.f32.mrf.mxu1  ;;  %v7318_v53 = vpop.eup %7317  ;;  %5511 = vst [vmem:[#allocation10 + $0x118] sm:$0xff] %v7316_v33  ;;  %7343 = vpow2.f32 %v6176_v29 }
 0x2ec   :  { %v7320_v16 = vpop.eup %7319  ;;  %5513 = vst [vmem:[#allocation10 + $0x128] sm:$0xff] %v7318_v53  ;;  %7345 = vpow2.f32 %v6178_v20  ;;  %v8970_v28 = vpop.f32.mrf.mxu0  ;;  %v6198_v20 = vmul.f32 -1.442695, %v3674_v27 }
 0x2ed   :  { %v8972_v50 = vpop.f32.mrf.mxu1  ;;  %v7322_v55 = vpop.eup %7321  ;;  %5512 = vst [vmem:[#allocation10 + $0x120] sm:$0xff] %v7320_v16  ;;  %7347 = vpow2.f32 %v6182_v63 }
 0x2ee   :  { %v7324_v18 = vpop.eup %7323  ;;  %5514 = vst [vmem:[#allocation10 + $0x130] sm:$0xff] %v7322_v55  ;;  %7349 = vpow2.f32 %v6184_v48  ;;  %v8978_v43 = vpop.f32.mrf.mxu0 }
 0x2ef   :  { %v8980_v62 = vpop.f32.mrf.mxu1  ;;  %v7326_v59 = vpop.eup %7325  ;;  %5518 = vst [vmem:[#allocation10 + $0x150] sm:$0xff] %v7324_v18  ;;  %7351 = vpow2.f32 %v6183_v42 }
 0x2f0   :  { %v7328_v13 = vpop.eup %7327  ;;  %5520 = vst [vmem:[#allocation10 + $0x160] sm:$0xff] %v7326_v59  ;;  %7353 = vpow2.f32 %v6185_v51  ;;  %v8986_v57 = vpop.f32.mrf.mxu0 }
 0x2f1   :  { %v8988_v17 = vpop.f32.mrf.mxu1  ;;  %v7330_v29 = vpop.eup %7329  ;;  %5519 = vst [vmem:[#allocation10 + $0x158] sm:$0xff] %v7328_v13  ;;  %7355 = vpow2.f32 %v6189_v15 }
 0x2f2   :  { %v7332_v10 = vpop.eup %7331  ;;  %5521 = vst [vmem:[#allocation10 + $0x168] sm:$0xff] %v7330_v29  ;;  %7357 = vpow2.f32 %v6191_v37  ;;  %v8990_v14 = vpop.f32.mrf.mxu0 }
 0x2f3   :  { %v8992_v34 = vpop.f32.mrf.mxu1  ;;  %v7334_v6 = vpop.eup %7333  ;;  %5525 = vst [vmem:[#allocation10 + $0x188] sm:$0xff] %v7332_v10  ;;  %7359 = vpow2.f32 %v6190_v36 }
 0x2f4   :  { %v7336_v63 = vpop.eup %7335  ;;  %5527 = vst [vmem:[#allocation10 + $0x198] sm:$0xff] %v7334_v6  ;;  %7361 = vpow2.f32 %v6192_v8  ;;  %v8994_v33 = vpop.f32.mrf.mxu0 }
 0x2f5   :  { %v8996_v48 = vpop.f32.mrf.mxu1  ;;  %v7338_v61 = vpop.eup %7337  ;;  %5526 = vst [vmem:[#allocation10 + $0x190] sm:$0xff] %v7336_v63  ;;  %7363 = vpow2.f32 %v6196_v47 }
 0x2f6   :  { %v7340_v53 = vpop.eup %7339  ;;  %5528 = vst [vmem:[#allocation10 + $0x1a0] sm:$0xff] %v7338_v61  ;;  %7365 = vpow2.f32 %v6198_v20  ;;  %v8998_v42 = vpop.f32.mrf.mxu0 }
 0x2f7   :  { %v9000_v9 = vpop.f32.mrf.mxu1  ;;  %v7342_v16 = vpop.eup %7341  ;;  %v4860_v51 = vadd.f32 1.0, %v7340_v53  ;;  %7367 = vpow2.f32 %v6197_v39 }
 0x2f8   :  { %v7344_v25 = vpop.eup %7343  ;;  %v4862_v55 = vadd.f32 1.0, %v7342_v16  ;;  %7369 = vpow2.f32 %v6199_v54  ;;  %v9002_v15 = vpop.f32.mrf.mxu0 }
 0x2f9   :  { %v9004_v3 = vpop.f32.mrf.mxu1  ;;  %v7346_v18 = vpop.eup %7345  ;;  %7371 = vrcp.f32 %v4860_v51  ;;  %v4861_v37 = vadd.f32 1.0, %v7344_v25 }
 0x2fa   :  { %v7348_v27 = vpop.eup %7347  ;;  %7373 = vrcp.f32 %v4862_v55  ;;  %v4863_v59 = vadd.f32 1.0, %v7346_v18  ;;  %v9006_v36 = vpop.f32.mrf.mxu0 }
 0x2fb   :  { %v9008_v0 = vpop.f32.mrf.mxu1  ;;  %v7350_v13 = vpop.eup %7349  ;;  %7375 = vrcp.f32 %v4861_v37  ;;  %v4867_v8 = vadd.f32 1.0, %v7348_v27  ;;  %v3487_v37 = vadd.f32 %v8896_v49, %v8759_v31  ;;  %v3682_v49 = vadd.f32 %v8906_v32, %v8767_v5 }
 0x2fc   :  { %v7352_v11 = vpop.eup %7351  ;;  %7377 = vrcp.f32 %v4863_v59  ;;  %v4869_v29 = vadd.f32 1.0, %v7350_v13  ;;  %v9010_v47 = vpop.f32.mrf.mxu0 }
 0x2fd   :  { %v9012_v10 = vpop.f32.mrf.mxu1  ;;  %v7354_v20 = vpop.eup %7353  ;;  %7379 = vrcp.f32 %v4867_v8  ;;  %v4868_v6 = vadd.f32 1.0, %v7352_v11  ;;  %v3680_v8 = vadd.f32 %v8898_v60, %v8761_v44  ;;  %v3491_v60 = vadd.f32 %v8908_v56, %v8759_v31 }
 0x2fe   :  { %v7356_v39 = vpop.eup %7355  ;;  %7381 = vrcp.f32 %v4869_v29  ;;  %v4870_v63 = vadd.f32 1.0, %v7354_v20  ;;  %v9016_v25 = vpop.f32.mrf.mxu0  ;;  %v3489_v20 = vadd.f32 %v8904_v24, %v8765_v38  ;;  %v6206_v56 = vmul.f32 -1.442695, %v3682_v49 }
 0x2ff   :  { %v9014_v54 = vpop.f32.mrf.mxu1  ;;  %v7358_v61 = vpop.eup %7357  ;;  %7383 = vrcp.f32 %v4868_v6  ;;  %v4874_v53 = vadd.f32 1.0, %v7356_v39  ;;  %v3690_v49 = vadd.f32 %v8918_v26, %v8761_v44 }
 0x300   :  { %v7360_v16 = vpop.eup %7359  ;;  %7385 = vrcp.f32 %v4870_v63  ;;  %v4876_v51 = vadd.f32 1.0, %v7358_v61  ;;  %v9028_v63 = vpop.f32.mrf.mxu0  ;;  %v6204_v32 = vmul.f32 -1.442695, %v3489_v20 }
 0x301   :  { %v7362_v55 = vpop.eup %7361  ;;  %7387 = vrcp.f32 %v4874_v53  ;;  %v4875_v18 = vadd.f32 1.0, %v7360_v16  ;;  %v9020_v27 = vpop.f32.mrf.mxu1  ;;  %v6203_v16 = vmul.f32 -1.442695, %v3487_v37 }
 0x302   :  { %v7364_v59 = vpop.eup %7363  ;;  %7389 = vrcp.f32 %v4876_v51  ;;  %v4877_v13 = vadd.f32 1.0, %v7362_v55 }
 0x303   :  { %v7366_v11 = vpop.eup %7365  ;;  %7391 = vrcp.f32 %v4875_v18  ;;  %v4881_v29 = vadd.f32 1.0, %v7364_v59  ;;  %v9032_v51 = vpop.f32.mrf.mxu1  ;;  %v6205_v18 = vmul.f32 -1.442695, %v3680_v8  ;;  %v3684_v59 = vadd.f32 %v8910_v58, %v8761_v44 }
 0x304   :  { %v7368_v6 = vpop.eup %7367  ;;  %7393 = vrcp.f32 %v4877_v13  ;;  %v4883_v39 = vadd.f32 1.0, %v7366_v11  ;;  %v3493_v11 = vadd.f32 %v8912_v4, %v8765_v38  ;;  %v6210_v58 = vmul.f32 -1.442695, %v3491_v60 }
 0x305   :  { %v7370_v61 = vpop.eup %7369  ;;  %7395 = vrcp.f32 %v4881_v29  ;;  %v4882_v53 = vadd.f32 1.0, %v7368_v6  ;;  %v3686_v29 = vadd.f32 %v8914_v1, %v8767_v5  ;;  %v9040_v6 = vpop.f32.mrf.mxu0  ;;  %v6212_v4 = vmul.f32 -1.442695, %v3684_v59 }
 0x306   :  { %v7372_v55 = vpop.eup %7371  ;;  %7397 = vrcp.f32 %v4883_v39  ;;  %v4884_v24 = vadd.f32 1.0, %v7370_v61  ;;  %v3497_v39 = vadd.f32 %v8916_v35, %v8759_v31  ;;  %v9044_v20 = vpop.f32.mrf.mxu1  ;;  %v6211_v1 = vmul.f32 -1.442695, %v3493_v11 }
 0x307   :  { %v7374_v13 = vpop.eup %7373  ;;  %5532 = vst [vmem:[#allocation10 + $0x1c0] sm:$0xff] %v7372_v55  ;;  %7399 = vrcp.f32 %v4882_v53  ;;  %v6213_v35 = vmul.f32 -1.442695, %v3686_v29  ;;  %v3692_v55 = vadd.f32 %v8924_v7, %v8767_v5  ;;  %v3501_v59 = vadd.f32 %v8930_v30, %v8759_v31 }
 0x308   :  { %v7376_v37 = vpop.eup %7375  ;;  %5534 = vst [vmem:[#allocation10 + $0x1d0] sm:$0xff] %v7374_v13  ;;  %7401 = vrcp.f32 %v4884_v24  ;;  %v9052_v24 = vpop.f32.mrf.mxu0  ;;  %v6217_v26 = vmul.f32 -1.442695, %v3497_v39  ;;  %v3694_v11 = vadd.f32 %v8932_v40, %v8761_v44 }
 0x309   :  { %v7378_v8 = vpop.eup %7377  ;;  %5533 = vst [vmem:[#allocation10 + $0x1c8] sm:$0xff] %v7376_v37  ;;  %7403 = vpow2.f32 %v6203_v16  ;;  %v3499_v16 = vadd.f32 %v8922_v2, %v8765_v38  ;;  %v9056_v13 = vpop.f32.mrf.mxu1  ;;  %v6219_v2 = vmul.f32 -1.442695, %v3690_v49  ;;  %v6220_v30 = vmul.f32 -1.442695, %v3692_v55 }
 0x30a   :  { %v7380_v61 = vpop.eup %7379  ;;  %5535 = vst [vmem:[#allocation10 + $0x1d8] sm:$0xff] %v7378_v8  ;;  %7405 = vpow2.f32 %v6205_v18  ;;  %v3696_v8 = vadd.f32 %v8940_v22, %v8767_v5  ;;  %v6224_v40 = vmul.f32 -1.442695, %v3501_v59  ;;  %v6226_v49 = vmul.f32 -1.442695, %v3694_v11 }
 0x30b   :  { %v7382_v53 = vpop.eup %7381  ;;  %5539 = vst [vmem:[#allocation10 + $0x1f8] sm:$0xff] %v7380_v61  ;;  %7407 = vpow2.f32 %v6204_v32  ;;  %v6218_v7 = vmul.f32 -1.442695, %v3499_v16  ;;  %v9066_v61 = vpop.f32.mrf.mxu1 }
 0x30c   :  { %v7384_v60 = vpop.eup %7383  ;;  %5541 = vst [vmem:[#allocation10 + $0x208] sm:$0xff] %v7382_v53  ;;  %7409 = vpow2.f32 %v6206_v56  ;;  %v3503_v56 = vadd.f32 %v8938_v12, %v8765_v38  ;;  %v6227_v22 = vmul.f32 -1.442695, %v3696_v8 }
 0x30d   :  { %v7386_v18 = vpop.eup %7385  ;;  %5540 = vst [vmem:[#allocation10 + $0x200] sm:$0xff] %v7384_v60  ;;  %7411 = vpow2.f32 %v6210_v58  ;;  %v9064_v58 = vpop.f32.mrf.mxu0 }
 0x30e   :  { %v7388_v32 = vpop.eup %7387  ;;  %5542 = vst [vmem:[#allocation10 + $0x210] sm:$0xff] %v7386_v18  ;;  %7413 = vpow2.f32 %v6212_v4  ;;  %v6225_v53 = vmul.f32 -1.442695, %v3503_v56 }
 0x30f   :  { %v7390_v37 = vpop.eup %7389  ;;  %5546 = vst [vmem:[#allocation10 + $0x230] sm:$0xff] %v7388_v32  ;;  %7415 = vpow2.f32 %v6211_v1  ;;  %v9068_v16 = vpop.f32.mrf.mxu0 }
 0x310   :  { %v7392_v29 = vpop.eup %7391  ;;  %5548 = vst [vmem:[#allocation10 + $0x240] sm:$0xff] %v7390_v37  ;;  %7417 = vpow2.f32 %v6213_v35  ;;  %v9070_v35 = vpop.f32.mrf.mxu1 }
 0x311   :  { %v7394_v39 = vpop.eup %7393  ;;  %5547 = vst [vmem:[#allocation10 + $0x238] sm:$0xff] %v7392_v29  ;;  %7419 = vpow2.f32 %v6217_v26 }
 0x312   :  { %v7396_v4 = vpop.eup %7395  ;;  %5549 = vst [vmem:[#allocation10 + $0x248] sm:$0xff] %v7394_v39  ;;  %7421 = vpow2.f32 %v6219_v2  ;;  %v9072_v2 = vpop.f32.mrf.mxu0 }
 0x313   :  { %v7398_v12 = vpop.eup %7397  ;;  %5553 = vst [vmem:[#allocation10 + $0x268] sm:$0xff] %v7396_v4  ;;  %7423 = vpow2.f32 %v6218_v7  ;;  %v9074_v7 = vpop.f32.mrf.mxu1 }
 0x314   :  { %v7400_v1 = vpop.eup %7399  ;;  %5555 = vst [vmem:[#allocation10 + $0x278] sm:$0xff] %v7398_v12  ;;  %7425 = vpow2.f32 %v6220_v30  ;;  %v9076_v4 = vpop.f32.mrf.mxu0 }
 0x315   :  { %v7402_v60 = vpop.eup %7401  ;;  %5554 = vst [vmem:[#allocation10 + $0x270] sm:$0xff] %v7400_v1  ;;  %7427 = vpow2.f32 %v6224_v40 }
 0x316   :  { %v7404_v55 = vpop.eup %7403  ;;  %5556 = vst [vmem:[#allocation10 + $0x280] sm:$0xff] %v7402_v60  ;;  %7429 = vpow2.f32 %v6226_v49 }
 0x317   :  { %v7406_v18 = vpop.eup %7405  ;;  %v4888_v26 = vadd.f32 1.0, %v7404_v55  ;;  %7431 = vpow2.f32 %v6225_v53  ;;  %v9078_v53 = vpop.f32.mrf.mxu1 }
 0x318   :  { %v7408_v59 = vpop.eup %7407  ;;  %v4890_v32 = vadd.f32 1.0, %v7406_v18  ;;  %7433 = vpow2.f32 %v6227_v22 }
 0x319   :  { %v7410_v11 = vpop.eup %7409  ;;  %7435 = vrcp.f32 %v4888_v26  ;;  %v4889_v37 = vadd.f32 1.0, %v7408_v59  ;;  %v9080_v59 = vpop.f32.mrf.mxu0 }
 0x31a   :  { %v7412_v56 = vpop.eup %7411  ;;  %7437 = vrcp.f32 %v4890_v32  ;;  %v4891_v29 = vadd.f32 1.0, %v7410_v11 }
 0x31b   :  { %v7414_v30 = vpop.eup %7413  ;;  %7439 = vrcp.f32 %v4889_v37  ;;  %v4895_v8 = vadd.f32 1.0, %v7412_v56  ;;  %v3507_v37 = vadd.f32 %v8946_v23, %v8759_v31  ;;  %v9084_v56 = vpop.f32.mrf.mxu1  ;;  %v3702_v23 = vadd.f32 %v8956_v21, %v8767_v5 }
 0x31c   :  { %v7416_v39 = vpop.eup %7415  ;;  %7441 = vrcp.f32 %v4891_v29  ;;  %v4897_v40 = vadd.f32 1.0, %v7414_v30 }
 0x31d   :  { %v7418_v49 = vpop.eup %7417  ;;  %7443 = vrcp.f32 %v4895_v8  ;;  %v4896_v12 = vadd.f32 1.0, %v7416_v39  ;;  %v3700_v8 = vadd.f32 %v8948_v41, %v8761_v44  ;;  %v3511_v41 = vadd.f32 %v8962_v46, %v8759_v31 }
 0x31e   :  { %v7420_v1 = vpop.eup %7419  ;;  %7445 = vrcp.f32 %v4897_v40  ;;  %v4898_v22 = vadd.f32 1.0, %v7418_v49  ;;  %v3509_v49 = vadd.f32 %v8954_v45, %v8765_v38  ;;  %v6234_v46 = vmul.f32 -1.442695, %v3702_v23 }
 0x31f   :  { %v7422_v60 = vpop.eup %7421  ;;  %7447 = vrcp.f32 %v4896_v12  ;;  %v4902_v55 = vadd.f32 1.0, %v7420_v1  ;;  %v3710_v23 = vadd.f32 %v8980_v62, %v8761_v44 }
 0x320   :  { %v7424_v18 = vpop.eup %7423  ;;  %7449 = vrcp.f32 %v4898_v22  ;;  %v4904_v26 = vadd.f32 1.0, %v7422_v60  ;;  %v9092_v22 = vpop.f32.mrf.mxu0  ;;  %v6232_v21 = vmul.f32 -1.442695, %v3509_v49 }
 0x321   :  { %v7426_v32 = vpop.eup %7425  ;;  %7451 = vrcp.f32 %v4902_v55  ;;  %v4903_v11 = vadd.f32 1.0, %v7424_v18  ;;  %v6231_v18 = vmul.f32 -1.442695, %v3507_v37 }
 0x322   :  { %v7428_v29 = vpop.eup %7427  ;;  %7453 = vrcp.f32 %v4904_v26  ;;  %v4905_v30 = vadd.f32 1.0, %v7426_v32  ;;  %v9096_v26 = vpop.f32.mrf.mxu1 }
 0x323   :  { %v7430_v39 = vpop.eup %7429  ;;  %7455 = vrcp.f32 %v4903_v11  ;;  %v4909_v40 = vadd.f32 1.0, %v7428_v29  ;;  %v6233_v11 = vmul.f32 -1.442695, %v3700_v8  ;;  %v3704_v29 = vadd.f32 %v8964_v19, %v8761_v44 }
 0x324   :  { %v7432_v12 = vpop.eup %7431  ;;  %7457 = vrcp.f32 %v4905_v30  ;;  %v4911_v1 = vadd.f32 1.0, %v7430_v39  ;;  %v3513_v39 = vadd.f32 %v8970_v28, %v8765_v38  ;;  %v6238_v19 = vmul.f32 -1.442695, %v3511_v41  ;;  %v9108_v49 = vpop.f32.mrf.mxu1 }
 0x325   :  { %v7434_v60 = vpop.eup %7433  ;;  %7459 = vrcp.f32 %v4909_v40  ;;  %v4910_v55 = vadd.f32 1.0, %v7432_v12  ;;  %v3706_v40 = vadd.f32 %v8972_v50, %v8767_v5  ;;  %v9104_v12 = vpop.f32.mrf.mxu0  ;;  %v6240_v28 = vmul.f32 -1.442695, %v3704_v29 }
 0x326   :  { %v7436_v32 = vpop.eup %7435  ;;  %7461 = vrcp.f32 %v4911_v1  ;;  %v4912_v45 = vadd.f32 1.0, %v7434_v60  ;;  %v3517_v1 = vadd.f32 %v8978_v43, %v8759_v31  ;;  %v6239_v50 = vmul.f32 -1.442695, %v3513_v39 }
 0x327   :  { %v7438_v30 = vpop.eup %7437  ;;  %5560 = vst [vmem:[#allocation10 + $0x2a0] sm:$0xff] %v7436_v32  ;;  %7463 = vrcp.f32 %v4910_v55  ;;  %v6241_v43 = vmul.f32 -1.442695, %v3706_v40  ;;  %v3712_v32 = vadd.f32 %v8988_v17, %v8767_v5  ;;  %v3521_v29 = vadd.f32 %v8990_v14, %v8759_v31 }
 0x328   :  { %v7440_v37 = vpop.eup %7439  ;;  %5562 = vst [vmem:[#allocation10 + $0x2b0] sm:$0xff] %v7438_v30  ;;  %7465 = vrcp.f32 %v4912_v45  ;;  %v9116_v45 = vpop.f32.mrf.mxu0  ;;  %v6245_v62 = vmul.f32 -1.442695, %v3517_v1  ;;  %v3714_v39 = vadd.f32 %v8992_v34, %v8761_v44 }
 0x329   :  { %v7442_v8 = vpop.eup %7441  ;;  %5561 = vst [vmem:[#allocation10 + $0x2a8] sm:$0xff] %v7440_v37  ;;  %7467 = vpow2.f32 %v6231_v18  ;;  %v3519_v18 = vadd.f32 %v8986_v57, %v8765_v38  ;;  %v9120_v30 = vpop.f32.mrf.mxu1  ;;  %v6247_v57 = vmul.f32 -1.442695, %v3710_v23  ;;  %v6248_v14 = vmul.f32 -1.442695, %v3712_v32 }
 0x32a   :  { %v7444_v60 = vpop.eup %7443  ;;  %5563 = vst [vmem:[#allocation10 + $0x2b8] sm:$0xff] %v7442_v8  ;;  %7469 = vpow2.f32 %v6233_v11  ;;  %v3716_v8 = vadd.f32 %v8996_v48, %v8767_v5  ;;  %v6252_v34 = vmul.f32 -1.442695, %v3521_v29  ;;  %v6254_v23 = vmul.f32 -1.442695, %v3714_v39 }
 0x32b   :  { %v7446_v55 = vpop.eup %7445  ;;  %5567 = vst [vmem:[#allocation10 + $0x2d8] sm:$0xff] %v7444_v60  ;;  %7471 = vpow2.f32 %v6232_v21  ;;  %v6246_v17 = vmul.f32 -1.442695, %v3519_v18  ;;  %v9130_v60 = vpop.f32.mrf.mxu1 }
 0x32c   :  { %v7448_v41 = vpop.eup %7447  ;;  %5569 = vst [vmem:[#allocation10 + $0x2e8] sm:$0xff] %v7446_v55  ;;  %7473 = vpow2.f32 %v6234_v46  ;;  %v3523_v46 = vadd.f32 %v8994_v33, %v8765_v38  ;;  %v6255_v48 = vmul.f32 -1.442695, %v3716_v8 }
 0x32d   :  { %v7450_v11 = vpop.eup %7449  ;;  %5568 = vst [vmem:[#allocation10 + $0x2e0] sm:$0xff] %v7448_v41  ;;  %7475 = vpow2.f32 %v6238_v19  ;;  %v9128_v19 = vpop.f32.mrf.mxu0 }
 0x32e   :  { %v7452_v21 = vpop.eup %7451  ;;  %5570 = vst [vmem:[#allocation10 + $0x2f0] sm:$0xff] %v7450_v11  ;;  %7477 = vpow2.f32 %v6240_v28  ;;  %v6253_v55 = vmul.f32 -1.442695, %v3523_v46 }
 0x32f   :  { %v7454_v37 = vpop.eup %7453  ;;  %5574 = vst [vmem:[#allocation10 + $0x310] sm:$0xff] %v7452_v21  ;;  %7479 = vpow2.f32 %v6239_v50  ;;  %v9132_v18 = vpop.f32.mrf.mxu0 }
 0x330   :  { %v7456_v40 = vpop.eup %7455  ;;  %5576 = vst [vmem:[#allocation10 + $0x320] sm:$0xff] %v7454_v37  ;;  %7481 = vpow2.f32 %v6241_v43  ;;  %v9134_v43 = vpop.f32.mrf.mxu1 }
 0x331   :  { %v7458_v1 = vpop.eup %7457  ;;  %5575 = vst [vmem:[#allocation10 + $0x318] sm:$0xff] %v7456_v40  ;;  %7483 = vpow2.f32 %v6245_v62 }
 0x332   :  { %v7460_v28 = vpop.eup %7459  ;;  %5577 = vst [vmem:[#allocation10 + $0x328] sm:$0xff] %v7458_v1  ;;  %7485 = vpow2.f32 %v6247_v57  ;;  %v9136_v57 = vpop.f32.mrf.mxu0 }
 0x333   :  { %v7462_v33 = vpop.eup %7461  ;;  %5581 = vst [vmem:[#allocation10 + $0x348] sm:$0xff] %v7460_v28  ;;  %7487 = vpow2.f32 %v6246_v17  ;;  %v9138_v17 = vpop.f32.mrf.mxu1 }
 0x334   :  { %v7464_v50 = vpop.eup %7463  ;;  %5583 = vst [vmem:[#allocation10 + $0x358] sm:$0xff] %v7462_v33  ;;  %7489 = vpow2.f32 %v6248_v14  ;;  %v9140_v28 = vpop.f32.mrf.mxu0 }
 0x335   :  { %v7466_v41 = vpop.eup %7465  ;;  %5582 = vst [vmem:[#allocation10 + $0x350] sm:$0xff] %v7464_v50  ;;  %7491 = vpow2.f32 %v6252_v34 }
 0x336   :  { %v7468_v32 = vpop.eup %7467  ;;  %5584 = vst [vmem:[#allocation10 + $0x360] sm:$0xff] %v7466_v41  ;;  %7493 = vpow2.f32 %v6254_v23 }
 0x337   :  { %v7470_v11 = vpop.eup %7469  ;;  %v4916_v62 = vadd.f32 1.0, %v7468_v32  ;;  %7495 = vpow2.f32 %v6253_v55  ;;  %v9142_v55 = vpop.f32.mrf.mxu1 }
 0x338   :  { %v7472_v29 = vpop.eup %7471  ;;  %v4918_v21 = vadd.f32 1.0, %v7470_v11  ;;  %7497 = vpow2.f32 %v6255_v48 }
 0x339   :  { %v7474_v39 = vpop.eup %7473  ;;  %7499 = vrcp.f32 %v4916_v62  ;;  %v4917_v37 = vadd.f32 1.0, %v7472_v29  ;;  %v9144_v29 = vpop.f32.mrf.mxu0 }
 0x33a   :  { %v7476_v46 = vpop.eup %7475  ;;  %7501 = vrcp.f32 %v4918_v21  ;;  %v4919_v40 = vadd.f32 1.0, %v7474_v39 }
 0x33b   :  { %v7478_v14 = vpop.eup %7477  ;;  %7503 = vrcp.f32 %v4917_v37  ;;  %v4923_v8 = vadd.f32 1.0, %v7476_v46  ;;  %v3527_v37 = vadd.f32 %v8998_v42, %v8759_v31  ;;  %v9148_v46 = vpop.f32.mrf.mxu1  ;;  %v3722_v42 = vadd.f32 %v9004_v3, %v8767_v5 }
 0x33c   :  { %v7480_v1 = vpop.eup %7479  ;;  %7505 = vrcp.f32 %v4919_v40  ;;  %v4925_v34 = vadd.f32 1.0, %v7478_v14 }
 0x33d   :  { %v7482_v23 = vpop.eup %7481  ;;  %7507 = vrcp.f32 %v4923_v8  ;;  %v4924_v33 = vadd.f32 1.0, %v7480_v1  ;;  %v3720_v8 = vadd.f32 %v9000_v9, %v8761_v44  ;;  %v3531_v9 = vadd.f32 %v9006_v36, %v8759_v31 }
 0x33e   :  { %v7484_v50 = vpop.eup %7483  ;;  %7509 = vrcp.f32 %v4925_v34  ;;  %v4926_v48 = vadd.f32 1.0, %v7482_v23  ;;  %v3529_v23 = vadd.f32 %v9002_v15, %v8765_v38  ;;  %v6262_v36 = vmul.f32 -1.442695, %v3722_v42 }
 0x33f   :  { %v7486_v41 = vpop.eup %7485  ;;  %7511 = vrcp.f32 %v4924_v33  ;;  %v4930_v32 = vadd.f32 1.0, %v7484_v50  ;;  %v3730_v42 = vadd.f32 %v9014_v54, %v8761_v44 }
 0x340   :  { %v7488_v11 = vpop.eup %7487  ;;  %7513 = vrcp.f32 %v4926_v48  ;;  %v4932_v62 = vadd.f32 1.0, %v7486_v41  ;;  %v9156_v48 = vpop.f32.mrf.mxu0  ;;  %v6260_v3 = vmul.f32 -1.442695, %v3529_v23 }
 0x341   :  { %v7490_v21 = vpop.eup %7489  ;;  %7515 = vrcp.f32 %v4930_v32  ;;  %v4931_v39 = vadd.f32 1.0, %v7488_v11  ;;  %v6259_v11 = vmul.f32 -1.442695, %v3527_v37 }
 0x342   :  { %v7492_v40 = vpop.eup %7491  ;;  %7517 = vrcp.f32 %v4932_v62  ;;  %v4933_v14 = vadd.f32 1.0, %v7490_v21  ;;  %v9160_v62 = vpop.f32.mrf.mxu1 }
 0x343   :  { %v7494_v1 = vpop.eup %7493  ;;  %7519 = vrcp.f32 %v4931_v39  ;;  %v4937_v34 = vadd.f32 1.0, %v7492_v40  ;;  %v6261_v39 = vmul.f32 -1.442695, %v3720_v8  ;;  %v3724_v40 = vadd.f32 %v9008_v0, %v8761_v44 }
 0x344   :  { %v7496_v33 = vpop.eup %7495  ;;  %7521 = vrcp.f32 %v4933_v14  ;;  %v4939_v50 = vadd.f32 1.0, %v7494_v1  ;;  %v3533_v1 = vadd.f32 %v9010_v47, %v8765_v38  ;;  %v6266_v0 = vmul.f32 -1.442695, %v3531_v9  ;;  %v9172_v23 = vpop.f32.mrf.mxu1 }
 0x345   :  { %v7498_v41 = vpop.eup %7497  ;;  %7523 = vrcp.f32 %v4937_v34  ;;  %v4938_v32 = vadd.f32 1.0, %v7496_v33  ;;  %v3726_v34 = vadd.f32 %v9012_v10, %v8767_v5  ;;  %v9168_v33 = vpop.f32.mrf.mxu0  ;;  %v6268_v47 = vmul.f32 -1.442695, %v3724_v40 }
 0x346   :  { %v7500_v21 = vpop.eup %7499  ;;  %7525 = vrcp.f32 %v4939_v50  ;;  %v4940_v15 = vadd.f32 1.0, %v7498_v41  ;;  %v3537_v50 = vadd.f32 %v9016_v25, %v8759_v31  ;;  %v6267_v10 = vmul.f32 -1.442695, %v3533_v1 }
 0x347   :  { %v7502_v14 = vpop.eup %7501  ;;  %5588 = vst [vmem:[#allocation10 + $0x380] sm:$0xff] %v7500_v21  ;;  %7527 = vrcp.f32 %v4938_v32  ;;  %v6269_v25 = vmul.f32 -1.442695, %v3726_v34  ;;  %v3732_v21 = vadd.f32 %v9020_v27, %v8767_v5  ;;  %v3541_v40 = vadd.f32 %v9040_v6, %v8759_v31 }
 0x348   :  { %v7504_v37 = vpop.eup %7503  ;;  %5590 = vst [vmem:[#allocation10 + $0x390] sm:$0xff] %v7502_v14  ;;  %7529 = vrcp.f32 %v4940_v15  ;;  %v9180_v15 = vpop.f32.mrf.mxu0  ;;  %v6273_v54 = vmul.f32 -1.442695, %v3537_v50  ;;  %v3734_v1 = vadd.f32 %v9032_v51, %v8761_v44 }
 0x349   :  { %v7506_v8 = vpop.eup %7505  ;;  %5589 = vst [vmem:[#allocation10 + $0x388] sm:$0xff] %v7504_v37  ;;  %7531 = vpow2.f32 %v6259_v11  ;;  %v3539_v11 = vadd.f32 %v9028_v63, %v8765_v38  ;;  %v9184_v14 = vpop.f32.mrf.mxu1  ;;  %v6275_v63 = vmul.f32 -1.442695, %v3730_v42  ;;  %v6276_v6 = vmul.f32 -1.442695, %v3732_v21 }
 0x34a   :  { %v7508_v41 = vpop.eup %7507  ;;  %5591 = vst [vmem:[#allocation10 + $0x398] sm:$0xff] %v7506_v8  ;;  %7533 = vpow2.f32 %v6261_v39  ;;  %v3736_v8 = vadd.f32 %v9044_v20, %v8767_v5  ;;  %v6280_v51 = vmul.f32 -1.442695, %v3541_v40  ;;  %v6282_v42 = vmul.f32 -1.442695, %v3734_v1 }
 0x34b   :  { %v7510_v32 = vpop.eup %7509  ;;  %5595 = vst [vmem:[#allocation10 + $0x3b8] sm:$0xff] %v7508_v41  ;;  %7535 = vpow2.f32 %v6260_v3  ;;  %v6274_v27 = vmul.f32 -1.442695, %v3539_v11  ;;  %v9194_v41 = vpop.f32.mrf.mxu1 }
 0x34c   :  { %v7512_v9 = vpop.eup %7511  ;;  %5597 = vst [vmem:[#allocation10 + $0x3c8] sm:$0xff] %v7510_v32  ;;  %7537 = vpow2.f32 %v6262_v36  ;;  %v3543_v36 = vadd.f32 %v9052_v24, %v8765_v38  ;;  %v6283_v20 = vmul.f32 -1.442695, %v3736_v8 }
 0x34d   :  { %v7514_v39 = vpop.eup %7513  ;;  %5596 = vst [vmem:[#allocation10 + $0x3c0] sm:$0xff] %v7512_v9  ;;  %7539 = vpow2.f32 %v6266_v0  ;;  %v9192_v0 = vpop.f32.mrf.mxu0 }
 0x34e   :  { %v7516_v3 = vpop.eup %7515  ;;  %5598 = vst [vmem:[#allocation10 + $0x3d0] sm:$0xff] %v7514_v39  ;;  %7541 = vpow2.f32 %v6268_v47  ;;  %v6281_v32 = vmul.f32 -1.442695, %v3543_v36 }
 0x34f   :  { %v7518_v37 = vpop.eup %7517  ;;  %5602 = vst [vmem:[#allocation10 + $0x3f0] sm:$0xff] %v7516_v3  ;;  %7543 = vpow2.f32 %v6267_v10  ;;  %v9196_v11 = vpop.f32.mrf.mxu0 }
 0x350   :  { %v7520_v34 = vpop.eup %7519  ;;  %5604 = vst [vmem:[#allocation10 + $0x400] sm:$0xff] %v7518_v37  ;;  %7545 = vpow2.f32 %v6269_v25  ;;  %v9198_v25 = vpop.f32.mrf.mxu1 }
 0x351   :  { %v7522_v50 = vpop.eup %7521  ;;  %5603 = vst [vmem:[#allocation10 + $0x3f8] sm:$0xff] %v7520_v34  ;;  %7547 = vpow2.f32 %v6273_v54 }
 0x352   :  { %v7524_v47 = vpop.eup %7523  ;;  %5605 = vst [vmem:[#allocation10 + $0x408] sm:$0xff] %v7522_v50  ;;  %7549 = vpow2.f32 %v6275_v63  ;;  %v9200_v63 = vpop.f32.mrf.mxu0 }
 0x353   :  { %v7526_v24 = vpop.eup %7525  ;;  %5609 = vst [vmem:[#allocation10 + $0x428] sm:$0xff] %v7524_v47  ;;  %7551 = vpow2.f32 %v6274_v27  ;;  %v9202_v27 = vpop.f32.mrf.mxu1 }
 0x354   :  { %v7528_v10 = vpop.eup %7527  ;;  %5611 = vst [vmem:[#allocation10 + $0x438] sm:$0xff] %v7526_v24  ;;  %7553 = vpow2.f32 %v6276_v6  ;;  %v9204_v47 = vpop.f32.mrf.mxu0 }
 0x355   :  { %v7530_v9 = vpop.eup %7529  ;;  %5610 = vst [vmem:[#allocation10 + $0x430] sm:$0xff] %v7528_v10  ;;  %7555 = vpow2.f32 %v6280_v51 }
 0x356   :  { %v7532_v21 = vpop.eup %7531  ;;  %5612 = vst [vmem:[#allocation10 + $0x440] sm:$0xff] %v7530_v9  ;;  %7557 = vpow2.f32 %v6282_v42 }
 0x357   :  { %v7534_v39 = vpop.eup %7533  ;;  %v4944_v54 = vadd.f32 1.0, %v7532_v21  ;;  %7559 = vpow2.f32 %v6281_v32  ;;  %v9206_v32 = vpop.f32.mrf.mxu1 }
 0x358   :  { %v7536_v40 = vpop.eup %7535  ;;  %v4946_v3 = vadd.f32 1.0, %v7534_v39  ;;  %7561 = vpow2.f32 %v6283_v20 }
 0x359   :  { %v7538_v1 = vpop.eup %7537  ;;  %7563 = vrcp.f32 %v4944_v54  ;;  %v4945_v37 = vadd.f32 1.0, %v7536_v40  ;;  %v9208_v40 = vpop.f32.mrf.mxu0 }
 0x35a   :  { %v7540_v36 = vpop.eup %7539  ;;  %7565 = vrcp.f32 %v4946_v3  ;;  %v4947_v34 = vadd.f32 1.0, %v7538_v1 }
 0x35b   :  { %v7542_v6 = vpop.eup %7541  ;;  %7567 = vrcp.f32 %v4945_v37  ;;  %v4951_v8 = vadd.f32 1.0, %v7540_v36  ;;  %v3547_v37 = vadd.f32 %v9064_v58, %v8759_v31  ;;  %v9212_v36 = vpop.f32.mrf.mxu1  ;;  %v3742_v58 = vadd.f32 %v9066_v61, %v8767_v5 }
 0x35c   :  { %v7544_v50 = vpop.eup %7543  ;;  %7569 = vrcp.f32 %v4947_v34  ;;  %v4953_v51 = vadd.f32 1.0, %v7542_v6 }
 0x35d   :  { %v7546_v42 = vpop.eup %7545  ;;  %7571 = vrcp.f32 %v4951_v8  ;;  %v4952_v24 = vadd.f32 1.0, %v7544_v50  ;;  %v3740_v8 = vadd.f32 %v9056_v13, %v8761_v44  ;;  %v3551_v13 = vadd.f32 %v9072_v2, %v8759_v31 }
 0x35e   :  { %v7548_v10 = vpop.eup %7547  ;;  %7573 = vrcp.f32 %v4953_v51  ;;  %v4954_v20 = vadd.f32 1.0, %v7546_v42  ;;  %v3549_v42 = vadd.f32 %v9068_v16, %v8765_v38  ;;  %v6290_v2 = vmul.f32 -1.442695, %v3742_v58 }
 0x35f   :  { %v7550_v9 = vpop.eup %7549  ;;  %7575 = vrcp.f32 %v4952_v24  ;;  %v4958_v21 = vadd.f32 1.0, %v7548_v10  ;;  %v3750_v58 = vadd.f32 %v9078_v53, %v8761_v44 }
 0x360   :  { %v7552_v39 = vpop.eup %7551  ;;  %7577 = vrcp.f32 %v4954_v20  ;;  %v4960_v54 = vadd.f32 1.0, %v7550_v9  ;;  %v9220_v20 = vpop.f32.mrf.mxu0  ;;  %v6288_v61 = vmul.f32 -1.442695, %v3549_v42 }
 0x361   :  { %v7554_v3 = vpop.eup %7553  ;;  %7579 = vrcp.f32 %v4958_v21  ;;  %v4959_v1 = vadd.f32 1.0, %v7552_v39  ;;  %v6287_v39 = vmul.f32 -1.442695, %v3547_v37 }
 0x362   :  { %v7556_v34 = vpop.eup %7555  ;;  %7581 = vrcp.f32 %v4960_v54  ;;  %v4961_v6 = vadd.f32 1.0, %v7554_v3  ;;  %v9224_v54 = vpop.f32.mrf.mxu1 }
 0x363   :  { %v7558_v50 = vpop.eup %7557  ;;  %7583 = vrcp.f32 %v4959_v1  ;;  %v4965_v51 = vadd.f32 1.0, %v7556_v34  ;;  %v6289_v1 = vmul.f32 -1.442695, %v3740_v8  ;;  %v3744_v34 = vadd.f32 %v9070_v35, %v8761_v44 }
 0x364   :  { %v7560_v24 = vpop.eup %7559  ;;  %7585 = vrcp.f32 %v4961_v6  ;;  %v4967_v10 = vadd.f32 1.0, %v7558_v50  ;;  %v3553_v50 = vadd.f32 %v9076_v4, %v8765_v38  ;;  %v6294_v35 = vmul.f32 -1.442695, %v3551_v13  ;;  %v9236_v42 = vpop.f32.mrf.mxu1 }
 0x365   :  { %v7562_v9 = vpop.eup %7561  ;;  %7587 = vrcp.f32 %v4965_v51  ;;  %v4966_v21 = vadd.f32 1.0, %v7560_v24  ;;  %v3746_v51 = vadd.f32 %v9074_v7, %v8767_v5  ;;  %v9232_v24 = vpop.f32.mrf.mxu0  ;;  %v6296_v4 = vmul.f32 -1.442695, %v3744_v34 }
 0x366   :  { %v7564_v3 = vpop.eup %7563  ;;  %7589 = vrcp.f32 %v4967_v10  ;;  %v4968_v16 = vadd.f32 1.0, %v7562_v9  ;;  %v3557_v10 = vadd.f32 %v9080_v59, %v8759_v31  ;;  %v6295_v7 = vmul.f32 -1.442695, %v3553_v50 }
 0x367   :  { %v7566_v6 = vpop.eup %7565  ;;  %5616 = vst [vmem:[#allocation10 + $0x460] sm:$0xff] %v7564_v3  ;;  %7591 = vrcp.f32 %v4966_v21  ;;  %v6297_v59 = vmul.f32 -1.442695, %v3746_v51  ;;  %v3752_v3 = vadd.f32 %v9084_v56, %v8767_v5  ;;  %v3561_v34 = vadd.f32 %v9104_v12, %v8759_v31 }
 0x368   :  { %v7568_v37 = vpop.eup %7567  ;;  %5618 = vst [vmem:[#allocation10 + $0x470] sm:$0xff] %v7566_v6  ;;  %7593 = vrcp.f32 %v4968_v16  ;;  %v9244_v16 = vpop.f32.mrf.mxu0  ;;  %v6301_v53 = vmul.f32 -1.442695, %v3557_v10  ;;  %v3754_v50 = vadd.f32 %v9096_v26, %v8761_v44 }
 0x369   :  { %v7570_v8 = vpop.eup %7569  ;;  %5617 = vst [vmem:[#allocation10 + $0x468] sm:$0xff] %v7568_v37  ;;  %7595 = vpow2.f32 %v6287_v39  ;;  %v3559_v39 = vadd.f32 %v9092_v22, %v8765_v38  ;;  %v9248_v6 = vpop.f32.mrf.mxu1  ;;  %v6303_v22 = vmul.f32 -1.442695, %v3750_v58  ;;  %v6304_v12 = vmul.f32 -1.442695, %v3752_v3 }
 0x36a   :  { %v7572_v9 = vpop.eup %7571  ;;  %5619 = vst [vmem:[#allocation10 + $0x478] sm:$0xff] %v7570_v8  ;;  %7597 = vpow2.f32 %v6289_v1  ;;  %v3756_v8 = vadd.f32 %v9108_v49, %v8767_v5  ;;  %v6308_v26 = vmul.f32 -1.442695, %v3561_v34  ;;  %v6310_v58 = vmul.f32 -1.442695, %v3754_v50 }
 0x36b   :  { %v7574_v21 = vpop.eup %7573  ;;  %5623 = vst [vmem:[#allocation10 + $0x498] sm:$0xff] %v7572_v9  ;;  %7599 = vpow2.f32 %v6288_v61  ;;  %v6302_v56 = vmul.f32 -1.442695, %v3559_v39  ;;  %v9258_v9 = vpop.f32.mrf.mxu1 }
 0x36c   :  { %v7576_v13 = vpop.eup %7575  ;;  %5625 = vst [vmem:[#allocation10 + $0x4a8] sm:$0xff] %v7574_v21  ;;  %7601 = vpow2.f32 %v6290_v2  ;;  %v3563_v2 = vadd.f32 %v9116_v45, %v8765_v38  ;;  %v6311_v49 = vmul.f32 -1.442695, %v3756_v8 }
 0x36d   :  { %v7578_v1 = vpop.eup %7577  ;;  %5624 = vst [vmem:[#allocation10 + $0x4a0] sm:$0xff] %v7576_v13  ;;  %7603 = vpow2.f32 %v6294_v35  ;;  %v9256_v35 = vpop.f32.mrf.mxu0 }
 0x36e   :  { %v7580_v61 = vpop.eup %7579  ;;  %5626 = vst [vmem:[#allocation10 + $0x4b0] sm:$0xff] %v7578_v1  ;;  %7605 = vpow2.f32 %v6296_v4  ;;  %v6309_v21 = vmul.f32 -1.442695, %v3563_v2 }
 0x36f   :  { %v7582_v37 = vpop.eup %7581  ;;  %5630 = vst [vmem:[#allocation10 + $0x4d0] sm:$0xff] %v7580_v61  ;;  %7607 = vpow2.f32 %v6295_v7  ;;  %v9260_v39 = vpop.f32.mrf.mxu0 }
 0x370   :  { %v7584_v51 = vpop.eup %7583  ;;  %5632 = vst [vmem:[#allocation10 + $0x4e0] sm:$0xff] %v7582_v37  ;;  %7609 = vpow2.f32 %v6297_v59  ;;  %v9262_v59 = vpop.f32.mrf.mxu1 }
 0x371   :  { %v7586_v10 = vpop.eup %7585  ;;  %5631 = vst [vmem:[#allocation10 + $0x4d8] sm:$0xff] %v7584_v51  ;;  %7611 = vpow2.f32 %v6301_v53 }
 0x372   :  { %v7588_v4 = vpop.eup %7587  ;;  %5633 = vst [vmem:[#allocation10 + $0x4e8] sm:$0xff] %v7586_v10  ;;  %7613 = vpow2.f32 %v6303_v22  ;;  %v9264_v22 = vpop.f32.mrf.mxu0 }
 0x373   :  { %v7590_v45 = vpop.eup %7589  ;;  %5637 = vst [vmem:[#allocation10 + $0x508] sm:$0xff] %v7588_v4  ;;  %7615 = vpow2.f32 %v6302_v56  ;;  %v9266_v56 = vpop.f32.mrf.mxu1 }
 0x374   :  { %v7592_v7 = vpop.eup %7591  ;;  %5639 = vst [vmem:[#allocation10 + $0x518] sm:$0xff] %v7590_v45  ;;  %7617 = vpow2.f32 %v6304_v12  ;;  %v9268_v4 = vpop.f32.mrf.mxu0 }
 0x375   :  { %v7594_v13 = vpop.eup %7593  ;;  %5638 = vst [vmem:[#allocation10 + $0x510] sm:$0xff] %v7592_v7  ;;  %7619 = vpow2.f32 %v6308_v26 }
 0x376   :  { %v7596_v3 = vpop.eup %7595  ;;  %5640 = vst [vmem:[#allocation10 + $0x520] sm:$0xff] %v7594_v13  ;;  %7621 = vpow2.f32 %v6310_v58 }
 0x377   :  { %v7598_v1 = vpop.eup %7597  ;;  %v4972_v53 = vadd.f32 1.0, %v7596_v3  ;;  %7623 = vpow2.f32 %v6309_v21  ;;  %v9270_v21 = vpop.f32.mrf.mxu1 }
 0x378   :  { %v7600_v34 = vpop.eup %7599  ;;  %v4974_v61 = vadd.f32 1.0, %v7598_v1  ;;  %7625 = vpow2.f32 %v6311_v49 }
 0x379   :  { %v7602_v50 = vpop.eup %7601  ;;  %7627 = vrcp.f32 %v4972_v53  ;;  %v4973_v37 = vadd.f32 1.0, %v7600_v34  ;;  %v9272_v34 = vpop.f32.mrf.mxu0 }
 0x37a   :  { %v7604_v2 = vpop.eup %7603  ;;  %7629 = vrcp.f32 %v4974_v61  ;;  %v4975_v51 = vadd.f32 1.0, %v7602_v50 }
 0x37b   :  { %v7606_v12 = vpop.eup %7605  ;;  %7631 = vrcp.f32 %v4973_v37  ;;  %v4979_v8 = vadd.f32 1.0, %v7604_v2  ;;  %v3567_v37 = vadd.f32 %v9128_v19, %v8759_v31  ;;  %v9276_v2 = vpop.f32.mrf.mxu1  ;;  %v3762_v19 = vadd.f32 %v9130_v60, %v8767_v5 }
 0x37c   :  { %v7608_v10 = vpop.eup %7607  ;;  %7633 = vrcp.f32 %v4975_v51  ;;  %v4981_v26 = vadd.f32 1.0, %v7606_v12 }
 0x37d   :  { %v7610_v58 = vpop.eup %7609  ;;  %7635 = vrcp.f32 %v4979_v8  ;;  %v4980_v45 = vadd.f32 1.0, %v7608_v10  ;;  %v3760_v8 = vadd.f32 %v9120_v30, %v8761_v44  ;;  %v3571_v30 = vadd.f32 %v9136_v57, %v8759_v31 }
 0x37e   :  { %v7612_v7 = vpop.eup %7611  ;;  %7637 = vrcp.f32 %v4981_v26  ;;  %v4982_v49 = vadd.f32 1.0, %v7610_v58  ;;  %v3569_v58 = vadd.f32 %v9132_v18, %v8765_v38  ;;  %v6318_v57 = vmul.f32 -1.442695, %v3762_v19 }
 0x37f   :  { %v7614_v13 = vpop.eup %7613  ;;  %7639 = vrcp.f32 %v4980_v45  ;;  %v4986_v3 = vadd.f32 1.0, %v7612_v7  ;;  %v3770_v19 = vadd.f32 %v9142_v55, %v8761_v44 }
 0x380   :  { %v7616_v1 = vpop.eup %7615  ;;  %7641 = vrcp.f32 %v4982_v49  ;;  %v4988_v53 = vadd.f32 1.0, %v7614_v13  ;;  %v9284_v49 = vpop.f32.mrf.mxu0  ;;  %v6316_v60 = vmul.f32 -1.442695, %v3569_v58 }
 0x381   :  { %v7618_v61 = vpop.eup %7617  ;;  %7643 = vrcp.f32 %v4986_v3  ;;  %v4987_v50 = vadd.f32 1.0, %v7616_v1  ;;  %v6315_v1 = vmul.f32 -1.442695, %v3567_v37 }
 0x382   :  { %v7620_v51 = vpop.eup %7619  ;;  %7645 = vrcp.f32 %v4988_v53  ;;  %v4989_v12 = vadd.f32 1.0, %v7618_v61  ;;  %v9288_v53 = vpop.f32.mrf.mxu1 }
 0x383   :  { %v7622_v10 = vpop.eup %7621  ;;  %7647 = vrcp.f32 %v4987_v50  ;;  %v4993_v26 = vadd.f32 1.0, %v7620_v51  ;;  %v6317_v50 = vmul.f32 -1.442695, %v3760_v8  ;;  %v3764_v51 = vadd.f32 %v9134_v43, %v8761_v44 }
 0x384   :  { %v7624_v45 = vpop.eup %7623  ;;  %7649 = vrcp.f32 %v4989_v12  ;;  %v4995_v7 = vadd.f32 1.0, %v7622_v10  ;;  %v3573_v10 = vadd.f32 %v9140_v28, %v8765_v38  ;;  %v6322_v43 = vmul.f32 -1.442695, %v3571_v30  ;;  %v9300_v58 = vpop.f32.mrf.mxu1 }
 0x385   :  { %v7626_v13 = vpop.eup %7625  ;;  %7651 = vrcp.f32 %v4993_v26  ;;  %v4994_v3 = vadd.f32 1.0, %v7624_v45  ;;  %v3766_v26 = vadd.f32 %v9138_v17, %v8767_v5  ;;  %v9296_v45 = vpop.f32.mrf.mxu0  ;;  %v6324_v28 = vmul.f32 -1.442695, %v3764_v51 }
 0x386   :  { %v7628_v61 = vpop.eup %7627  ;;  %7653 = vrcp.f32 %v4995_v7  ;;  %v4996_v18 = vadd.f32 1.0, %v7626_v13  ;;  %v3577_v7 = vadd.f32 %v9144_v29, %v8759_v31  ;;  %v6323_v17 = vmul.f32 -1.442695, %v3573_v10 }
 0x387   :  { %v7630_v12 = vpop.eup %7629  ;;  %5644 = vst [vmem:[#allocation10 + $0x540] sm:$0xff] %v7628_v61  ;;  %7655 = vrcp.f32 %v4994_v3  ;;  %v6325_v29 = vmul.f32 -1.442695, %v3766_v26  ;;  %v3772_v61 = vadd.f32 %v9148_v46, %v8767_v5  ;;  %v3581_v51 = vadd.f32 %v9168_v33, %v8759_v31 }
 0x388   :  { %v7632_v37 = vpop.eup %7631  ;;  %5646 = vst [vmem:[#allocation10 + $0x550] sm:$0xff] %v7630_v12  ;;  %7657 = vrcp.f32 %v4996_v18  ;;  %v9308_v18 = vpop.f32.mrf.mxu0  ;;  %v6329_v55 = vmul.f32 -1.442695, %v3577_v7  ;;  %v3774_v10 = vadd.f32 %v9160_v62, %v8761_v44  ;;  %v3776_v33 = vadd.f32 %v9172_v23, %v8767_v5 }
 0x389   :  { %v7634_v8 = vpop.eup %7633  ;;  %5645 = vst [vmem:[#allocation10 + $0x548] sm:$0xff] %v7632_v37  ;;  %7659 = vpow2.f32 %v6315_v1  ;;  %v3579_v1 = vadd.f32 %v9156_v48, %v8765_v38  ;;  %v9312_v12 = vpop.f32.mrf.mxu1  ;;  %v6331_v48 = vmul.f32 -1.442695, %v3770_v19  ;;  %v6332_v31 = vmul.f32 -1.442695, %v3772_v61 }
 0x38a   :  { %v7636_v13 = vpop.eup %7635  ;;  %5647 = vst [vmem:[#allocation10 + $0x558] sm:$0xff] %v7634_v8  ;;  %7661 = vpow2.f32 %v6317_v50  ;;  %v9320_v8 = vpop.f32.mrf.mxu0  ;;  %v6336_v44 = vmul.f32 -1.442695, %v3581_v51  ;;  %v6339_v5 = vmul.f32 -1.442695, %v3776_v33  ;;  %v2799_v61 = vsub.s32 4, %v9792_v52 }
 0x38b   :  { %v7638_v3 = vpop.eup %7637  ;;  %5651 = vst [vmem:[#allocation10 + $0x578] sm:$0xff] %v7636_v13  ;;  %7663 = vpow2.f32 %v6316_v60  ;;  %v6330_v46 = vmul.f32 -1.442695, %v3579_v1  ;;  %v9322_v62 = vpop.f32.mrf.mxu1  ;;  %v6338_v13 = vmul.f32 -1.442695, %v3774_v10 }
 0x38c   :  { %v7640_v30 = vpop.eup %7639  ;;  %5653 = vst [vmem:[#allocation10 + $0x588] sm:$0xff] %v7638_v3  ;;  %7665 = vpow2.f32 %v6318_v57  ;;  %v3583_v57 = vadd.f32 %v9180_v15, %v8765_v38  ;;  %v9324_v23 = vpop.f32.mrf.mxu0 }
 0x38d   :  { %v7642_v50 = vpop.eup %7641  ;;  %5652 = vst [vmem:[#allocation10 + $0x580] sm:$0xff] %v7640_v30  ;;  %7667 = vpow2.f32 %v6322_v43  ;;  %v9326_v3 = vpop.f32.mrf.mxu1 }
 0x38e   :  { %v7644_v60 = vpop.eup %7643  ;;  %5654 = vst [vmem:[#allocation10 + $0x590] sm:$0xff] %v7642_v50  ;;  %7669 = vpow2.f32 %v6324_v28  ;;  %v6337_v15 = vmul.f32 -1.442695, %v3583_v57 }
 0x38f   :  { %v7646_v37 = vpop.eup %7645  ;;  %5658 = vst [vmem:[#allocation10 + $0x5b0] sm:$0xff] %v7644_v60  ;;  %7671 = vpow2.f32 %v6323_v17 }
 0x390   :  { %v7648_v26 = vpop.eup %7647  ;;  %5660 = vst [vmem:[#allocation10 + $0x5c0] sm:$0xff] %v7646_v37  ;;  %7673 = vpow2.f32 %v6325_v29  ;;  %v2803_v37 = vsub.s32 5, %v9792_v52 }
 0x391   :  { %v7650_v43 = vpop.eup %7649  ;;  %5659 = vst [vmem:[#allocation10 + $0x5b8] sm:$0xff] %v7648_v26  ;;  %7675 = vpow2.f32 %v6329_v55  ;;  %v9329_v55 = vpop.f32.mrf.mxu0  ;;  %v2807_v26 = vsub.s32 6, %v9792_v52 }
 0x392   :  { %v7652_v7 = vpop.eup %7651  ;;  %5661 = vst [vmem:[#allocation10 + $0x5c8] sm:$0xff] %v7650_v43  ;;  %7677 = vpow2.f32 %v6331_v48  ;;  %v9331_v48 = vpop.f32.mrf.mxu1 }
 0x393   :  { %v7654_v38 = vpop.eup %7653  ;;  %5665 = vst [vmem:[#allocation10 + $0x5e8] sm:$0xff] %v7652_v7  ;;  %7679 = vpow2.f32 %v6330_v46 }
 0x394   :  { %v7656_v28 = vpop.eup %7655  ;;  %5667 = vst [vmem:[#allocation10 + $0x5f8] sm:$0xff] %v7654_v38  ;;  %7681 = vpow2.f32 %v6332_v31 }
 0x395   :  { %v7658_v19 = vpop.eup %7657  ;;  %5666 = vst [vmem:[#allocation10 + $0x5f0] sm:$0xff] %v7656_v28  ;;  %7683 = vpow2.f32 %v6336_v44  ;;  %v8107_v44 = vld [vmem:[%s9723_s4] sm:$0xff]  ;;  %v9342_v28 = vpop.f32.mrf.mxu1  ;;  %s8225_s4 = smov [#allocation10]  }
 0x396   :  { %v7660_v17 = vpop.eup %7659  ;;  %5668 = vst [vmem:[#allocation10 + $0x600] sm:$0xff] %v7658_v19  ;;  %7685 = vpow2.f32 %v6338_v13  ;;  %v9338_v7 = vrot.slane %v8107_v44, %v2799_v61  ;;  %v9340_v13 = vpop.f32.mrf.mxu0  ;;  %v9344_v19 = vrot.slane %v8107_v44, %v2803_v37  ;;  %s5705_s17 = sshll.u32 %s8225_s4, 4  ;;  %s5706_s17 = int_to_ptr.vmem [resolvable:$true] %s5705_s17 }
 0x397   :  { %v7662_v1 = vpop.eup %7661  ;;  %v5000_v30 = vadd.f32 1.0, %v7660_v17  ;;  %7687 = vpow2.f32 %v6337_v15  ;;  %s8188_s18 = scalar_lea.vmem %s5706_s17, 28672  ;;  %p8193_p7 = scmp.lt.s32.totalorder %s5706_s17, %s5706_s17 }
 0x398   :  { %v7664_v29 = vpop.eup %7663  ;;  %v5002_v50 = vadd.f32 1.0, %v7662_v1  ;;  %7689 = vpow2.f32 %v6339_v5  ;;  %p8189_p6 = scmp.ne.s32.totalorder %s5706_s17, %s8188_s18  ;;  %p8194_p8 = scmp.lt.s32.totalorder %s8188_s18, %s8188_s18 }
 0x399   :  { %v7666_v51 = vpop.eup %7665  ;;  %7691 = vrcp.f32 %v5000_v30  ;;  %v5001_v60 = vadd.f32 1.0, %v7664_v29  ;;  %v9346_v30 = vrot.slane %v8107_v44, %v2807_v26  ;;  %v6361_v29 = vadd.f32 %v9194_v41, %v9184_v14 }
 0x39a   :  { %v7668_v10 = vpop.eup %7667  ;;  %7693 = vrcp.f32 %v5002_v50  ;;  %v5003_v46 = vadd.f32 1.0, %v7666_v51  ;;  %v3813_v51 = vadd.f32 %v9192_v0, %v9338_v7  ;;  %v6364_v14 = vadd.f32 %v9202_v27, %v9198_v25  ;;  %p8195_p9 = por %p8194_p8, %p8193_p7 }
 0x39b   :  { %v7670_v57 = vpop.eup %7669  ;;  %7695 = vrcp.f32 %v5001_v60  ;;  %v5007_v31 = vadd.f32 1.0, %v7668_v10  ;;  %v9352_v60 = vpop.f32.mrf.mxu0  ;;  %v4006_v0 = vadd.f32 %v6361_v29, %v9346_v30  ;;  %v3819_v25 = vadd.f32 %v9204_v47, %v9344_v19 }
 0x39c   :  { %v7672_v33 = vpop.eup %7671  ;;  %7697 = vrcp.f32 %v5003_v46  ;;  %v5009_v43 = vadd.f32 1.0, %v7670_v57  ;;  %v9354_v46 = vpop.f32.mrf.mxu1  ;;  %v6367_v27 = vadd.f32 %v9212_v36, %v9206_v32  ;;  %v3825_v32 = vadd.f32 %v9220_v20, %v9344_v19  ;;  %p8196_p10 = pnand %p8195_p9, %p8189_p6 }
 0x39d   :  { %v7674_v38 = vpop.eup %7673  ;;  %7699 = vrcp.f32 %v5007_v31  ;;  %v5008_v15 = vadd.f32 1.0, %v7672_v33  ;;  %v3815_v31 = vadd.f32 %v9196_v11, %v9344_v19  ;;  %v6370_v36 = vadd.f32 %v9236_v42, %v9224_v54 }
 0x39e   :  { %v7676_v5 = vpop.eup %7675  ;;  %7701 = vrcp.f32 %v5009_v43  ;;  %v5010_v52 = vadd.f32 1.0, %v7674_v38  ;;  %v6123_v38 = vmul.f32 -1.442695, %v3813_v51  ;;  %v6125_v51 = vmul.f32 -1.442695, %v4006_v0 }
 0x39f   :  { %v7678_v17 = vpop.eup %7677  ;;  %7703 = vrcp.f32 %v5008_v15  ;;  %v5014_v1 = vadd.f32 1.0, %v7676_v5  ;;  %v3817_v15 = vadd.f32 %v9200_v63, %v9338_v7  ;;  %v9363_v5 = vpop.f32.mrf.mxu0  ;;  %v3827_v20 = vadd.f32 %v9232_v24, %v9338_v7 }
 0x3a0   :  { %v7680_v61 = vpop.eup %7679  ;;  %7705 = vrcp.f32 %v5010_v52  ;;  %v5016_v50 = vadd.f32 1.0, %v7678_v17  ;;  %v9369_v17 = vpop.f32.mrf.mxu1  ;;  %v3829_v42 = vadd.f32 %v9244_v16, %v9344_v19 }
 0x3a1   :  { %v7682_v10 = vpop.eup %7681  ;;  %7707 = vrcp.f32 %v5014_v1  ;;  %v5015_v37 = vadd.f32 1.0, %v7680_v61  ;;  %v6124_v61 = vmul.f32 -1.442695, %v3815_v31  ;;  %v6130_v47 = vmul.f32 -1.442695, %v3817_v15 }
 0x3a2   :  { %v7684_v57 = vpop.eup %7683  ;;  %7709 = vrcp.f32 %v5016_v50  ;;  %v5017_v26 = vadd.f32 1.0, %v7682_v10  ;;  %v4009_v50 = vadd.f32 %v6364_v14, %v9346_v30  ;;  %v3823_v10 = vadd.f32 %v9208_v40, %v9338_v7 }
 0x3a3   :  { %v7686_v41 = vpop.eup %7685  ;;  %7711 = vrcp.f32 %v5015_v37  ;;  %v5021_v33 = vadd.f32 1.0, %v7684_v57  ;;  %v9378_v57 = vpop.f32.mrf.mxu0  ;;  %v6131_v31 = vmul.f32 -1.442695, %v3819_v25  ;;  %v4014_v14 = vadd.f32 %v6367_v27, %v9346_v30 }
 0x3a4   :  { %v7688_v43 = vpop.eup %7687  ;;  %7713 = vrcp.f32 %v5017_v26  ;;  %v5023_v44 = vadd.f32 1.0, %v7686_v41  ;;  %v9381_v41 = vpop.f32.mrf.mxu1  ;;  %v6137_v54 = vmul.f32 -1.442695, %v3823_v10  ;;  %v4017_v15 = vadd.f32 %v6370_v36, %v9346_v30 }
 0x3a5   :  { %v7690_v52 = vpop.eup %7689  ;;  %7715 = vrcp.f32 %v5021_v33  ;;  %v5022_v11 = vadd.f32 1.0, %v7688_v43  ;;  %v6132_v33 = vmul.f32 -1.442695, %v4009_v50  ;;  %v6373_v43 = vadd.f32 %v9258_v9, %v9248_v6 }
 0x3a6   :  { %v7692_v1 = vpop.eup %7691  ;;  %7717 = vrcp.f32 %v5023_v44  ;;  %v5024_v29 = vadd.f32 1.0, %v7690_v52  ;;  %v9390_v52 = vpop.f32.mrf.mxu0  ;;  %v6139_v24 = vmul.f32 -1.442695, %v4014_v14  ;;  %v3833_v25 = vadd.f32 %v9256_v35, %v9338_v7 }
 0x3a7   :  { %v7694_v63 = vpop.eup %7693  ;;  %5672 = vst [vmem:[#allocation10 + $0x620] sm:$0xff] %v7692_v1  ;;  %7719 = vrcp.f32 %v5022_v11  ;;  %v9394_v27 = vpop.f32.mrf.mxu1  ;;  %v6144_v6 = vmul.f32 -1.442695, %v3827_v20  ;;  %v3835_v9 = vadd.f32 %v9260_v39, %v9344_v19  ;;  %v3837_v35 = vadd.f32 %v9264_v22, %v9338_v7 }
 0x3a8   :  { %v7696_v37 = vpop.eup %7695  ;;  %5674 = vst [vmem:[#allocation10 + $0x630] sm:$0xff] %v7694_v63  ;;  %7721 = vrcp.f32 %v5024_v29  ;;  %v6145_v29 = vmul.f32 -1.442695, %v3829_v42  ;;  %v6146_v63 = vmul.f32 -1.442695, %v4017_v15 }
 0x3a9   :  { %v7698_v26 = vpop.eup %7697  ;;  %5673 = vst [vmem:[#allocation10 + $0x628] sm:$0xff] %v7696_v37  ;;  %7723 = vpow2.f32 %v6123_v38  ;;  %v6138_v38 = vmul.f32 -1.442695, %v3825_v32  ;;  %v6151_v37 = vmul.f32 -1.442695, %v3833_v25  ;;  %v9403_v39 = vpop.f32.mrf.mxu1 }
 0x3aa   :  { %v7700_v40 = vpop.eup %7699  ;;  %5675 = vst [vmem:[#allocation10 + $0x638] sm:$0xff] %v7698_v26  ;;  %7725 = vpow2.f32 %v6124_v61  ;;  %v4022_v61 = vadd.f32 %v6373_v43, %v9346_v30  ;;  %v6152_v32 = vmul.f32 -1.442695, %v3835_v9  ;;  %v6158_v22 = vmul.f32 -1.442695, %v3837_v35 }
 0x3ab   :  { %v7702_v0 = vpop.eup %7701  ;;  %5679 = vst [vmem:[#allocation10 + $0x658] sm:$0xff] %v7700_v40  ;;  %7727 = vpow2.f32 %v6125_v51  ;;  %v9401_v51 = vpop.f32.mrf.mxu0 }
 0x3ac   :  { %v7704_v44 = vpop.eup %7703  ;;  %5681 = vst [vmem:[#allocation10 + $0x668] sm:$0xff] %v7702_v0  ;;  %7729 = vpow2.f32 %v6130_v47  ;;  %v6153_v26 = vmul.f32 -1.442695, %v4022_v61 }
 0x3ad   :  { %v7706_v11 = vpop.eup %7705  ;;  %5680 = vst [vmem:[#allocation10 + $0x660] sm:$0xff] %v7704_v44  ;;  %7731 = vpow2.f32 %v6131_v31  ;;  %v9405_v14 = vpop.f32.mrf.mxu0 }
 0x3ae   :  { %v7708_v16 = vpop.eup %7707  ;;  %5682 = vst [vmem:[#allocation10 + $0x670] sm:$0xff] %v7706_v11  ;;  %7733 = vpow2.f32 %v6132_v33  ;;  %v9407_v33 = vpop.f32.mrf.mxu1 }
 0x3af   :  { %v7710_v1 = vpop.eup %7709  ;;  %5686 = vst [vmem:[#allocation10 + $0x690] sm:$0xff] %v7708_v16  ;;  %7735 = vpow2.f32 %v6137_v54  ;;  %v9409_v44 = vpop.f32.mrf.mxu0 }
 0x3b0   :  { %v7712_v50 = vpop.eup %7711  ;;  %5688 = vst [vmem:[#allocation10 + $0x6a0] sm:$0xff] %v7710_v1  ;;  %7737 = vpow2.f32 %v6138_v38  ;;  %v9411_v11 = vpop.f32.mrf.mxu1 }
 0x3b1   :  { %v7714_v10 = vpop.eup %7713  ;;  %5687 = vst [vmem:[#allocation10 + $0x698] sm:$0xff] %v7712_v50  ;;  %7739 = vpow2.f32 %v6139_v24 }
 0x3b2   :  { %v7716_v47 = vpop.eup %7715  ;;  %5689 = vst [vmem:[#allocation10 + $0x6a8] sm:$0xff] %v7714_v10  ;;  %7741 = vpow2.f32 %v6144_v6 }
 0x3b3   :  { %v7718_v36 = vpop.eup %7717  ;;  %5693 = vst [vmem:[#allocation10 + $0x6c8] sm:$0xff] %v7716_v47  ;;  %7743 = vpow2.f32 %v6145_v29  ;;  %v9413_v29 = vpop.f32.mrf.mxu0 }
 0x3b4   :  { %v7720_v31 = vpop.eup %7719  ;;  %5695 = vst [vmem:[#allocation10 + $0x6d8] sm:$0xff] %v7718_v36  ;;  %7745 = vpow2.f32 %v6146_v63  ;;  %v9415_v63 = vpop.f32.mrf.mxu1 }
 0x3b5   :  { %v7722_v40 = vpop.eup %7721  ;;  %5694 = vst [vmem:[#allocation10 + $0x6d0] sm:$0xff] %v7720_v31  ;;  %7747 = vpow2.f32 %v6151_v37  ;;  %v6376_v37 = vadd.f32 %v9266_v56, %v9262_v59  ;;  %v9419_v31 = vpop.f32.mrf.mxu0 }
 0x3b6   :  { %v7724_v20 = vpop.eup %7723  ;;  %5696 = vst [vmem:[#allocation10 + $0x6e0] sm:$0xff] %v7722_v40  ;;  %7749 = vpow2.f32 %v6152_v32 }
 0x3b7   :  { %v7726_v0 = vpop.eup %7725  ;;  %v4808_v54 = vadd.f32 1.0, %v7724_v20  ;;  %7751 = vpow2.f32 %v6153_v26  ;;  %v3839_v20 = vadd.f32 %v9268_v4, %v9344_v19  ;;  %v3845_v4 = vadd.f32 %v9284_v49, %v9344_v19 }
 0x3b8   :  { %v7728_v42 = vpop.eup %7727  ;;  %v4809_v43 = vadd.f32 1.0, %v7726_v0  ;;  %7753 = vpow2.f32 %v6158_v22  ;;  %v6379_v0 = vadd.f32 %v9276_v2, %v9270_v21  ;;  %v6382_v21 = vadd.f32 %v9300_v58, %v9288_v53  ;;  %v9434_v2 = vpop.f32.mrf.mxu0 }
 0x3b9   :  { %v7730_v38 = vpop.eup %7729  ;;  %7755 = vrcp.f32 %v4808_v54  ;;  %v4810_v15 = vadd.f32 1.0, %v7728_v42  ;;  %v9425_v54 = vpop.f32.mrf.mxu1  ;;  %v4025_v42 = vadd.f32 %v6376_v37, %v9346_v30  ;;  %v3847_v49 = vadd.f32 %v9296_v45, %v9338_v7 }
 0x3ba   :  { %v7732_v24 = vpop.eup %7731  ;;  %7757 = vrcp.f32 %v4809_v43  ;;  %v4815_v25 = vadd.f32 1.0, %v7730_v38  ;;  %v3849_v58 = vadd.f32 %v9308_v18, %v9344_v19  ;;  %v6385_v37 = vadd.f32 %v9322_v62, %v9312_v12 }
 0x3bb   :  { %v7734_v16 = vpop.eup %7733  ;;  %7759 = vrcp.f32 %v4810_v15  ;;  %v4816_v6 = vadd.f32 1.0, %v7732_v24  ;;  %v3843_v15 = vadd.f32 %v9272_v34, %v9338_v7  ;;  %v6172_v12 = vmul.f32 -1.442695, %v3847_v49 }
 0x3bc   :  { %v7736_v9 = vpop.eup %7735  ;;  %7761 = vrcp.f32 %v4815_v25  ;;  %v4817_v1 = vadd.f32 1.0, %v7734_v16  ;;  %v3855_v62 = vadd.f32 %v9324_v23, %v9344_v19 }
 0x3bd   :  { %v7738_v61 = vpop.eup %7737  ;;  %7763 = vrcp.f32 %v4816_v6  ;;  %v4822_v50 = vadd.f32 1.0, %v7736_v9  ;;  %v6159_v9 = vmul.f32 -1.442695, %v3839_v20  ;;  %v6165_v53 = vmul.f32 -1.442695, %v3843_v15 }
 0x3be   :  { %v7740_v35 = vpop.eup %7739  ;;  %7765 = vrcp.f32 %v4817_v1  ;;  %v4823_v10 = vadd.f32 1.0, %v7738_v61  ;;  %v4030_v1 = vadd.f32 %v6379_v0, %v9346_v30  ;;  %v9437_v61 = vpop.f32.mrf.mxu1  ;;  %v6388_v0 = vadd.f32 %v9331_v48, %v9326_v3 }
 0x3bf   :  { %v7742_v47 = vpop.eup %7741  ;;  %7767 = vrcp.f32 %v4822_v50  ;;  %v4824_v32 = vadd.f32 1.0, %v7740_v35  ;;  %v6160_v35 = vmul.f32 -1.442695, %v4025_v42  ;;  %v4038_v42 = vadd.f32 %v6385_v37, %v9346_v30 }
 0x3c0   :  { %v7744_v36 = vpop.eup %7743  ;;  %7769 = vrcp.f32 %v4823_v10  ;;  %v4829_v26 = vadd.f32 1.0, %v7742_v47  ;;  %v6167_v45 = vmul.f32 -1.442695, %v4030_v1  ;;  %v9450_v20 = vpop.f32.mrf.mxu1  ;;  %v3859_v3 = vadd.f32 %v9340_v13, %v9344_v19 }
 0x3c1   :  { %v7746_v22 = vpop.eup %7745  ;;  %7771 = vrcp.f32 %v4824_v32  ;;  %v4830_v40 = vadd.f32 1.0, %v7744_v36  ;;  %v6166_v32 = vmul.f32 -1.442695, %v3845_v4  ;;  %v4033_v36 = vadd.f32 %v6382_v21, %v9346_v30 }
 0x3c2   :  { %v7748_v59 = vpop.eup %7747  ;;  %7773 = vrcp.f32 %v4829_v26  ;;  %v4831_v56 = vadd.f32 1.0, %v7746_v22  ;;  %v9446_v26 = vpop.f32.mrf.mxu0  ;;  %v6180_v4 = vmul.f32 -1.442695, %v3855_v62  ;;  %v4041_v21 = vadd.f32 %v6388_v0, %v9346_v30 }
 0x3c3   :  { %v7750_v43 = vpop.eup %7749  ;;  %7775 = vrcp.f32 %v4830_v40  ;;  %v4836_v38 = vadd.f32 1.0, %v7748_v59  ;;  %v3853_v40 = vadd.f32 %v9320_v8, %v9338_v7  ;;  %v6174_v8 = vmul.f32 -1.442695, %v4033_v36  ;;  %v9463_v48 = vpop.f32.mrf.mxu1 }
 0x3c4   :  { %v7752_v24 = vpop.eup %7751  ;;  %7777 = vrcp.f32 %v4831_v56  ;;  %v4837_v25 = vadd.f32 1.0, %v7750_v43  ;;  %v6173_v56 = vmul.f32 -1.442695, %v3849_v58  ;;  %v9459_v15 = vpop.f32.mrf.mxu0  ;;  %v3865_v13 = vadd.f32 %v9363_v5, %v9344_v19 }
 0x3c5   :  { %v7754_v16 = vpop.eup %7753  ;;  %7779 = vrcp.f32 %v4836_v38  ;;  %v4838_v6 = vadd.f32 1.0, %v7752_v24  ;;  %v3857_v38 = vadd.f32 %v9329_v55, %v9338_v7  ;;  %v6179_v23 = vmul.f32 -1.442695, %v3853_v40  ;;  %v9472_v49 = vpop.f32.mrf.mxu1 }
 0x3c6   :  { %v7756_v34 = vpop.eup %7755  ;;  %7781 = vrcp.f32 %v4837_v25  ;;  %v4843_v50 = vadd.f32 1.0, %v7754_v16  ;;  %v6181_v55 = vmul.f32 -1.442695, %v4038_v42  ;;  %v6194_v5 = vmul.f32 -1.442695, %v3865_v13 }
 0x3c7   :  { %v7758_v10 = vpop.eup %7757  ;;  %5480 = vst [vmem:[#allocation10 + $0x20] sm:$0xff] %v7756_v34  ;;  %7783 = vrcp.f32 %v4838_v6  ;;  %v3863_v6 = vadd.f32 %v9352_v60, %v9338_v7  ;;  %v6186_v1 = vmul.f32 -1.442695, %v3857_v38  ;;  %v9470_v34 = vpop.f32.mrf.mxu0 }
 0x3c8   :  { %v7760_v47 = vpop.eup %7759  ;;  %5481 = vst [vmem:[#allocation10 + $0x28] sm:$0xff] %v7758_v10  ;;  %7785 = vrcp.f32 %v4843_v50  ;;  %v9476_v36 = vpop.f32.mrf.mxu1 }
 0x3c9   :  { %v7762_v22 = vpop.eup %7761  ;;  %5482 = vst [vmem:[#allocation10 + $0x30] sm:$0xff] %v7760_v47  ;;  %7787 = vpow2.f32 %v6159_v9  ;;  %v6193_v58 = vmul.f32 -1.442695, %v3863_v6  ;;  %v9474_v47 = vpop.f32.mrf.mxu0 }
 0x3ca   :  { %v7764_v18 = vpop.eup %7763  ;;  %5487 = vst [vmem:[#allocation10 + $0x58] sm:$0xff] %v7762_v22  ;;  %7789 = vpow2.f32 %v6160_v35  ;;  %v6187_v35 = vmul.f32 -1.442695, %v3859_v3  ;;  %v6391_v3 = vadd.f32 %v9354_v46, %v9342_v28  ;;  %v6394_v28 = vadd.f32 %v9381_v41, %v9369_v17 }
 0x3cb   :  { %v7766_v59 = vpop.eup %7765  ;;  %5488 = vst [vmem:[#allocation10 + $0x60] sm:$0xff] %v7764_v18  ;;  %7791 = vpow2.f32 %v6165_v53  ;;  %v6188_v53 = vmul.f32 -1.442695, %v4041_v21  ;;  %v9478_v62 = vpop.f32.mrf.mxu0  ;;  %v6397_v17 = vadd.f32 %v9403_v39, %v9394_v27  ;;  %v3875_v39 = vadd.f32 %v9405_v14, %v9344_v19 }
 0x3cc   :  { %v7768_v43 = vpop.eup %7767  ;;  %5489 = vst [vmem:[#allocation10 + $0x68] sm:$0xff] %v7766_v59  ;;  %7793 = vpow2.f32 %v6166_v32 }
 0x3cd   :  { %v7770_v24 = vpop.eup %7769  ;;  %5494 = vst [vmem:[#allocation10 + $0x90] sm:$0xff] %v7768_v43  ;;  %7795 = vpow2.f32 %v6167_v45 }
 0x3ce   :  { %v7772_v25 = vpop.eup %7771  ;;  %5495 = vst [vmem:[#allocation10 + $0x98] sm:$0xff] %v7770_v24  ;;  %7797 = vpow2.f32 %v6172_v12 }
 0x3cf   :  { %v7774_v16 = vpop.eup %7773  ;;  %5496 = vst [vmem:[#allocation10 + $0xa0] sm:$0xff] %v7772_v25  ;;  %7799 = vpow2.f32 %v6173_v56  ;;  %v9480_v56 = vpop.f32.mrf.mxu1 }
 0x3d0   :  { %v7776_v9 = vpop.eup %7775  ;;  %5501 = vst [vmem:[#allocation10 + $0xc8] sm:$0xff] %v7774_v16  ;;  %7801 = vpow2.f32 %v6174_v8  ;;  %v9484_v25 = vpop.f32.mrf.mxu0 }
 0x3d1   :  { %v7778_v50 = vpop.eup %7777  ;;  %5502 = vst [vmem:[#allocation10 + $0xd0] sm:$0xff] %v7776_v9  ;;  %7803 = vpow2.f32 %v6179_v23  ;;  %v9486_v16 = vpop.f32.mrf.mxu1 }
 0x3d2   :  { %v7780_v10 = vpop.eup %7779  ;;  %5503 = vst [vmem:[#allocation10 + $0xd8] sm:$0xff] %v7778_v50  ;;  %7805 = vpow2.f32 %v6180_v4  ;;  %v9491_v46 = vpop.f32.mrf.mxu0 }
 0x3d3   :  { %v7782_v60 = vpop.eup %7781  ;;  %5508 = vst [vmem:[#allocation10 + $0x100] sm:$0xff] %v7780_v10  ;;  %7807 = vpow2.f32 %v6181_v55 }
 0x3d4   :  { %v7784_v37 = vpop.eup %7783  ;;  %5509 = vst [vmem:[#allocation10 + $0x108] sm:$0xff] %v7782_v60  ;;  %7809 = vpow2.f32 %v6186_v1  ;;  %v3867_v60 = vadd.f32 %v9378_v57, %v9338_v7  ;;  %v4049_v57 = vadd.f32 %v6394_v28, %v9346_v30  ;;  %v3883_v28 = vadd.f32 %v9419_v31, %v9338_v7 }
 0x3d5   :  { %v7786_v32 = vpop.eup %7785  ;;  %5510 = vst [vmem:[#allocation10 + $0x110] sm:$0xff] %v7784_v37  ;;  %7811 = vpow2.f32 %v6187_v35  ;;  %v4046_v35 = vadd.f32 %v6391_v3, %v9346_v30  ;;  %v4054_v3 = vadd.f32 %v6397_v17, %v9346_v30 }
 0x3d6   :  { %v7788_v22 = vpop.eup %7787  ;;  %5515 = vst [vmem:[#allocation10 + $0x138] sm:$0xff] %v7786_v32  ;;  %7813 = vpow2.f32 %v6188_v53 }
 0x3d7   :  { %v7790_v45 = vpop.eup %7789  ;;  %v4844_v40 = vadd.f32 1.0, %v7788_v22  ;;  %7815 = vpow2.f32 %v6193_v58  ;;  %v9495_v58 = vpop.f32.mrf.mxu1 }
 0x3d8   :  { %v7792_v18 = vpop.eup %7791  ;;  %v4845_v12 = vadd.f32 1.0, %v7790_v45  ;;  %7817 = vpow2.f32 %v6194_v5  ;;  %v3869_v45 = vadd.f32 %v9390_v52, %v9344_v19 }
 0x3d9   :  { %v7794_v0 = vpop.eup %7793  ;;  %7819 = vrcp.f32 %v4844_v40  ;;  %v4850_v59 = vadd.f32 1.0, %v7792_v18  ;;  %v6195_v18 = vmul.f32 -1.442695, %v4046_v35  ;;  %v6209_v35 = vmul.f32 -1.442695, %v4054_v3 }
 0x3da   :  { %v7796_v42 = vpop.eup %7795  ;;  %7821 = vrcp.f32 %v4845_v12  ;;  %v4851_v43 = vadd.f32 1.0, %v7794_v0  ;;  %v9502_v12 = vpop.f32.mrf.mxu0 }
 0x3db   :  { %v7798_v8 = vpop.eup %7797  ;;  %7823 = vrcp.f32 %v4850_v59  ;;  %v4852_v38 = vadd.f32 1.0, %v7796_v42  ;;  %v6200_v42 = vmul.f32 -1.442695, %v3867_v60 }
 0x3dc   :  { %v7800_v24 = vpop.eup %7799  ;;  %7825 = vrcp.f32 %v4851_v43  ;;  %v4857_v23 = vadd.f32 1.0, %v7798_v8  ;;  %v3873_v43 = vadd.f32 %v9401_v51, %v9338_v7  ;;  %v9506_v8 = vpop.f32.mrf.mxu1  ;;  %v6202_v51 = vmul.f32 -1.442695, %v4049_v57 }
 0x3dd   :  { %v7802_v4 = vpop.eup %7801  ;;  %7827 = vrcp.f32 %v4852_v38  ;;  %v4858_v21 = vadd.f32 1.0, %v7800_v24  ;;  %v6400_v38 = vadd.f32 %v9411_v11, %v9407_v33  ;;  %v3879_v33 = vadd.f32 %v9413_v29, %v9344_v19 }
 0x3de   :  { %v7804_v55 = vpop.eup %7803  ;;  %7829 = vrcp.f32 %v4857_v23  ;;  %v4859_v6 = vadd.f32 1.0, %v7802_v4  ;;  %v6201_v23 = vmul.f32 -1.442695, %v3869_v45  ;;  %v6207_v14 = vmul.f32 -1.442695, %v3873_v43 }
 0x3df   :  { %v7806_v9 = vpop.eup %7805  ;;  %7831 = vrcp.f32 %v4858_v21  ;;  %v4864_v1 = vadd.f32 1.0, %v7804_v55  ;;  %v3877_v21 = vadd.f32 %v9409_v44, %v9338_v7  ;;  %v9515_v55 = vpop.f32.mrf.mxu0  ;;  %v6403_v11 = vadd.f32 %v9425_v54, %v9415_v63 }
 0x3e0   :  { %v7808_v13 = vpop.eup %7807  ;;  %7833 = vrcp.f32 %v4859_v6  ;;  %v4865_v50 = vadd.f32 1.0, %v7806_v9  ;;  %v9521_v9 = vpop.f32.mrf.mxu1  ;;  %v4057_v44 = vadd.f32 %v6400_v38, %v9346_v30  ;;  %v3885_v63 = vadd.f32 %v9434_v2, %v9344_v19 }
 0x3e1   :  { %v7810_v10 = vpop.eup %7809  ;;  %7835 = vrcp.f32 %v4864_v1  ;;  %v4866_v53 = vadd.f32 1.0, %v7808_v13  ;;  %v6208_v13 = vmul.f32 -1.442695, %v3875_v39  ;;  %v6214_v29 = vmul.f32 -1.442695, %v3877_v21 }
 0x3e2   :  { %v7812_v37 = vpop.eup %7811  ;;  %7837 = vrcp.f32 %v4865_v50  ;;  %v4871_v5 = vadd.f32 1.0, %v7810_v10  ;;  %v6406_v54 = vadd.f32 %v9450_v20, %v9437_v61  ;;  %v3887_v2 = vadd.f32 %v9446_v26, %v9338_v7 }
 0x3e3   :  { %v7814_v32 = vpop.eup %7813  ;;  %7839 = vrcp.f32 %v4866_v53  ;;  %v4872_v22 = vadd.f32 1.0, %v7812_v37  ;;  %v9530_v53 = vpop.f32.mrf.mxu0  ;;  %v6215_v37 = vmul.f32 -1.442695, %v3879_v33  ;;  %v6221_v61 = vmul.f32 -1.442695, %v3883_v28 }
 0x3e4   :  { %v7816_v41 = vpop.eup %7815  ;;  %7841 = vrcp.f32 %v4871_v5  ;;  %v4873_v40 = vadd.f32 1.0, %v7814_v32  ;;  %v4062_v5 = vadd.f32 %v6403_v11, %v9346_v30  ;;  %v9533_v32 = vpop.f32.mrf.mxu1  ;;  %v3889_v20 = vadd.f32 %v9459_v15, %v9344_v19 }
 0x3e5   :  { %v7818_v0 = vpop.eup %7817  ;;  %7843 = vrcp.f32 %v4872_v22  ;;  %v4878_v59 = vadd.f32 1.0, %v7816_v41  ;;  %v6216_v22 = vmul.f32 -1.442695, %v4057_v44  ;;  %v6222_v41 = vmul.f32 -1.442695, %v3885_v63 }
 0x3e6   :  { %v7820_v52 = vpop.eup %7819  ;;  %7845 = vrcp.f32 %v4873_v40  ;;  %v4879_v27 = vadd.f32 1.0, %v7818_v0  ;;  %v4065_v40 = vadd.f32 %v6406_v54, %v9346_v30  ;;  %v6223_v0 = vmul.f32 -1.442695, %v4062_v5  ;;  %v9542_v26 = vpop.f32.mrf.mxu1 }
 0x3e7   :  { %v7822_v24 = vpop.eup %7821  ;;  %5516 = vst [vmem:[#allocation10 + $0x140] sm:$0xff] %v7820_v52  ;;  %7847 = vrcp.f32 %v4878_v59  ;;  %v6229_v15 = vmul.f32 -1.442695, %v3889_v20 }
 0x3e8   :  { %v7824_v4 = vpop.eup %7823  ;;  %5517 = vst [vmem:[#allocation10 + $0x148] sm:$0xff] %v7822_v24  ;;  %7849 = vrcp.f32 %v4879_v27  ;;  %v6230_v27 = vmul.f32 -1.442695, %v4065_v40  ;;  %v9546_v24 = vpop.f32.mrf.mxu1 }
 0x3e9   :  { %v7826_v6 = vpop.eup %7825  ;;  %5522 = vst [vmem:[#allocation10 + $0x170] sm:$0xff] %v7824_v4  ;;  %7851 = vpow2.f32 %v6195_v18  ;;  %v9540_v18 = vpop.f32.mrf.mxu0 }
 0x3ea   :  { %v7828_v1 = vpop.eup %7827  ;;  %5523 = vst [vmem:[#allocation10 + $0x178] sm:$0xff] %v7826_v6  ;;  %7853 = vpow2.f32 %v6200_v42  ;;  %v6228_v42 = vmul.f32 -1.442695, %v3887_v2  ;;  %v9550_v11 = vpop.f32.mrf.mxu1 }
 0x3eb   :  { %v7830_v50 = vpop.eup %7829  ;;  %5524 = vst [vmem:[#allocation10 + $0x180] sm:$0xff] %v7828_v1  ;;  %7855 = vpow2.f32 %v6201_v23  ;;  %v9544_v39 = vpop.f32.mrf.mxu0 }
 0x3ec   :  { %v7832_v10 = vpop.eup %7831  ;;  %5529 = vst [vmem:[#allocation10 + $0x1a8] sm:$0xff] %v7830_v50  ;;  %7857 = vpow2.f32 %v6202_v51  ;;  %v9554_v54 = vpop.f32.mrf.mxu1 }
 0x3ed   :  { %v7834_v60 = vpop.eup %7833  ;;  %5530 = vst [vmem:[#allocation10 + $0x1b0] sm:$0xff] %v7832_v10  ;;  %7859 = vpow2.f32 %v6207_v14  ;;  %v9548_v6 = vpop.f32.mrf.mxu0 }
 0x3ee   :  { %v7836_v31 = vpop.eup %7835  ;;  %5531 = vst [vmem:[#allocation10 + $0x1b8] sm:$0xff] %v7834_v60  ;;  %7861 = vpow2.f32 %v6208_v13  ;;  %v9562_v40 = vpop.f32.mrf.mxu1 }
 0x3ef   :  { %v7838_v45 = vpop.eup %7837  ;;  %5536 = vst [vmem:[#allocation10 + $0x1e0] sm:$0xff] %v7836_v31  ;;  %7863 = vpow2.f32 %v6209_v35  ;;  %v9552_v10 = vpop.f32.mrf.mxu0 }
 0x3f0   :  { %v7840_v17 = vpop.eup %7839  ;;  %5537 = vst [vmem:[#allocation10 + $0x1e8] sm:$0xff] %v7838_v45  ;;  %7865 = vpow2.f32 %v6214_v29 }
 0x3f1   :  { %v7842_v57 = vpop.eup %7841  ;;  %5538 = vst [vmem:[#allocation10 + $0x1f0] sm:$0xff] %v7840_v17  ;;  %7867 = vpow2.f32 %v6215_v37  ;;  %v9560_v20 = vpop.f32.mrf.mxu0 }
 0x3f2   :  { %v7844_v59 = vpop.eup %7843  ;;  %5543 = vst [vmem:[#allocation10 + $0x218] sm:$0xff] %v7842_v57  ;;  %7869 = vpow2.f32 %v6216_v22  ;;  %v6409_v22 = vadd.f32 %v9472_v49, %v9463_v48  ;;  %v6412_v48 = vadd.f32 %v9480_v56, %v9476_v36  ;;  %v3899_v36 = vadd.f32 %v9484_v25, %v9344_v19 }
 0x3f3   :  { %v7846_v43 = vpop.eup %7845  ;;  %5544 = vst [vmem:[#allocation10 + $0x220] sm:$0xff] %v7844_v59  ;;  %7871 = vpow2.f32 %v6221_v61  ;;  %v3893_v61 = vadd.f32 %v9470_v34, %v9338_v7  ;;  %v3895_v59 = vadd.f32 %v9474_v47, %v9344_v19  ;;  %v6415_v56 = vadd.f32 %v9495_v58, %v9486_v16 }
 0x3f4   :  { %v7848_v52 = vpop.eup %7847  ;;  %5545 = vst [vmem:[#allocation10 + $0x228] sm:$0xff] %v7846_v43  ;;  %7873 = vpow2.f32 %v6222_v41  ;;  %v4070_v34 = vadd.f32 %v6409_v22, %v9346_v30  ;;  %v3905_v16 = vadd.f32 %v9502_v12, %v9344_v19  ;;  %v6418_v58 = vadd.f32 %v9521_v9, %v9506_v8 }
 0x3f5   :  { %v7850_v38 = vpop.eup %7849  ;;  %5550 = vst [vmem:[#allocation10 + $0x250] sm:$0xff] %v7848_v52  ;;  %7875 = vpow2.f32 %v6223_v0  ;;  %v6235_v52 = vmul.f32 -1.442695, %v3893_v61  ;;  %v3907_v12 = vadd.f32 %v9515_v55, %v9338_v7  ;;  %v3909_v9 = vadd.f32 %v9530_v53, %v9344_v19 }
 0x3f6   :  { %v7852_v23 = vpop.eup %7851  ;;  %5551 = vst [vmem:[#allocation10 + $0x258] sm:$0xff] %v7850_v38  ;;  %7877 = vpow2.f32 %v6228_v42  ;;  %v9571_v38 = vpop.f32.mrf.mxu0  ;;  %v4081_v22 = vadd.f32 %v6418_v58, %v9346_v30  ;;  %v3913_v61 = vadd.f32 %v9540_v18, %v9338_v7  ;;  %v3917_v18 = vadd.f32 %v9548_v6, %v9338_v7 }
 0x3f7   :  { %v7854_v3 = vpop.eup %7853  ;;  %v4880_v4 = vadd.f32 1.0, %v7852_v23  ;;  %7879 = vpow2.f32 %v6229_v15 }
 0x3f8   :  { %v7856_v51 = vpop.eup %7855  ;;  %v4885_v21 = vadd.f32 1.0, %v7854_v3  ;;  %7881 = vpow2.f32 %v6230_v27  ;;  %v3897_v27 = vadd.f32 %v9478_v62, %v9338_v7  ;;  %v9577_v3 = vpop.f32.mrf.mxu1  ;;  %v6270_v6 = vmul.f32 -1.442695, %v3917_v18 }
 0x3f9   :  { %v7858_v14 = vpop.eup %7857  ;;  %7883 = vrcp.f32 %v4880_v4  ;;  %v4886_v33 = vadd.f32 1.0, %v7856_v51  ;;  %v3923_v18 = vadd.f32 %v9560_v20, %v9338_v7 }
 0x3fa   :  { %v7860_v1 = vpop.eup %7859  ;;  %7885 = vrcp.f32 %v4885_v21  ;;  %v4887_v13 = vadd.f32 1.0, %v7858_v14  ;;  %v6236_v21 = vmul.f32 -1.442695, %v3895_v59  ;;  %v4073_v14 = vadd.f32 %v6412_v48, %v9346_v30 }
 0x3fb   :  { %v7862_v44 = vpop.eup %7861  ;;  %7887 = vrcp.f32 %v4886_v33  ;;  %v4892_v50 = vadd.f32 1.0, %v7860_v1  ;;  %v6237_v33 = vmul.f32 -1.442695, %v4070_v34  ;;  %v3903_v1 = vadd.f32 %v9491_v46, %v9338_v7 }
 0x3fc   :  { %v7864_v35 = vpop.eup %7863  ;;  %7889 = vrcp.f32 %v4887_v13  ;;  %v4893_v28 = vadd.f32 1.0, %v7862_v44  ;;  %v6242_v25 = vmul.f32 -1.442695, %v3897_v27  ;;  %v9586_v44 = vpop.f32.mrf.mxu0  ;;  %v6258_v48 = vmul.f32 -1.442695, %v4081_v22 }
 0x3fd   :  { %v7866_v29 = vpop.eup %7865  ;;  %7891 = vrcp.f32 %v4892_v50  ;;  %v4894_v63 = vadd.f32 1.0, %v7864_v35  ;;  %v6243_v35 = vmul.f32 -1.442695, %v3899_v36  ;;  %v6249_v8 = vmul.f32 -1.442695, %v3903_v1 }
 0x3fe   :  { %v7868_v60 = vpop.eup %7867  ;;  %7893 = vrcp.f32 %v4893_v28  ;;  %v4899_v37 = vadd.f32 1.0, %v7866_v29  ;;  %v4078_v28 = vadd.f32 %v6415_v56, %v9346_v30  ;;  %v9589_v29 = vpop.f32.mrf.mxu1  ;;  %v6263_v34 = vmul.f32 -1.442695, %v3913_v61 }
 0x3ff   :  { %v7870_v5 = vpop.eup %7869  ;;  %7895 = vrcp.f32 %v4894_v63  ;;  %v4900_v31 = vadd.f32 1.0, %v7868_v60  ;;  %v6244_v63 = vmul.f32 -1.442695, %v4073_v14 }
 0x400   :  { %v7872_v2 = vpop.eup %7871  ;;  %7897 = vrcp.f32 %v4899_v37  ;;  %v4901_v45 = vadd.f32 1.0, %v7870_v5  ;;  %v6421_v37 = vadd.f32 %v9542_v26, %v9533_v32  ;;  %v6251_v55 = vmul.f32 -1.442695, %v4078_v28 }
 0x401   :  { %v7874_v17 = vpop.eup %7873  ;;  %7899 = vrcp.f32 %v4900_v31  ;;  %v4906_v41 = vadd.f32 1.0, %v7872_v2  ;;  %v6250_v31 = vmul.f32 -1.442695, %v3905_v16  ;;  %v9598_v2 = vpop.f32.mrf.mxu0  ;;  %v6256_v32 = vmul.f32 -1.442695, %v3907_v12 }
 0x402   :  { %v7876_v57 = vpop.eup %7875  ;;  %7901 = vrcp.f32 %v4901_v45  ;;  %v4907_v0 = vadd.f32 1.0, %v7874_v17  ;;  %v9602_v17 = vpop.f32.mrf.mxu1  ;;  %v3915_v26 = vadd.f32 %v9544_v39, %v9344_v19 }
 0x403   :  { %v7878_v49 = vpop.eup %7877  ;;  %7903 = vrcp.f32 %v4906_v41  ;;  %v4908_v42 = vadd.f32 1.0, %v7876_v57  ;;  %v6257_v57 = vmul.f32 -1.442695, %v3909_v9 }
 0x404   :  { %v7880_v43 = vpop.eup %7879  ;;  %7905 = vrcp.f32 %v4907_v0  ;;  %v4913_v15 = vadd.f32 1.0, %v7878_v49  ;;  %v4086_v0 = vadd.f32 %v6421_v37, %v9346_v30  ;;  %v9609_v49 = vpop.f32.mrf.mxu0 }
 0x405   :  { %v7882_v23 = vpop.eup %7881  ;;  %7907 = vrcp.f32 %v4908_v42  ;;  %v4914_v47 = vadd.f32 1.0, %v7880_v43  ;;  %v9611_v39 = vpop.f32.mrf.mxu1 }
 0x406   :  { %v7884_v4 = vpop.eup %7883  ;;  %7909 = vrcp.f32 %v4913_v15  ;;  %v4915_v51 = vadd.f32 1.0, %v7882_v23  ;;  %v6264_v15 = vmul.f32 -1.442695, %v3915_v26  ;;  %v6265_v27 = vmul.f32 -1.442695, %v4086_v0 }
 0x407   :  { %v7886_v62 = vpop.eup %7885  ;;  %5552 = vst [vmem:[#allocation10 + $0x260] sm:$0xff] %v7884_v4  ;;  %7911 = vrcp.f32 %v4914_v47  ;;  %v9613_v47 = vpop.f32.mrf.mxu0  ;;  %v3919_v26 = vadd.f32 %v9552_v10, %v9344_v19  ;;  %v3925_v10 = vadd.f32 %v9571_v38, %v9344_v19  ;;  %v3927_v38 = vadd.f32 %v9586_v44, %v9338_v7 }
 0x408   :  { %v7888_v13 = vpop.eup %7887  ;;  %5557 = vst [vmem:[#allocation10 + $0x288] sm:$0xff] %v7886_v62  ;;  %7913 = vrcp.f32 %v4915_v51  ;;  %v9615_v56 = vpop.f32.mrf.mxu1 }
 0x409   :  { %v7890_v50 = vpop.eup %7889  ;;  %5558 = vst [vmem:[#allocation10 + $0x290] sm:$0xff] %v7888_v13  ;;  %7915 = vpow2.f32 %v6235_v52 }
 0x40a   :  { %v7892_v46 = vpop.eup %7891  ;;  %5559 = vst [vmem:[#allocation10 + $0x298] sm:$0xff] %v7890_v50  ;;  %7917 = vpow2.f32 %v6236_v21 }
 0x40b   :  { %v7894_v60 = vpop.eup %7893  ;;  %5564 = vst [vmem:[#allocation10 + $0x2c0] sm:$0xff] %v7892_v46  ;;  %7919 = vpow2.f32 %v6237_v33  ;;  %v9617_v33 = vpop.f32.mrf.mxu0 }
 0x40c   :  { %v7896_v5 = vpop.eup %7895  ;;  %5565 = vst [vmem:[#allocation10 + $0x2c8] sm:$0xff] %v7894_v60  ;;  %7921 = vpow2.f32 %v6242_v25  ;;  %v9619_v25 = vpop.f32.mrf.mxu1 }
 0x40d   :  { %v7898_v45 = vpop.eup %7897  ;;  %5566 = vst [vmem:[#allocation10 + $0x2d0] sm:$0xff] %v7896_v5  ;;  %7923 = vpow2.f32 %v6243_v35  ;;  %v6424_v5 = vadd.f32 %v9550_v11, %v9546_v24 }
 0x40e   :  { %v7900_v53 = vpop.eup %7899  ;;  %5571 = vst [vmem:[#allocation10 + $0x2f8] sm:$0xff] %v7898_v45  ;;  %7925 = vpow2.f32 %v6244_v63  ;;  %v9621_v63 = vpop.f32.mrf.mxu0 }
 0x40f   :  { %v7902_v41 = vpop.eup %7901  ;;  %5572 = vst [vmem:[#allocation10 + $0x300] sm:$0xff] %v7900_v53  ;;  %7927 = vpow2.f32 %v6249_v8  ;;  %v9623_v8 = vpop.f32.mrf.mxu1  ;;  %v4089_v0 = vadd.f32 %v6424_v5, %v9346_v30 }
 0x410   :  { %v7904_v59 = vpop.eup %7903  ;;  %5573 = vst [vmem:[#allocation10 + $0x308] sm:$0xff] %v7902_v41  ;;  %7929 = vpow2.f32 %v6250_v31  ;;  %v9627_v61 = vpop.f32.mrf.mxu0  ;;  %v6427_v41 = vadd.f32 %v9562_v40, %v9554_v54  ;;  %v6430_v54 = vadd.f32 %v9589_v29, %v9577_v3  ;;  %v6277_v3 = vmul.f32 -1.442695, %v3923_v18 }
 0x411   :  { %v7906_v42 = vpop.eup %7905  ;;  %5578 = vst [vmem:[#allocation10 + $0x330] sm:$0xff] %v7904_v59  ;;  %7931 = vpow2.f32 %v6251_v55  ;;  %v3929_v29 = vadd.f32 %v9598_v2, %v9344_v19 }
 0x412   :  { %v7908_v43 = vpop.eup %7907  ;;  %5579 = vst [vmem:[#allocation10 + $0x338] sm:$0xff] %v7906_v42  ;;  %7933 = vpow2.f32 %v6256_v32  ;;  %v9642_v40 = vpop.f32.mrf.mxu0 }
 0x413   :  { %v7910_v52 = vpop.eup %7909  ;;  %5580 = vst [vmem:[#allocation10 + $0x340] sm:$0xff] %v7908_v43  ;;  %7935 = vpow2.f32 %v6257_v57  ;;  %v9633_v57 = vpop.f32.mrf.mxu1 }
 0x414   :  { %v7912_v23 = vpop.eup %7911  ;;  %5585 = vst [vmem:[#allocation10 + $0x368] sm:$0xff] %v7910_v52  ;;  %7937 = vpow2.f32 %v6258_v48  ;;  %v6271_v52 = vmul.f32 -1.442695, %v3919_v26 }
 0x415   :  { %v7914_v36 = vpop.eup %7913  ;;  %5586 = vst [vmem:[#allocation10 + $0x370] sm:$0xff] %v7912_v23  ;;  %7939 = vpow2.f32 %v6263_v34  ;;  %v9645_v23 = vpop.f32.mrf.mxu1 }
 0x416   :  { %v7916_v4 = vpop.eup %7915  ;;  %5587 = vst [vmem:[#allocation10 + $0x378] sm:$0xff] %v7914_v36  ;;  %7941 = vpow2.f32 %v6264_v15  ;;  %v6272_v36 = vmul.f32 -1.442695, %v4089_v0 }
 0x417   :  { %v7918_v51 = vpop.eup %7917  ;;  %v4920_v21 = vadd.f32 1.0, %v7916_v4  ;;  %7943 = vpow2.f32 %v6265_v27  ;;  %v4094_v27 = vadd.f32 %v6427_v41, %v9346_v30 }
 0x418   :  { %v7920_v14 = vpop.eup %7919  ;;  %v4921_v62 = vadd.f32 1.0, %v7918_v51  ;;  %7945 = vpow2.f32 %v6270_v6  ;;  %v6433_v51 = vadd.f32 %v9611_v39, %v9602_v17  ;;  %v6284_v17 = vmul.f32 -1.442695, %v3927_v38 }
 0x419   :  { %v7922_v1 = vpop.eup %7921  ;;  %7947 = vrcp.f32 %v4920_v21  ;;  %v4922_v13 = vadd.f32 1.0, %v7920_v14  ;;  %v6278_v14 = vmul.f32 -1.442695, %v3925_v10  ;;  %v6279_v44 = vmul.f32 -1.442695, %v4094_v27 }
 0x41a   :  { %v7924_v16 = vpop.eup %7923  ;;  %7949 = vrcp.f32 %v4921_v62  ;;  %v4927_v58 = vadd.f32 1.0, %v7922_v1  ;;  %v4097_v62 = vadd.f32 %v6430_v54, %v9346_v30  ;;  %v9654_v1 = vpop.f32.mrf.mxu0  ;;  %v3935_v39 = vadd.f32 %v9613_v47, %v9344_v19 }
 0x41b   :  { %v7926_v50 = vpop.eup %7925  ;;  %7951 = vrcp.f32 %v4922_v13  ;;  %v4928_v35 = vadd.f32 1.0, %v7924_v16  ;;  %v3933_v16 = vadd.f32 %v9609_v49, %v9338_v7 }
 0x41c   :  { %v7928_v28 = vpop.eup %7927  ;;  %7953 = vrcp.f32 %v4927_v58  ;;  %v4929_v46 = vadd.f32 1.0, %v7926_v50  ;;  %v9658_v58 = vpop.f32.mrf.mxu1  ;;  %v6436_v50 = vadd.f32 %v9619_v25, %v9615_v56  ;;  %v6286_v49 = vmul.f32 -1.442695, %v4097_v62 }
 0x41d   :  { %v7930_v12 = vpop.eup %7929  ;;  %7955 = vrcp.f32 %v4928_v35  ;;  %v4934_v60 = vadd.f32 1.0, %v7928_v28  ;;  %v6285_v28 = vmul.f32 -1.442695, %v3929_v29  ;;  %v6291_v47 = vmul.f32 -1.442695, %v3933_v16 }
 0x41e   :  { %v7932_v9 = vpop.eup %7931  ;;  %7957 = vrcp.f32 %v4929_v46  ;;  %v4935_v37 = vadd.f32 1.0, %v7930_v12  ;;  %v4102_v46 = vadd.f32 %v6433_v51, %v9346_v30  ;;  %v3939_v56 = vadd.f32 %v9621_v63, %v9344_v19  ;;  %v9671_v25 = vpop.f32.mrf.mxu1 }
 0x41f   :  { %v7934_v31 = vpop.eup %7933  ;;  %7959 = vrcp.f32 %v4934_v60  ;;  %v4936_v22 = vadd.f32 1.0, %v7932_v9  ;;  %v3937_v60 = vadd.f32 %v9617_v33, %v9338_v7  ;;  %v9667_v9 = vpop.f32.mrf.mxu0  ;;  %v3945_v63 = vadd.f32 %v9642_v40, %v9344_v19 }
 0x420   :  { %v7936_v45 = vpop.eup %7935  ;;  %7961 = vrcp.f32 %v4935_v37  ;;  %v4941_v55 = vadd.f32 1.0, %v7934_v31  ;;  %v6292_v31 = vmul.f32 -1.442695, %v3935_v39  ;;  %v6293_v33 = vmul.f32 -1.442695, %v4102_v46 }
 0x421   :  { %v7938_v53 = vpop.eup %7937  ;;  %7963 = vrcp.f32 %v4936_v22  ;;  %v4942_v32 = vadd.f32 1.0, %v7936_v45  ;;  %v4105_v22 = vadd.f32 %v6436_v50, %v9346_v30  ;;  %v9678_v26 = vpop.f32.mrf.mxu0  ;;  %v6439_v62 = vadd.f32 %v9633_v57, %v9623_v8 }
 0x422   :  { %v7940_v24 = vpop.eup %7939  ;;  %7965 = vrcp.f32 %v4941_v55  ;;  %v4943_v11 = vadd.f32 1.0, %v7938_v53  ;;  %v3943_v55 = vadd.f32 %v9627_v61, %v9338_v7 }
 0x423   :  { %v7942_v59 = vpop.eup %7941  ;;  %7967 = vrcp.f32 %v4942_v32  ;;  %v4948_v48 = vadd.f32 1.0, %v7940_v24  ;;  %v6298_v32 = vmul.f32 -1.442695, %v3937_v60  ;;  %v6299_v24 = vmul.f32 -1.442695, %v3939_v56 }
 0x424   :  { %v7944_v42 = vpop.eup %7943  ;;  %7969 = vrcp.f32 %v4943_v11  ;;  %v4949_v34 = vadd.f32 1.0, %v7942_v59  ;;  %v9680_v11 = vpop.f32.mrf.mxu1  ;;  %v6300_v59 = vmul.f32 -1.442695, %v4105_v22 }
 0x425   :  { %v7946_v43 = vpop.eup %7945  ;;  %7971 = vrcp.f32 %v4948_v48  ;;  %v4950_v15 = vadd.f32 1.0, %v7944_v42  ;;  %v6305_v48 = vmul.f32 -1.442695, %v3943_v55  ;;  %v6306_v42 = vmul.f32 -1.442695, %v3945_v63 }
 0x426   :  { %v7948_v20 = vpop.eup %7947  ;;  %7973 = vrcp.f32 %v4949_v34  ;;  %v4955_v6 = vadd.f32 1.0, %v7946_v43  ;;  %v9682_v34 = vpop.f32.mrf.mxu0 }
 0x427   :  { %v7950_v4 = vpop.eup %7949  ;;  %5592 = vst [vmem:[#allocation10 + $0x3a0] sm:$0xff] %v7948_v20  ;;  %7975 = vrcp.f32 %v4950_v15  ;;  %v9684_v54 = vpop.f32.mrf.mxu1 }
 0x428   :  { %v7952_v21 = vpop.eup %7951  ;;  %5593 = vst [vmem:[#allocation10 + $0x3a8] sm:$0xff] %v7950_v4  ;;  %7977 = vrcp.f32 %v4955_v6  ;;  %v9686_v20 = vpop.f32.mrf.mxu0 }
 0x429   :  { %v7954_v13 = vpop.eup %7953  ;;  %5594 = vst [vmem:[#allocation10 + $0x3b0] sm:$0xff] %v7952_v21  ;;  %7979 = vpow2.f32 %v6271_v52  ;;  %v6447_v38 = vpop.f32.mrf.mxu1 }
 0x42a   :  { %v7956_v2 = vpop.eup %7955  ;;  %5599 = vst [vmem:[#allocation10 + $0x3d8] sm:$0xff] %v7954_v13  ;;  %7981 = vpow2.f32 %v6272_v36  ;;  %v3958_v13 = vpop.f32.mrf.mxu0 }
 0x42b   :  { %v7958_v35 = vpop.eup %7957  ;;  %5600 = vst [vmem:[#allocation10 + $0x3e0] sm:$0xff] %v7956_v2  ;;  %7983 = vpow2.f32 %v6277_v3  ;;  %v6449_v2 = vpop.f32.mrf.mxu1 }
 0x42c   :  { %v7960_v12 = vpop.eup %7959  ;;  %5601 = vst [vmem:[#allocation10 + $0x3e8] sm:$0xff] %v7958_v35  ;;  %7985 = vpow2.f32 %v6278_v14  ;;  %v3962_v8 = vpop.f32.mrf.mxu0 }
 0x42d   :  { %v7962_v37 = vpop.eup %7961  ;;  %5606 = vst [vmem:[#allocation10 + $0x410] sm:$0xff] %v7960_v12  ;;  %7987 = vpow2.f32 %v6279_v44  ;;  %v4110_v12 = vadd.f32 %v6439_v62, %v9346_v30 }
 0x42e   :  { %v7964_v5 = vpop.eup %7963  ;;  %5607 = vst [vmem:[#allocation10 + $0x418] sm:$0xff] %v7962_v37  ;;  %7989 = vpow2.f32 %v6284_v17  ;;  %v3947_v37 = vadd.f32 %v9654_v1, %v9338_v7  ;;  %v3964_v1 = vpop.f32.mrf.mxu0 }
 0x42f   :  { %v7966_v45 = vpop.eup %7965  ;;  %5608 = vst [vmem:[#allocation10 + $0x420] sm:$0xff] %v7964_v5  ;;  %7991 = vpow2.f32 %v6285_v28  ;;  %v6307_v55 = vmul.f32 -1.442695, %v4110_v12 }
 0x430   :  { %v7968_v53 = vpop.eup %7967  ;;  %5613 = vst [vmem:[#allocation10 + $0x448] sm:$0xff] %v7966_v45  ;;  %7993 = vpow2.f32 %v6286_v49  ;;  %v6442_v49 = vadd.f32 %v9658_v58, %v9645_v23  ;;  %v3949_v45 = vadd.f32 %v9667_v9, %v9344_v19  ;;  %v6445_v23 = vadd.f32 %v9680_v11, %v9671_v25 }
 0x431   :  { %v7970_v41 = vpop.eup %7969  ;;  %5614 = vst [vmem:[#allocation10 + $0x450] sm:$0xff] %v7968_v53  ;;  %7995 = vpow2.f32 %v6291_v47  ;;  %v6450_v47 = vpop.f32.mrf.mxu1  ;;  %v3955_v25 = vadd.f32 %v9682_v34, %v9344_v19  ;;  %v6448_v11 = vadd.f32 %v6447_v38, %v9684_v54  ;;  %v3959_v54 = vadd.f32 %v3958_v13, %v9344_v19 }
 0x432   :  { %v7972_v0 = vpop.eup %7971  ;;  %5615 = vst [vmem:[#allocation10 + $0x458] sm:$0xff] %v7970_v41  ;;  %7997 = vpow2.f32 %v6292_v31  ;;  %v4113_v53 = vadd.f32 %v6442_v49, %v9346_v30  ;;  %v6312_v41 = vmul.f32 -1.442695, %v3947_v37 }
 0x433   :  { %v7974_v61 = vpop.eup %7973  ;;  %5620 = vst [vmem:[#allocation10 + $0x480] sm:$0xff] %v7972_v0  ;;  %7999 = vpow2.f32 %v6293_v33  ;;  %v6452_v0 = vpop.f32.mrf.mxu1  ;;  %v6327_v13 = vmul.f32 -1.442695, %v3959_v54 }
 0x434   :  { %v7976_v18 = vpop.eup %7975  ;;  %5621 = vst [vmem:[#allocation10 + $0x488] sm:$0xff] %v7974_v61  ;;  %8001 = vpow2.f32 %v6298_v32 }
 0x435   :  { %v7978_v10 = vpop.eup %7977  ;;  %5622 = vst [vmem:[#allocation10 + $0x490] sm:$0xff] %v7976_v18  ;;  %8003 = vpow2.f32 %v6299_v24  ;;  %v3953_v24 = vadd.f32 %v9678_v26, %v9338_v7  ;;  %v4118_v18 = vadd.f32 %v6445_v23, %v9346_v30  ;;  %v3957_v26 = vadd.f32 %v9686_v20, %v9338_v7 }
 0x436   :  { %v7980_v40 = vpop.eup %7979  ;;  %5627 = vst [vmem:[#allocation10 + $0x4b8] sm:$0xff] %v7978_v10  ;;  %8005 = vpow2.f32 %v6300_v59  ;;  %v6314_v10 = vmul.f32 -1.442695, %v4113_v53  ;;  %v3963_v20 = vadd.f32 %v3962_v8, %v9338_v7 }
 0x437   :  { %v7982_v43 = vpop.eup %7981  ;;  %v4956_v15 = vadd.f32 1.0, %v7980_v40  ;;  %8007 = vpow2.f32 %v6305_v48  ;;  %v6313_v48 = vmul.f32 -1.442695, %v3949_v45  ;;  %v3966_v40 = vpop.f32.mrf.mxu0  ;;  %v6319_v34 = vmul.f32 -1.442695, %v3953_v24 }
 0x438   :  { %v7984_v52 = vpop.eup %7983  ;;  %v4957_v27 = vadd.f32 1.0, %v7982_v43  ;;  %8009 = vpow2.f32 %v6306_v42 }
 0x439   :  { %v7986_v6 = vpop.eup %7985  ;;  %8011 = vrcp.f32 %v4956_v15  ;;  %v4962_v36 = vadd.f32 1.0, %v7984_v52  ;;  %v6451_v15 = vadd.f32 %v6450_v47, %v6449_v2  ;;  %v6453_v52 = vpop.f32.mrf.mxu1 }
 0x43a   :  { %v7988_v4 = vpop.eup %7987  ;;  %8013 = vrcp.f32 %v4957_v27  ;;  %v4963_v3 = vadd.f32 1.0, %v7986_v6  ;;  %v6320_v6 = vmul.f32 -1.442695, %v3955_v25 }
 0x43b   :  { %v7990_v29 = vpop.eup %7989  ;;  %8015 = vrcp.f32 %v4962_v36  ;;  %v4964_v51 = vadd.f32 1.0, %v7988_v4  ;;  %v4121_v36 = vadd.f32 %v6448_v11, %v9346_v30  ;;  %v6321_v4 = vmul.f32 -1.442695, %v4118_v18 }
 0x43c   :  { %v7992_v21 = vpop.eup %7991  ;;  %8017 = vrcp.f32 %v4963_v3  ;;  %v4969_v14 = vadd.f32 1.0, %v7990_v29  ;;  %v6326_v29 = vmul.f32 -1.442695, %v3957_v26 }
 0x43d   :  { %v7994_v44 = vpop.eup %7993  ;;  %8019 = vrcp.f32 %v4964_v51  ;;  %v4970_v16 = vadd.f32 1.0, %v7992_v21  ;;  %v3965_v51 = vadd.f32 %v3964_v1, %v9344_v19  ;;  %v3968_v21 = vpop.f32.mrf.mxu0  ;;  %v6328_v2 = vmul.f32 -1.442695, %v4121_v36 }
 0x43e   :  { %v7996_v17 = vpop.eup %7995  ;;  %8021 = vrcp.f32 %v4969_v14  ;;  %v4971_v39 = vadd.f32 1.0, %v7994_v44  ;;  %v6454_v14 = vadd.f32 %v6453_v52, %v6452_v0  ;;  %v4126_v44 = vadd.f32 %v6451_v15, %v9346_v30 }
 0x43f   :  { %v7998_v50 = vpop.eup %7997  ;;  %8023 = vrcp.f32 %v4970_v16  ;;  %v4976_v35 = vadd.f32 1.0, %v7996_v17  ;;  %v3967_v17 = vadd.f32 %v3966_v40, %v9338_v7 }
 0x440   :  { %v8000_v28 = vpop.eup %7999  ;;  %8025 = vrcp.f32 %v4971_v39  ;;  %v4977_v46 = vadd.f32 1.0, %v7998_v50  ;;  %v6333_v50 = vmul.f32 -1.442695, %v3963_v20  ;;  %v4129_v12 = vadd.f32 %v6454_v14, %v9346_v30 }
 0x441   :  { %v8002_v57 = vpop.eup %8001  ;;  %8027 = vrcp.f32 %v4976_v35  ;;  %v4978_v60 = vadd.f32 1.0, %v8000_v28  ;;  %v3969_v35 = vadd.f32 %v3968_v21, %v9344_v19  ;;  %v6335_v8 = vmul.f32 -1.442695, %v4126_v44 }
 0x442   :  { %v8004_v56 = vpop.eup %8003  ;;  %8029 = vrcp.f32 %v4977_v46  ;;  %v4983_v5 = vadd.f32 1.0, %v8002_v57  ;;  %v6334_v46 = vmul.f32 -1.442695, %v3965_v51  ;;  %v6340_v7 = vmul.f32 -1.442695, %v3967_v17 }
 0x443   :  { %v8006_v31 = vpop.eup %8005  ;;  %8031 = vrcp.f32 %v4978_v60  ;;  %v4984_v22 = vadd.f32 1.0, %v8004_v56  ;;  %v6341_v37 = vmul.f32 -1.442695, %v3969_v35  ;;  %v6342_v19 = vmul.f32 -1.442695, %v4129_v12 }
 0x444   :  { %v8008_v58 = vpop.eup %8007  ;;  %8033 = vrcp.f32 %v4983_v5  ;;  %v4985_v33 = vadd.f32 1.0, %v8006_v31 }
 0x445   :  { %v8010_v32 = vpop.eup %8009  ;;  %8035 = vrcp.f32 %v4984_v22  ;;  %v4990_v63 = vadd.f32 1.0, %v8008_v58 }
 0x446   :  { %v8012_v59 = vpop.eup %8011  ;;  %8037 = vrcp.f32 %v4985_v33  ;;  %v4991_v9 = vadd.f32 1.0, %v8010_v32 }
 0x447   :  { %v8014_v61 = vpop.eup %8013  ;;  %5628 = vst [vmem:[#allocation10 + $0x4c0] sm:$0xff] %v8012_v59  ;;  %8039 = vrcp.f32 %v4990_v63 }
 0x448   :  { %v8016_v42 = vpop.eup %8015  ;;  %5629 = vst [vmem:[#allocation10 + $0x4c8] sm:$0xff] %v8014_v61  ;;  %8041 = vrcp.f32 %v4991_v9 }
 0x449   :  { %v8018_v43 = vpop.eup %8017  ;;  %5634 = vst [vmem:[#allocation10 + $0x4f0] sm:$0xff] %v8016_v42  ;;  %8043 = vpow2.f32 %v6307_v55 }
 0x44a   :  { %v8020_v27 = vpop.eup %8019  ;;  %5635 = vst [vmem:[#allocation10 + $0x4f8] sm:$0xff] %v8018_v43  ;;  %8045 = vpow2.f32 %v6312_v41 }
 0x44b   :  { %v8022_v38 = vpop.eup %8021  ;;  %5636 = vst [vmem:[#allocation10 + $0x500] sm:$0xff] %v8020_v27  ;;  %8047 = vpow2.f32 %v6313_v48 }
 0x44c   :  { %v8024_v3 = vpop.eup %8023  ;;  %5641 = vst [vmem:[#allocation10 + $0x528] sm:$0xff] %v8022_v38  ;;  %8049 = vpow2.f32 %v6314_v10 }
 0x44d   :  { %v8026_v62 = vpop.eup %8025  ;;  %5642 = vst [vmem:[#allocation10 + $0x530] sm:$0xff] %v8024_v3  ;;  %8051 = vpow2.f32 %v6319_v34 }
 0x44e   :  { %v8028_v16 = vpop.eup %8027  ;;  %5643 = vst [vmem:[#allocation10 + $0x538] sm:$0xff] %v8026_v62  ;;  %8053 = vpow2.f32 %v6320_v6 }
 0x44f   :  { %v8030_v39 = vpop.eup %8029  ;;  %5648 = vst [vmem:[#allocation10 + $0x560] sm:$0xff] %v8028_v16  ;;  %8055 = vpow2.f32 %v6321_v4 }
 0x450   :  { %v8032_v28 = vpop.eup %8031  ;;  %5649 = vst [vmem:[#allocation10 + $0x568] sm:$0xff] %v8030_v39  ;;  %8057 = vpow2.f32 %v6326_v29 }
 0x451   :  { %v8034_v49 = vpop.eup %8033  ;;  %5650 = vst [vmem:[#allocation10 + $0x570] sm:$0xff] %v8032_v28  ;;  %8059 = vpow2.f32 %v6327_v13 }
 0x452   :  { %v8036_v57 = vpop.eup %8035  ;;  %5655 = vst [vmem:[#allocation10 + $0x598] sm:$0xff] %v8034_v49  ;;  %8061 = vpow2.f32 %v6328_v2 }
 0x453   :  { %v8038_v60 = vpop.eup %8037  ;;  %5656 = vst [vmem:[#allocation10 + $0x5a0] sm:$0xff] %v8036_v57  ;;  %8063 = vpow2.f32 %v6333_v50 }
 0x454   :  { %v8040_v47 = vpop.eup %8039  ;;  %5657 = vst [vmem:[#allocation10 + $0x5a8] sm:$0xff] %v8038_v60  ;;  %8065 = vpow2.f32 %v6334_v46 }
 0x455   :  { %v8042_v56 = vpop.eup %8041  ;;  %5662 = vst [vmem:[#allocation10 + $0x5d0] sm:$0xff] %v8040_v47  ;;  %8067 = vpow2.f32 %v6335_v8 }
 0x456   :  { %v8044_v30 = vpop.eup %8043  ;;  %5663 = vst [vmem:[#allocation10 + $0x5d8] sm:$0xff] %v8042_v56  ;;  %8069 = vpow2.f32 %v6340_v7 }
 0x457   :  { %v8046_v5 = vpop.eup %8045  ;;  %v4992_v31 = vadd.f32 1.0, %v8044_v30  ;;  %8071 = vpow2.f32 %v6341_v37 }
 0x458   :  { %v8048_v22 = vpop.eup %8047  ;;  %v4997_v45 = vadd.f32 1.0, %v8046_v5  ;;  %8073 = vpow2.f32 %v6342_v19 }
 0x459   :  { %v8050_v23 = vpop.eup %8049  ;;  %8075 = vrcp.f32 %v4992_v31  ;;  %v4998_v58 = vadd.f32 1.0, %v8048_v22 }
 0x45a   :  { %v8052_v33 = vpop.eup %8051  ;;  %8077 = vrcp.f32 %v4997_v45  ;;  %v4999_v55 = vadd.f32 1.0, %v8050_v23 }
 0x45b   :  { %v8054_v53 = vpop.eup %8053  ;;  %8079 = vrcp.f32 %v4998_v58  ;;  %v5004_v1 = vadd.f32 1.0, %v8052_v33 }
 0x45c   :  { %v8056_v32 = vpop.eup %8055  ;;  %8081 = vrcp.f32 %v4999_v55  ;;  %v5005_v63 = vadd.f32 1.0, %v8054_v53 }
 0x45d   :  { %v8058_v41 = vpop.eup %8057  ;;  %8083 = vrcp.f32 %v5004_v1  ;;  %v5006_v24 = vadd.f32 1.0, %v8056_v32 }
 0x45e   :  { %v8060_v0 = vpop.eup %8059  ;;  %8085 = vrcp.f32 %v5005_v63  ;;  %v5011_v59 = vadd.f32 1.0, %v8058_v41 }
 0x45f   :  { %v8062_v9 = vpop.eup %8061  ;;  %8087 = vrcp.f32 %v5006_v24  ;;  %v5012_v25 = vadd.f32 1.0, %v8060_v0 }
 0x460   :  { %v8064_v11 = vpop.eup %8063  ;;  %8089 = vrcp.f32 %v5011_v59  ;;  %v5013_v61 = vadd.f32 1.0, %v8062_v9 }
 0x461   :  { %v8066_v48 = vpop.eup %8065  ;;  %8091 = vrcp.f32 %v5012_v25  ;;  %v5018_v18 = vadd.f32 1.0, %v8064_v11 }
 0x462   :  { %v8068_v42 = vpop.eup %8067  ;;  %8093 = vrcp.f32 %v5013_v61  ;;  %v5019_v10 = vadd.f32 1.0, %v8066_v48 }
 0x463   :  { %v8070_v26 = vpop.eup %8069  ;;  %8095 = vrcp.f32 %v5018_v18  ;;  %v5020_v40 = vadd.f32 1.0, %v8068_v42 }
 0x464   :  { %v8072_v43 = vpop.eup %8071  ;;  %8097 = vrcp.f32 %v5019_v10  ;;  %v5025_v34 = vadd.f32 1.0, %v8070_v26 }
 0x465   :  { %v8074_v54 = vpop.eup %8073  ;;  %8099 = vrcp.f32 %v5020_v40  ;;  %v5026_v15 = vadd.f32 1.0, %v8072_v43 }
 0x466   :  { %v8076_v52 = vpop.eup %8075  ;;  %8101 = vrcp.f32 %v5025_v34  ;;  %v5027_v27 = vadd.f32 1.0, %v8074_v54 }
 0x467   :  { %v8078_v6 = vpop.eup %8077  ;;  %5664 = vst [vmem:[#allocation10 + $0x5e0] sm:$0xff] %v8076_v52  ;;  %8103 = vrcp.f32 %v5026_v15 }
 0x468   :  { %v8080_v36 = vpop.eup %8079  ;;  %5669 = vst [vmem:[#allocation10 + $0x608] sm:$0xff] %v8078_v6  ;;  %8105 = vrcp.f32 %v5027_v27 }
 0x469   :  { %v8082_v38 = vpop.eup %8081  ;;  %5670 = vst [vmem:[#allocation10 + $0x610] sm:$0xff] %v8080_v36 }
 0x46a   :  { %v8084_v4 = vpop.eup %8083  ;;  %5671 = vst [vmem:[#allocation10 + $0x618] sm:$0xff] %v8082_v38 }
 0x46b   :  { %v8086_v20 = vpop.eup %8085  ;;  %5676 = vst [vmem:[#allocation10 + $0x640] sm:$0xff] %v8084_v4 }
 0x46c   :  { %v8088_v3 = vpop.eup %8087  ;;  %5677 = vst [vmem:[#allocation10 + $0x648] sm:$0xff] %v8086_v20 }
 0x46d   :  { %v8090_v29 = vpop.eup %8089  ;;  %5678 = vst [vmem:[#allocation10 + $0x650] sm:$0xff] %v8088_v3 }
 0x46e   :  { %v8092_v51 = vpop.eup %8091  ;;  %5683 = vst [vmem:[#allocation10 + $0x678] sm:$0xff] %v8090_v29 }
 0x46f   :  { %v8094_v21 = vpop.eup %8093  ;;  %5684 = vst [vmem:[#allocation10 + $0x680] sm:$0xff] %v8092_v51 }
 0x470   :  { %v8096_v14 = vpop.eup %8095  ;;  %5685 = vst [vmem:[#allocation10 + $0x688] sm:$0xff] %v8094_v21 }
 0x471   :  { %v8098_v62 = vpop.eup %8097  ;;  %5690 = vst [vmem:[#allocation10 + $0x6b0] sm:$0xff] %v8096_v14 }
 0x472   :  { %v8100_v13 = vpop.eup %8099  ;;  %5691 = vst [vmem:[#allocation10 + $0x6b8] sm:$0xff] %v8098_v62 }
 0x473   :  { %v8102_v44 = vpop.eup %8101  ;;  %5692 = vst [vmem:[#allocation10 + $0x6c0] sm:$0xff] %v8100_v13 }
 0x474   :  { %v8104_v16 = vpop.eup %8103  ;;  %5697 = vst [vmem:[#allocation10 + $0x6e8] sm:$0xff] %v8102_v44 }
 0x475   :  { %v8106_v2 = vpop.eup %8105  ;;  %5698 = vst [vmem:[#allocation10 + $0x6f0] sm:$0xff] %v8104_v16 }
 0x476   :  { %5699 = vst [vmem:[#allocation10 + $0x6f8] sm:$0xff] %v8106_v2 }
 0x477   :  { %8199 = shalt.err (!%p8196_p10)
}
 0x478   :  { %s8226_s19 = smov 896   ;;  %s8227_s20 = smov 56  }
 0x479   :  { %5711 = dma.vmem_to_hbm [thread:$0]  %s5706_s17, 28672, %s9724_s5, [#allocation4], %s8226_s19, %s8226_s19, %s8227_s20  }
 0x47a   :  { %8214 = dma.done.wait [#allocation4], 28672  }
 0x47b   :  { %8215 = vsyncadd [#allocation4], 4294938624 }
 0x47c   :  { %5715 = vsyncpa [#allocation3], 1 }
 0x47d   :  { %5716 = vsyncpa [#allocation6], 1 }
 0x47e   :  { %5717 = vsyncpa [#allocation9], 1 }
 0x47f   :  { %5718 = vsyncpa [#allocation4], 1 }

</bundles_post_ra>
